<compile_context>
chip_gen: v5e
topology: v5e:2x2
jax: 0.10.0
libtpu: 0.0.40
codegen_flags: <defaults>
</compile_context>

<pallas_src>
import jax
import jax.numpy as jnp
from jax import lax
from jax.experimental import pallas as pl
from jax.experimental.pallas import tpu as pltpu

NF = 64                      # out channels (nf, module default)
KD = 3                       # filter_d
IN_CHAN = 1
NUM_CLASSES = 10
H = W = 28
HW = H * W                   # 784
KDIM = IN_CHAN * KD * KD     # 9
FC_IN = HW * NF              # 50176 == 28*28*64


# ---------------------------------------------------------------------------
# Fused kernel: per grid step, a block of bn samples.
#   p_ref:   (bn, 9, 784) f32   im2col patches
#   w_ref:   (64, 9)      f32   conv weights (resident)
#   b_ref:   (64, 1)      f32   conv bias    (resident)
#   fcw_ref: (640, 784)   bf16  fc weights, row = c*64 + f  (resident)
#   fcb_ref: (1, 10)      f32   fc bias
#   o_ref:   (bn, 10)     f32   logits
# ---------------------------------------------------------------------------
def _fused_kernel(p_ref, w_ref, b_ref, fcw_ref, fcb_ref, o_ref):
    bn = p_ref.shape[0]

    w = w_ref[...]                                          # (64, 9)
    bias = jnp.broadcast_to(b_ref[...], (NF, HW))           # hoisted broadcast
    fcw = fcw_ref[...]                                      # (640, 784) bf16
    fcb = fcb_ref[...]                                      # (1, 10)

    # Hoisted selection constants for logits[c] = sum_f G[f, c*64 + f].
    row = lax.broadcasted_iota(jnp.int32, (NF, NUM_CLASSES * NF), 0)
    col = lax.broadcasted_iota(jnp.int32, (NF, NUM_CLASSES * NF), 1)
    band = col - row
    keep = band == 0
    for cc in range(1, NUM_CLASSES):                        # mask: j == f + c*64
        keep = keep | (band == cc * NF)
    srow = lax.broadcasted_iota(jnp.int32, (NUM_CLASSES * NF, NUM_CLASSES), 0)
    scol = lax.broadcasted_iota(jnp.int32, (NUM_CLASSES * NF, NUM_CLASSES), 1)
    sel = ((srow >= scol * NF) & (srow < (scol + 1) * NF)).astype(jnp.float32)

    for i in range(bn):                                     # static; bn <= 8
        # Conv as matmul (f32), bias + ReLU in f32 (cast only at the FC use).
        c = jnp.dot(w, p_ref[i], preferred_element_type=jnp.float32)   # (64,784)
        a = jnp.maximum(c + bias, 0.0)                                  # (64,784)

        # Fused FC: lane-contracting cross-product, then diagonal-band extract.
        g = lax.dot_general(
            a.astype(jnp.bfloat16), fcw,
            dimension_numbers=(((1,), (1,)), ((), ())),
            preferred_element_type=jnp.float32)                         # (64,640)
        gd = jnp.sum(jnp.where(keep, g, 0.0), axis=0, keepdims=True)    # (1,640)
        logits = jnp.dot(gd, sel, preferred_element_type=jnp.float32)   # (1,10)
        o_ref[pl.ds(i, 1), :] = logits + fcb


def _pick_bn(n):
    """Largest bn <= 8 that divides n and leaves >= 2 grid steps (when n >= 2)."""
    best = 1
    for d in range(1, min(8, n) + 1):
        if n % d == 0 and (n // d >= 2 or n == 1):
            best = d
    return best


def forward(x, conv_w, conv_b, fc_w, fc_b):
    n = x.shape[0]
    patches = im2col(x)                                     # (N, 9, 784) f32
    w_mat = conv_w.reshape(NF, KDIM).astype(jnp.float32)    # (64, 9)
    b_col = conv_b.reshape(NF, 1).astype(jnp.float32)       # (64, 1)
    # Free reshape (pure metadata): row index = c*64 + f, lanes = p (784).
    fcw2 = fc_w.reshape(NUM_CLASSES * NF, HW).astype(jnp.bfloat16)   # (640, 784)
    fcb = fc_b.reshape(1, NUM_CLASSES).astype(jnp.float32)

    bn = _pick_bn(n)
    g = n // bn

    out = pl.pallas_call(
        _fused_kernel,
        out_shape=jax.ShapeDtypeStruct((g, bn, NUM_CLASSES), jnp.float32),
        grid_spec=pltpu.PrefetchScalarGridSpec(
            num_scalar_prefetch=0,
            grid=(g,),
            in_specs=[
                pl.BlockSpec((bn, KDIM, HW), lambda i: (i, 0, 0)),
                pl.BlockSpec((NF, KDIM), lambda i: (0, 0)),
                pl.BlockSpec((NF, 1), lambda i: (0, 0)),
                pl.BlockSpec((NUM_CLASSES * NF, HW), lambda i: (0, 0)),
                pl.BlockSpec((1, NUM_CLASSES), lambda i: (0, 0)),
            ],
            out_specs=pl.BlockSpec((None, bn, NUM_CLASSES), lambda i: (i, 0, 0)),
        ),
        compiler_params=pltpu.CompilerParams(
            dimension_semantics=("parallel",)),
    )(patches, w_mat, b_col, fcw2, fcb)
    return out.reshape(n, NUM_CLASSES)


# ---------------------------------------------------------------------------
# im2col in (N, C*9, HW) layout (tap order matches OIHW weight flatten)
# ---------------------------------------------------------------------------
def im2col(x):
    n, c, h, w = x.shape
    xp = jnp.pad(x, ((0, 0), (0, 0), (1, 1), (1, 1)))
    taps = [xp[:, :, kh:kh + h, kw:kw + w]
            for kh in range(KD) for kw in range(KD)]        # each (N, C, H, W)
    p = jnp.stack(taps, axis=2)                             # (N, C, 9, H, W)
    return p.reshape(n, c * KD * KD, h * w)                 # (N, C*9, HW)


# ---------------------------------------------------------------------------
# Pure-JAX reference of the PyTorch forward (for correctness check)
# ---------------------------------------------------------------------------
def reference_forward(x, conv_w, conv_b, fc_w, fc_b):
    dn = ('NCHW', 'OIHW', 'NCHW')
    hi = lax.Precision.HIGHEST
    c = lax.conv_general_dilated(x, conv_w, (1, 1), 'SAME',
                                 dimension_numbers=dn, precision=hi) \
        + conv_b[None, :, None, None]
    r = jnp.maximum(c, 0.0)
    xf = r.reshape(-1, FC_IN)
    return jnp.dot(xf, fc_w.T, precision=hi) + fc_b


if __name__ == "__main__":
    key = jax.random.PRNGKey(0)
    k1, k2, k3, k4, k5 = jax.random.split(key, 5)
    x = jax.random.normal(k1, (2, IN_CHAN, H, W), jnp.float32)
    conv_w = jax.random.normal(k2, (NF, IN_CHAN, KD, KD), jnp.float32) * 0.1
    conv_b = jax.random.normal(k3, (NF,), jnp.float32) * 0.1
    fc_w = jax.random.normal(k4, (NUM_CLASSES, FC_IN), jnp.float32) * 0.01
    fc_b = jax.random.normal(k5, (NUM_CLASSES,), jnp.float32) * 0.01

    out = jax.jit(forward)(x, conv_w, conv_b, fc_w, fc_b)
    out = jax.block_until_ready(out)

    ref = reference_forward(x, conv_w, conv_b, fc_w, fc_b)
    assert out.shape == (2, NUM_CLASSES), out.shape
    assert jnp.allclose(out, ref, atol=1e-2, rtol=1e-2), \
        float(jnp.max(jnp.abs(out - ref)))
    print("KERNEL_OK")
</pallas_src>

<mosaic_0001>
module attributes {stable_mosaic.version = 11 : i64} {
  func.func @_fused_kernel(%arg0: i32, %arg1: memref<1x9x784xf32, #tpu.memory_space<vmem>>, %arg2: memref<64x9xf32, #tpu.memory_space<vmem>>, %arg3: memref<64x1xf32, #tpu.memory_space<vmem>>, %arg4: memref<640x784xbf16, #tpu.memory_space<vmem>>, %arg5: memref<1x10xf32, #tpu.memory_space<vmem>>, %arg6: memref<1x1x10xf32, #tpu.memory_space<vmem>>) attributes {dimension_semantics = [#tpu.dimension_semantics<parallel>], iteration_bounds = array<i64: 2>, scalar_prefetch = 0 : i64, scratch_operands = 0 : i64, tpu.core_type = #tpu.core_type<tc>, window_params = [{transform_indices = @transform_0, window_bounds = array<i64: 1, 9, 784>}, {pipeline_mode = #tpu.pipeline_mode<synchronous>, transform_indices = @transform_1, window_bounds = array<i64: 64, 9>}, {pipeline_mode = #tpu.pipeline_mode<synchronous>, transform_indices = @transform_2, window_bounds = array<i64: 64, 1>}, {pipeline_mode = #tpu.pipeline_mode<synchronous>, transform_indices = @transform_3, window_bounds = array<i64: 640, 784>}, {pipeline_mode = #tpu.pipeline_mode<synchronous>, transform_indices = @transform_4, window_bounds = array<i64: 1, 10>}, {transform_indices = @transform_5, window_bounds = array<i64: 1, 1, 10>}]} {
    %c0 = arith.constant 0 : index
    %c0_0 = arith.constant 0 : index
    %0 = vector.load %arg2[%c0, %c0_0] : memref<64x9xf32, #tpu.memory_space<vmem>>, vector<64x9xf32>
    %c0_1 = arith.constant 0 : index
    %c0_2 = arith.constant 0 : index
    %1 = vector.load %arg3[%c0_1, %c0_2] : memref<64x1xf32, #tpu.memory_space<vmem>>, vector<64x1xf32>
    %2 = vector.shape_cast %1 : vector<64x1xf32> to vector<64x1xf32>
    %3 = vector.broadcast %2 : vector<64x1xf32> to vector<64x784xf32>
    %c0_3 = arith.constant 0 : index
    %c0_4 = arith.constant 0 : index
    %4 = vector.load %arg4[%c0_3, %c0_4] : memref<640x784xbf16, #tpu.memory_space<vmem>>, vector<640x784xbf16>
    %c0_5 = arith.constant 0 : index
    %c0_6 = arith.constant 0 : index
    %5 = vector.load %arg5[%c0_5, %c0_6] : memref<1x10xf32, #tpu.memory_space<vmem>>, vector<1x10xf32>
    %6 = tpu.iota {dimensions = array<i32: 0>} : vector<64x640xi32>
    %7 = tpu.iota {dimensions = array<i32: 1>} : vector<64x640xi32>
    %8 = arith.subi %7, %6 : vector<64x640xi32>
    %c0_i32 = arith.constant 0 : i32
    %9 = vector.broadcast %c0_i32 : i32 to vector<64x640xi32>
    %10 = arith.cmpi eq, %8, %9 : vector<64x640xi32>
    %c64_i32 = arith.constant 64 : i32
    %11 = vector.broadcast %c64_i32 : i32 to vector<64x640xi32>
    %12 = arith.cmpi eq, %8, %11 : vector<64x640xi32>
    %13 = arith.ori %10, %12 : vector<64x640xi1>
    %c128_i32 = arith.constant 128 : i32
    %14 = vector.broadcast %c128_i32 : i32 to vector<64x640xi32>
    %15 = arith.cmpi eq, %8, %14 : vector<64x640xi32>
    %16 = arith.ori %13, %15 : vector<64x640xi1>
    %c192_i32 = arith.constant 192 : i32
    %17 = vector.broadcast %c192_i32 : i32 to vector<64x640xi32>
    %18 = arith.cmpi eq, %8, %17 : vector<64x640xi32>
    %19 = arith.ori %16, %18 : vector<64x640xi1>
    %c256_i32 = arith.constant 256 : i32
    %20 = vector.broadcast %c256_i32 : i32 to vector<64x640xi32>
    %21 = arith.cmpi eq, %8, %20 : vector<64x640xi32>
    %22 = arith.ori %19, %21 : vector<64x640xi1>
    %c320_i32 = arith.constant 320 : i32
    %23 = vector.broadcast %c320_i32 : i32 to vector<64x640xi32>
    %24 = arith.cmpi eq, %8, %23 : vector<64x640xi32>
    %25 = arith.ori %22, %24 : vector<64x640xi1>
    %c384_i32 = arith.constant 384 : i32
    %26 = vector.broadcast %c384_i32 : i32 to vector<64x640xi32>
    %27 = arith.cmpi eq, %8, %26 : vector<64x640xi32>
    %28 = arith.ori %25, %27 : vector<64x640xi1>
    %c448_i32 = arith.constant 448 : i32
    %29 = vector.broadcast %c448_i32 : i32 to vector<64x640xi32>
    %30 = arith.cmpi eq, %8, %29 : vector<64x640xi32>
    %31 = arith.ori %28, %30 : vector<64x640xi1>
    %c512_i32 = arith.constant 512 : i32
    %32 = vector.broadcast %c512_i32 : i32 to vector<64x640xi32>
    %33 = arith.cmpi eq, %8, %32 : vector<64x640xi32>
    %34 = arith.ori %31, %33 : vector<64x640xi1>
    %c576_i32 = arith.constant 576 : i32
    %35 = vector.broadcast %c576_i32 : i32 to vector<64x640xi32>
    %36 = arith.cmpi eq, %8, %35 : vector<64x640xi32>
    %37 = arith.ori %34, %36 : vector<64x640xi1>
    %38 = tpu.iota {dimensions = array<i32: 0>} : vector<640x10xi32>
    %39 = tpu.iota {dimensions = array<i32: 1>} : vector<640x10xi32>
    %c64_i32_7 = arith.constant 64 : i32
    %40 = vector.broadcast %c64_i32_7 : i32 to vector<640x10xi32>
    %41 = arith.muli %39, %40 : vector<640x10xi32>
    %42 = arith.cmpi sge, %38, %41 : vector<640x10xi32>
    %c1_i32 = arith.constant 1 : i32
    %43 = vector.broadcast %c1_i32 : i32 to vector<640x10xi32>
    %44 = arith.addi %39, %43 : vector<640x10xi32>
    %c64_i32_8 = arith.constant 64 : i32
    %45 = vector.broadcast %c64_i32_8 : i32 to vector<640x10xi32>
    %46 = arith.muli %44, %45 : vector<640x10xi32>
    %47 = arith.cmpi slt, %38, %46 : vector<640x10xi32>
    %48 = arith.andi %42, %47 : vector<640x10xi1>
    %49 = arith.extui %48 : vector<640x10xi1> to vector<640x10xi32>
    %50 = arith.sitofp %49 : vector<640x10xi32> to vector<640x10xf32>
    %c0_9 = arith.constant 0 : index
    %c0_10 = arith.constant 0 : index
    %c0_11 = arith.constant 0 : index
    %51 = vector.load %arg1[%c0_9, %c0_10, %c0_11] : memref<1x9x784xf32, #tpu.memory_space<vmem>>, vector<1x9x784xf32>
    %52 = vector.shape_cast %51 : vector<1x9x784xf32> to vector<9x784xf32>
    %cst = arith.constant dense<0.000000e+00> : vector<64x784xf32>
    %53 = tpu.matmul %0, %52, %cst {dimension_numbers = #tpu.dot_dimension_numbers<[1], [0], [0], [1], [0, 0, 1, 1], [], []>} : vector<64x9xf32>, vector<9x784xf32>, vector<64x784xf32> -> vector<64x784xf32>
    %54 = arith.addf %53, %3 : vector<64x784xf32>
    %cst_12 = arith.constant 0.000000e+00 : f32
    %55 = vector.broadcast %cst_12 : f32 to vector<64x784xf32>
    %56 = arith.maximumf %54, %55 : vector<64x784xf32>
    %57 = arith.truncf %56 : vector<64x784xf32> to vector<64x784xbf16>
    %cst_13 = arith.constant dense<0.000000e+00> : vector<64x640xf32>
    %58 = tpu.matmul %57, %4, %cst_13 {dimension_numbers = #tpu.dot_dimension_numbers<[1], [1], [0], [0], [0, 0, 1, 0], [], []>} : vector<64x784xbf16>, vector<640x784xbf16>, vector<64x640xf32> -> vector<64x640xf32>
    %cst_14 = arith.constant 0.000000e+00 : f32
    %59 = vector.broadcast %cst_14 : f32 to vector<64x640xf32>
    %60 = arith.select %37, %58, %59 : vector<64x640xi1>, vector<64x640xf32>
    %cst_15 = arith.constant dense<0.000000e+00> : vector<640xf32>
    %61 = vector.multi_reduction <add>, %60, %cst_15 [0] : vector<64x640xf32> to vector<640xf32>
    %62 = vector.shape_cast %61 : vector<640xf32> to vector<1x640xf32>
    %cst_16 = arith.constant dense<0.000000e+00> : vector<1x10xf32>
    %63 = tpu.matmul %62, %50, %cst_16 {dimension_numbers = #tpu.dot_dimension_numbers<[1], [0], [0], [1], [0, 0, 1, 1], [], []>} : vector<1x640xf32>, vector<640x10xf32>, vector<1x10xf32> -> vector<1x10xf32>
    %64 = arith.addf %63, %5 : vector<1x10xf32>
    %c0_17 = arith.constant 0 : index
    %c0_18 = arith.constant 0 : index
    %c0_19 = arith.constant 0 : index
    %65 = vector.load %arg6[%c0_17, %c0_18, %c0_19] : memref<1x1x10xf32, #tpu.memory_space<vmem>>, vector<1x1x10xf32>
    %66 = vector.shape_cast %65 : vector<1x1x10xf32> to vector<1x10xf32>
    %67 = vector.shape_cast %64 : vector<1x10xf32> to vector<1x1x10xf32>
    tpu.vector_store %arg6[%c0_17, %c0_18, %c0_19], %67 {strides = array<i32>} : memref<1x1x10xf32, #tpu.memory_space<vmem>>, vector<1x1x10xf32>,
    return
  }
  func.func @transform_0(%arg0: i32) -> (i32, i32, i32) {
    %c0_i32 = arith.constant 0 : i32
    %c0_i32_0 = arith.constant 0 : i32
    %c0_i32_1 = arith.constant 0 : i32
    return %arg0, %c0_i32, %c0_i32_0 : i32, i32, i32
  }
  func.func @transform_1(%arg0: i32) -> (i32, i32) {
    %c0_i32 = arith.constant 0 : i32
    %c0_i32_0 = arith.constant 0 : i32
    %c0_i32_1 = arith.constant 0 : i32
    return %c0_i32, %c0_i32_0 : i32, i32
  }
  func.func @transform_2(%arg0: i32) -> (i32, i32) {
    %c0_i32 = arith.constant 0 : i32
    %c0_i32_0 = arith.constant 0 : i32
    %c0_i32_1 = arith.constant 0 : i32
    return %c0_i32, %c0_i32_0 : i32, i32
  }
  func.func @transform_3(%arg0: i32) -> (i32, i32) {
    %c0_i32 = arith.constant 0 : i32
    %c0_i32_0 = arith.constant 0 : i32
    %c0_i32_1 = arith.constant 0 : i32
    return %c0_i32, %c0_i32_0 : i32, i32
  }
  func.func @transform_4(%arg0: i32) -> (i32, i32) {
    %c0_i32 = arith.constant 0 : i32
    %c0_i32_0 = arith.constant 0 : i32
    %c0_i32_1 = arith.constant 0 : i32
    return %c0_i32, %c0_i32_0 : i32, i32
  }
  func.func @transform_5(%arg0: i32) -> (i32, i32, i32) {
    %c0_i32 = arith.constant 0 : i32
    %c0_i32_0 = arith.constant 0 : i32
    %c0_i32_1 = arith.constant 0 : i32
    return %arg0, %c0_i32, %c0_i32_0 : i32, i32, i32
  }
}

</mosaic_0001>

<bundles_post_ra>
// kernel: forward.1
= control target key start
LH: loop header
LB: loop body
LE: loop exit
PB: predicated region body
PF: predicated region fallthrough
CT: control target
= control target key end

     0   :  { %10 = vsyncpa [#allocation3], 0  ;;  %s10299_s0 = inlined_call_operand.vmem [shape: f32[2,9,784], index: 0, kind: input, shape index: {}]   ;;  %s10300_s1 = inlined_call_operand.vmem [shape: f32[64,9], index: 1, kind: input, shape index: {}]   ;;  %s10301_s2 = inlined_call_operand.vmem [shape: f32[64,1], index: 2, kind: input, shape index: {}]   ;;  %s10302_s3 = inlined_call_operand.vmem [shape: bf16[640,784], index: 3, kind: input, shape index: {}]   ;;  %s10303_s4 = inlined_call_operand.vmem [shape: f32[1,10], index: 4, kind: input, shape index: {}]   ;;  %s10304_s5 = inlined_call_operand.hbm [shape: f32[2,1,10], index: 5, kind: output, shape index: {}]  }
   0x1   :  { %12 = vsyncpa [#allocation3 + $0x1], 0  ;;  %s6939_s18 = smov 0   ;;  %s6941_s19 = smov 0  }
   0x2   :  { %s6943_s20 = smov 0   ;;  %s6945_s21 = smov 0  }
   0x3 LB: > { %s6960_s22 = sadd.s32 4294967295, %s6905_s21   ;;  %s5144_s23 = sadd.s32 4294967294, %s6905_s21   ;;  %s6905_s21 = sphi %s6945_s21, %s10423_s21   ;;  %s6901_s20 = sphi %s6943_s20, %s10422_s20   ;;  %s6897_s19 = sphi %s6941_s19, %s10421_s19   ;;  %s6893_s18 = sphi %s6939_s18, %s10420_s18  }
   0x4   : > { %s6964_s24 = sadd.s32 1, %s6905_s21   ;;  %s135_s25 = sadd.s32 1, %s6901_s20 }
   0x5   : > { %s132_s26 = ssub.s32 %s6905_s21, %s6964_s24  ;;  %p145_p0 = scmp.ne.s32.totalorder %s6901_s20, %s6897_s19 }
   0x6   : > { %p133_p1 = scmp.eq.s32.totalorder %s132_s26, 0  ;;  %p146_p2 = scmp.eq.s32.totalorder %s6960_s22, 1 }
   0x7   : > { %p151_p3 = scmp.ne.s32.totalorder %s6897_s19, %s6893_s18  ;;  %p152_p4 = scmp.eq.s32.totalorder %s5144_s23, 1 }
   0x8   : > { %s6975_s27 = scalar_select %p133_p1, %s6901_s20, %s135_s25  }
   0x9   : > { %p6977_p5 = por %p146_p2, %p145_p0  ;;  %p6981_p6 = por %p152_p4, %p151_p3 }
   0xa   : > { %p5147_p7 = scmp.ge.s32.totalorder %s6905_s21, 1  ;;  %p190_p8 = scmp.lt.s32.totalorder %s6905_s21, 3 }
   0xc   : > { %p191_p9 = pnand %p5147_p7, %p190_p8 }
   0xe   : > { %194 = sbr.rel (%p191_p9) target bundleno = 1035 (0x40b), region = 40 }
  0x13   : > { %p217_p10 = scmp.lt.s32.totalorder %s6960_s22, 1  ;;  %v6907_v0 = vmov 0   ;;  %v230_v1 = vld [vmem:[%s10301_s2] sm:$0xff]  ;;  %v232_v2 = vld [vmem:[%s10301_s2 + $0x10] sm:$0xff]  ;;  %vm1928_vm0 = vcmask 1040384   ;;  %vm1903_vm1 = vcmask 72704   ;;  %s5085_s16 = scalar_lea.hbm %s10304_s5, %s6960_s22 }
  0x14   : > { %6840 = vset.pattern.permute.xlu0 %v6907_v0  ;;  %6841 = vset.pattern.permute.xlu1 %v6907_v0  ;;  %v7011_v7 = vld [vmem:[%s10300_s1] sm:$0xff]  ;;  %v7016_v8 = vld [vmem:[%s10300_s1 + $0x30] sm:$0xff]  ;;  %v7021_v9 = vld [vmem:[%s10300_s1 + $0x38] sm:$0xff]  ;;  %vm3721_vm2 = vcmask 130048   ;;  %s215_s12 = sand.u32 1, %s6897_s19  }
  0x15   : > { %s218_s7 = scalar_select %p217_p10, %s6960_s22, 1  ;;  %240 = vperm.xlu0 %6840, %v230_v1   ;;  %6842 = vset.pattern.permute.xlu2 %v6907_v0  ;;  %v231_v12 = vld [vmem:[%s10301_s2 + $0x8] sm:$0xff]  ;;  %v233_v13 = vld [vmem:[%s10301_s2 + $0x18] sm:$0xff]  ;;  %v236_v20 = vld [vmem:[%s10301_s2 + $0x30] sm:$0xff] }
  0x16   : > { %250 = vperm.xlu1 %6841, %v232_v2   ;;  %v7049_v19 = vld [vmem:[%s10300_s1 + $0x8] sm:$0xff]  ;;  %v237_v21 = vld [vmem:[%s10301_s2 + $0x38] sm:$0xff]  ;;  %v7072_v23 = vld [vmem:[%s10300_s1 + $0x10] sm:$0xff]  ;;  %s216_s17 = scalar_lea.vmem [#allocation2], %s215_s12  ;;  %s5077_s25 = scalar_lea.sflag [#allocation3], %s215_s12 }
  0x17   : > { %s6798_s10 = smul.u32 112, %s218_s7  ;;  %v7087_v26 = vld [vmem:[%s10300_s1 + $0x18] sm:$0xff]  ;;  %v7100_v27 = vld [vmem:[%s10300_s1 + $0x20] sm:$0xff]  ;;  %v7116_v29 = vld [vmem:[%s10300_s1 + $0x28] sm:$0xff]  ;;  %s5087_s23 = sshll.u32 %s216_s17, 4  ;;  %s5088_s23 = int_to_ptr.vmem [resolvable:$true] %s5087_s23 }
  0x18   : > { %v234_v28 = vld [vmem:[%s10301_s2 + $0x20] sm:$0xff]  ;;  %v235_v30 = vld [vmem:[%s10301_s2 + $0x28] sm:$0xff]  ;;  %v5462_v37 = vld [vmem:[%s10302_s3 + $0x150] sm:$0xf]  ;;  %s6863_s7 = scalar_lea.hbm %s10304_s5, 2 }
  0x19   : > { %s6998_s13 = scalar_lea.vmem %s10299_s0, %s6798_s10  ;;  %260 = vperm.xlu2 %6842, %v234_v28   ;;  %v5490_v31 = vld [vmem:[%s10302_s3 + $0x188] sm:$0xf]  ;;  %v6566_v32 = vld [vmem:[%s10302_s3 + $0x1a0] sm:$0xf0]  ;;  %v6563_v34 = vld [vmem:[%s10302_s3 + $0x18c] sm:$0xf] }
  0x1a   : > { %v1896_v3 = vld [vmem:[%s6998_s13 + $0x38] sm:$0x1]  ;;  %v1897_v4 = vld [vmem:[%s6998_s13 + $0x40] sm:$0x1]  ;;  %v1890_v6 = vld [vmem:[%s6998_s13 + $0x8] sm:$0xff]  ;;  %v5491_v33 = vor.u32 %v6566_v32, %v5490_v31 }
  0x1b   : > { %v1889_v5 = vld [vmem:[%s6998_s13] sm:$0xff]  ;;  %5229 = vmatpush.msk.msra.mxu0 %vm1928_vm0, %v1896_v3  ;;  %6794 = vmatpush.msk.msra.mxu2 %vm1928_vm0, %v1896_v3  ;;  %v1898_v10 = vld [vmem:[%s6998_s13 + $0x48] sm:$0x1]  ;;  %v1899_v11 = vld [vmem:[%s6998_s13 + $0x50] sm:$0x1] }
  0x1c   : > { %5238 = vmatpush.msk.msra.mxu1 %vm1928_vm0, %v1897_v4  ;;  %6796 = vmatpush.msk.msra.mxu3 %vm1928_vm0, %v1897_v4  ;;  %v1892_v14 = vld [vmem:[%s6998_s13 + $0x18] sm:$0xff]  ;;  %v1891_v15 = vld [vmem:[%s6998_s13 + $0x10] sm:$0xff]  ;;  %v1902_v16 = vld [vmem:[%s6998_s13 + $0x68] sm:$0x1] }
  0x1d   : > { %1965 = vmatpush.msra.mxu0 %v1889_v5  ;;  %6795 = vmatpush.msra.mxu2 %v1889_v5  ;;  %v1900_v17 = vld [vmem:[%s6998_s13 + $0x58] sm:$0x1]  ;;  %v1901_v18 = vld [vmem:[%s6998_s13 + $0x60] sm:$0x1]  ;;  %v1895_v24 = vld [vmem:[%s6998_s13 + $0x30] sm:$0xff] }
  0x1e   : > { %2006 = vmatpush.msra.mxu1 %v1890_v6  ;;  %6797 = vmatpush.msra.mxu3 %v1890_v6  ;;  %v1893_v22 = vld [vmem:[%s6998_s13 + $0x20] sm:$0xff]  ;;  %v1894_v25 = vld [vmem:[%s6998_s13 + $0x28] sm:$0xff]  ;;  %v6556_v39 = vld [vmem:[%s10302_s3 + $0x154] sm:$0xf]  ;;  %s5089_s13 = sshll.u32 %s5085_s16, 4  ;;  %s5090_s13 = int_to_ptr.hbm [resolvable:$true] %s5089_s13 }
  0x1f   : > { %5230 = vmatmul.msk.f32.vlgmr.msra.gmra.mxu0 %vm1903_vm1, %v7011_v7  ;;  %5236 = vmatmul.msk.f32.vlgmr.msra.gmra.mxu2 %vm1903_vm1, %v7016_v8  ;;  %v5492_v35 = vld [vmem:[%s10302_s3 + $0x1a4] sm:$0xf0]  ;;  %v6559_v38 = vld [vmem:[%s10302_s3 + $0x168] sm:$0xf0]  ;;  %v5464_v41 = vld [vmem:[%s10302_s3 + $0x16c] sm:$0xf0] }
  0x20   : > { %5239 = vmatmul.msk.f32.vlgmr.msra.gmra.mxu1 %vm1903_vm1, %v7011_v7  ;;  %5246 = vmatmul.msk.f32.vlgmr.msra.gmra.mxu3 %vm1903_vm1, %v7021_v9  ;;  %v5495_v36 = vor.u32 %v6563_v34, %v5492_v35  ;;  %v5463_v40 = vor.u32 %v6559_v38, %v5462_v37  ;;  %v5467_v42 = vor.u32 %v6556_v39, %v5464_v41  ;;  %v6564_v43 = vld [vmem:[%s10302_s3 + $0x194] sm:$0xf]  ;;  %v5500_v44 = vld [vmem:[%s10302_s3 + $0x1ac] sm:$0xf0]  ;;  %v5434_v45 = vld [vmem:[%s10302_s3 + $0x118] sm:$0xf] }
  0x21   : > { %5247 = vmatpush.msk.msrb.mxu2 %vm1928_vm0, %v1898_v10  ;;  %5256 = vmatpush.msk.msrb.mxu3 %vm1928_vm0, %v1899_v11  ;;  %v5503_v46 = vor.u32 %v6564_v43, %v5500_v44  ;;  %v6552_v47 = vld [vmem:[%s10302_s3 + $0x130] sm:$0xf0]  ;;  %v6549_v48 = vld [vmem:[%s10302_s3 + $0x11c] sm:$0xf]  ;;  %v5436_v49 = vld [vmem:[%s10302_s3 + $0x134] sm:$0xf0] }
  0x22   : > { %245 = vperm.xlu0 %6840, %v231_v12   ;;  %255 = vperm.xlu1 %6841, %v233_v13   ;;  %v5435_v50 = vor.u32 %v6552_v47, %v5434_v45  ;;  %v5439_v51 = vor.u32 %v6549_v48, %v5436_v49  ;;  %v5498_v52 = vld [vmem:[%s10302_s3 + $0x190] sm:$0xf]  ;;  %v6567_v53 = vld [vmem:[%s10302_s3 + $0x1a8] sm:$0xf0]  ;;  %v6557_v54 = vld [vmem:[%s10302_s3 + $0x15c] sm:$0xf] }
  0x23   : > { %2088 = vmatpush.msrb.mxu3 %v1892_v14  ;;  %2047 = vmatpush.msrb.mxu2 %v1891_v15  ;;  %v5499_v55 = vor.u32 %v6567_v53, %v5498_v52  ;;  %v5472_v56 = vld [vmem:[%s10302_s3 + $0x174] sm:$0xf0]  ;;  %v5406_v57 = vld [vmem:[%s10302_s3 + $0xe0] sm:$0xf]  ;;  %v6545_v58 = vld [vmem:[%s10302_s3 + $0xf8] sm:$0xf0] }
  0x24   : > { %5265 = vmatpush.msk.msrb.mxu0 %vm1928_vm0, %v1900_v17  ;;  %5274 = vmatpush.msk.msrb.mxu1 %vm1928_vm0, %v1901_v18  ;;  %v5475_v59 = vor.u32 %v6557_v54, %v5472_v56  ;;  %v5407_v60 = vor.u32 %v6545_v58, %v5406_v57  ;;  %v6542_v61 = vld [vmem:[%s10302_s3 + $0xe4] sm:$0xf]  ;;  %v5408_v62 = vld [vmem:[%s10302_s3 + $0xfc] sm:$0xf0]  ;;  %v5470_v0 = vld [vmem:[%s10302_s3 + $0x158] sm:$0xf] }
  0x25   : > { %5283 = vmatpush.msk.msra.mxu2 %vm1928_vm0, %v1902_v16  ;;  %265 = vperm.xlu2 %6842, %v235_v30   ;;  %v5411_v63 = vor.u32 %v6542_v61, %v5408_v62  ;;  %v6560_v1 = vld [vmem:[%s10302_s3 + $0x170] sm:$0xf0]  ;;  %v6550_v2 = vld [vmem:[%s10302_s3 + $0x124] sm:$0xf]  ;;  %v5444_v4 = vld [vmem:[%s10302_s3 + $0x13c] sm:$0xf0] }
  0x26   : > { %2129 = vmatpush.msrb.mxu0 %v1893_v22  ;;  %2170 = vmatpush.msrb.mxu1 %v1894_v25  ;;  %v5471_v3 = vor.u32 %v6560_v1, %v5470_v0  ;;  %v5378_v5 = vld [vmem:[%s10302_s3 + $0xa8] sm:$0xf]  ;;  %v6538_v6 = vld [vmem:[%s10302_s3 + $0xc0] sm:$0xf0]  ;;  %v5447_v10 = vor.u32 %v6550_v2, %v5444_v4  ;;  %v6535_v12 = vld [vmem:[%s10302_s3 + $0xac] sm:$0xf] }
  0x27   : > { %5231 = vmatmul.msk.f32.gmra.mxu0 %vm1903_vm1, %v7049_v19  ;;  %5237 = vmatmul.msk.f32.gmra.mxu2 %vm1903_vm1, %v7021_v9  ;;  %v5379_v11 = vor.u32 %v6538_v6, %v5378_v5  ;;  %v5380_v13 = vld [vmem:[%s10302_s3 + $0xc4] sm:$0xf0]  ;;  %v5442_v15 = vld [vmem:[%s10302_s3 + $0x120] sm:$0xf]  ;;  %v6553_v16 = vld [vmem:[%s10302_s3 + $0x138] sm:$0xf0] }
  0x28   : > { %5240 = vmatmul.msk.f32.gmra.mxu1 %vm1903_vm1, %v7049_v19  ;;  %5257 = vmatmul.msk.f32.vlgmr.msrb.gmra.mxu3 %vm1903_vm1, %v7011_v7  ;;  %v5383_v14 = vor.u32 %v6535_v12, %v5380_v13  ;;  %v6543_v17 = vld [vmem:[%s10302_s3 + $0xec] sm:$0xf]  ;;  %v5443_v18 = vor.u32 %v6553_v16, %v5442_v15  ;;  %v6528_v25 = vld [vmem:[%s10302_s3 + $0x74] sm:$0xf]  ;;  %v5352_v28 = vld [vmem:[%s10302_s3 + $0x8c] sm:$0xf0] }
  0x29   : > { %2211 = vmatpush.msra.mxu2 %v1895_v24  ;;  %3854 = vmatpush.bf16.xpose.msra.mxu3 %v5491_v33  ;;  %v5355_v30 = vor.u32 %v6528_v25, %v5352_v28  ;;  %v5414_v31 = vld [vmem:[%s10302_s3 + $0xe8] sm:$0xf]  ;;  %v6546_v32 = vld [vmem:[%s10302_s3 + $0x100] sm:$0xf0]  ;;  %v6536_v33 = vld [vmem:[%s10302_s3 + $0xb4] sm:$0xf] }
  0x2a   : > { %270 = vperm.xlu0 %6840, %v236_v20   ;;  %275 = vperm.xlu1 %6841, %v237_v21   ;;  %v5350_v20 = vld [vmem:[%s10302_s3 + $0x70] sm:$0xf]  ;;  %v6531_v21 = vld [vmem:[%s10302_s3 + $0x88] sm:$0xf0]  ;;  %v5415_v34 = vor.u32 %v6546_v32, %v5414_v31  ;;  %v6524_v37 = vld [vmem:[%s10302_s3 + $0x50] sm:$0xf0] }
  0x2b   : > { %3883 = vmatpush.bf16.xpose.msra.mxu0 %v5495_v36  ;;  %3912 = vmatpush.bf16.xpose.msra.mxu1 %v5499_v55  ;;  %v5351_v24 = vor.u32 %v6531_v21, %v5350_v20  ;;  %v5322_v36 = vld [vmem:[%s10302_s3 + $0x38] sm:$0xf]  ;;  %v6521_v38 = vld [vmem:[%s10302_s3 + $0x3c] sm:$0xf]  ;;  %v6539_v43 = vld [vmem:[%s10302_s3 + $0xc8] sm:$0xf0] }
  0x2c   : > { %v5323_v39 = vor.u32 %v6524_v37, %v5322_v36  ;;  %v6529_v44 = vld [vmem:[%s10302_s3 + $0x7c] sm:$0xf]  ;;  %v5294_v47 = vld [vmem:[%s10302_s3] sm:$0xf]  ;;  %v6514_v49 = vld [vmem:[%s10302_s3 + $0x4] sm:$0xf] }
  0x2d   : > { %v6517_v48 = vld [vmem:[%s10302_s3 + $0x18] sm:$0xf0]  ;;  %v5358_v53 = vld [vmem:[%s10302_s3 + $0x78] sm:$0xf]  ;;  %v6532_v54 = vld [vmem:[%s10302_s3 + $0x90] sm:$0xf0] }
  0x2e   : > { %v6522_v55 = vld [vmem:[%s10302_s3 + $0x44] sm:$0xf]  ;;  %v5359_v56 = vor.u32 %v6532_v54, %v5358_v53  ;;  %v5506_v58 = vld [vmem:[%s10302_s3 + $0x198] sm:$0xf]  ;;  %v5330_v0 = vld [vmem:[%s10302_s3 + $0x40] sm:$0xf] }
  0x2f   : > { %5232 = vmatmul.msk.f32.gmra.mxu0 %vm1903_vm1, %v7072_v23  ;;  %5248 = vmatmul.msk.f32.vlgmr.msrb.gmra.mxu2 %vm1903_vm1, %v7011_v7  ;;  %v5508_v62 = vld [vmem:[%s10302_s3 + $0x1b4] sm:$0xf0]  ;;  %v6525_v1 = vld [vmem:[%s10302_s3 + $0x58] sm:$0xf0]  ;;  %v6515_v2 = vld [vmem:[%s10302_s3 + $0xc] sm:$0xf] }
  0x30   : > { %5241 = vmatmul.msk.f32.gmra.mxu1 %vm1903_vm1, %v7072_v23  ;;  %5258 = vmatmul.msk.f32.gmra.mxu3 %vm1903_vm1, %v7049_v19  ;;  %v5478_v5 = vld [vmem:[%s10302_s3 + $0x160] sm:$0xf]  ;;  %v6561_v6 = vld [vmem:[%s10302_s3 + $0x178] sm:$0xf0]  ;;  %v6518_v15 = vld [vmem:[%s10302_s3 + $0x20] sm:$0xf0] }
  0x31   : > { %3855 = vmatpush.bf16.xpose.msra.mxu3 %v5463_v40  ;;  %3941 = vmatpush.bf16.xpose.msrb.mxu2 %v5503_v46  ;;  %v5324_v40 = vld [vmem:[%s10302_s3 + $0x54] sm:$0xf0]  ;;  %v5480_v12 = vld [vmem:[%s10302_s3 + $0x17c] sm:$0xf0]  ;;  %v5714_v16 = vld [vmem:[%s10302_s3 + $0x348] sm:$0xf] }
  0x32   : > { %v5327_v41 = vor.u32 %v6521_v38, %v5324_v40  ;;  %v5450_v20 = vld [vmem:[%s10302_s3 + $0x128] sm:$0xf]  ;;  %v6554_v21 = vld [vmem:[%s10302_s3 + $0x140] sm:$0xf0]  ;;  %v5514_v32 = vld [vmem:[%s10302_s3 + $0x1a0] sm:$0xf] }
  0x33   : > { %3884 = vmatpush.bf16.xpose.msra.mxu0 %v5467_v42  ;;  %3913 = vmatpush.bf16.xpose.msra.mxu1 %v5471_v3  ;;  %v5386_v42 = vld [vmem:[%s10302_s3 + $0xb0] sm:$0xf]  ;;  %v5331_v3 = vor.u32 %v6525_v1, %v5330_v0  ;;  %v5452_v25 = vld [vmem:[%s10302_s3 + $0x144] sm:$0xf0]  ;;  %v5394_v0 = vld [vmem:[%s10302_s3 + $0xb8] sm:$0xf] }
  0x34   : > { %v5387_v45 = vor.u32 %v6539_v43, %v5386_v42  ;;  %v5422_v40 = vld [vmem:[%s10302_s3 + $0xf0] sm:$0xf]  ;;  %v5486_v54 = vld [vmem:[%s10302_s3 + $0x168] sm:$0xf]  ;;  %v6540_v1 = vld [vmem:[%s10302_s3 + $0xd0] sm:$0xf0] }
  0x35   : > { %s6857_s26 = sshra.s32 %s5090_s13, 4  ;;  %s6858_s26 = int_to_ptr.hbm [resolvable:$true] %s6857_s26 }
  0x36   : > { %s6859_s30 = scalar_lea.hbm %s6858_s26, 1  ;;  %p6864_p0 = scmp.lt.s32.totalorder %s6858_s26, %s10304_s5 }
  0x37   : > { %5233 = vmatmul.msk.f32.gmra.mxu0 %vm1903_vm1, %v7087_v26  ;;  %5249 = vmatmul.msk.f32.gmra.mxu2 %vm1903_vm1, %v7049_v19  ;;  %p6860_p11 = scmp.ne.s32.totalorder %s6858_s26, %s6859_s30  ;;  %p6865_p1 = scmp.lt.s32.totalorder %s6863_s7, %s6859_s30 }
  0x38   : > { %5242 = vmatmul.msk.f32.gmra.mxu1 %vm1903_vm1, %v7087_v26  ;;  %5259 = vmatmul.msk.f32.gmra.mxu3 %vm1903_vm1, %v7072_v23 }
  0x39   : > { %3856 = vmatpush.bf16.xpose.msra.mxu3 %v5435_v50  ;;  %3942 = vmatpush.bf16.xpose.msrb.mxu2 %v5475_v59  ;;  %v5295_v50 = vor.u32 %v6517_v48, %v5294_v47  ;;  %v6568_v59 = vld [vmem:[%s10302_s3 + $0x1b0] sm:$0xf0]  ;;  %p6861_p12 = pnand %p6860_p11, %p6977_p5  ;;  %p6866_p2 = por %p6865_p1, %p6864_p0 }
  0x3a   : > { %v5507_v61 = vor.u32 %v6568_v59, %v5506_v58  ;;  %v6608_v58 = vld [vmem:[%s10302_s3 + $0x2f0] sm:$0xf0] }
  0x3b   : > { %3885 = vmatpush.bf16.xpose.msra.mxu0 %v5439_v51  ;;  %3914 = vmatpush.bf16.xpose.msra.mxu1 %v5443_v18  ;;  %v5296_v51 = vld [vmem:[%s10302_s3 + $0x1c] sm:$0xf0]  ;;  %v6622_v18 = vld [vmem:[%s10302_s3 + $0x360] sm:$0xf0]  ;;  %p6862_p13 = pneg %p6861_p12 }
  0x3c   : > { %v5299_v52 = vor.u32 %v6514_v49, %v5296_v51 }
  0x3d   : > { %p6867_p3 = pnand %p6866_p2, %p6862_p13 }
  0x3f   : > { %5234 = vmatmul.msk.f32.gmra.mxu0 %vm1903_vm1, %v7100_v27  ;;  %5250 = vmatmul.msk.f32.gmra.mxu2 %vm1903_vm1, %v7072_v23 }
  0x40   : > { %5243 = vmatmul.msk.f32.gmra.mxu1 %vm1903_vm1, %v7100_v27  ;;  %5260 = vmatmul.msk.f32.gmra.mxu3 %vm1903_vm1, %v7087_v26 }
  0x41   : > { %3857 = vmatpush.bf16.xpose.msra.mxu3 %v5407_v60  ;;  %3943 = vmatpush.bf16.xpose.msrb.mxu2 %v5447_v10  ;;  %v6565_v60 = vld [vmem:[%s10302_s3 + $0x19c] sm:$0xf]  ;;  %v6558_v10 = vld [vmem:[%s10302_s3 + $0x164] sm:$0xf] }
  0x42   : > { %v5483_v13 = vor.u32 %v6558_v10, %v5480_v12  ;;  %v6555_v12 = vld [vmem:[%s10302_s3 + $0x148] sm:$0xf0] }
  0x43   : > { %3886 = vmatpush.bf16.xpose.msra.mxu0 %v5411_v63  ;;  %3915 = vmatpush.bf16.xpose.msra.mxu1 %v5415_v34  ;;  %v5511_v63 = vor.u32 %v6565_v60, %v5508_v62 }
  0x47   : > { %5235 = vmatmul.msk.f32.gmra.mxu0 %vm1903_vm1, %v7116_v29  ;;  %5251 = vmatmul.msk.f32.gmra.mxu2 %vm1903_vm1, %v7087_v26 }
  0x48   : > { %5244 = vmatmul.msk.f32.gmra.mxu1 %vm1903_vm1, %v7116_v29  ;;  %5261 = vmatmul.msk.f32.gmra.mxu3 %vm1903_vm1, %v7100_v27 }
  0x49   : > { %3858 = vmatpush.bf16.xpose.msra.mxu3 %v5379_v11  ;;  %v5479_v11 = vor.u32 %v6561_v6, %v5478_v5 }
  0x4b   : > { %3887 = vmatpush.bf16.xpose.msra.mxu0 %v5383_v14  ;;  %3916 = vmatpush.bf16.xpose.msra.mxu1 %v5387_v45  ;;  %v5302_v14 = vld [vmem:[%s10302_s3 + $0x8] sm:$0xf]  ;;  %v5424_v45 = vld [vmem:[%s10302_s3 + $0x10c] sm:$0xf0] }
  0x4f   : > { %5252 = vmatmul.msk.f32.gmra.mxu2 %vm1903_vm1, %v7100_v27  ;;  %5266 = vmatmul.msk.f32.vlgmr.msrb.gmra.mxu0 %vm1903_vm1, %v7011_v7 }
  0x50   : > { %5245 = vmatmul.msk.f32.gmra.mxu1 %vm1903_vm1, %v7016_v8  ;;  %5262 = vmatmul.msk.f32.gmra.mxu3 %vm1903_vm1, %v7116_v29 }
  0x51   : > { %3859 = vmatpush.bf16.xpose.msra.mxu3 %v5351_v24  ;;  %v5451_v24 = vor.u32 %v6554_v21, %v5450_v20 }
  0x53   : > { %3888 = vmatpush.bf16.xpose.msra.mxu0 %v5355_v30  ;;  %3917 = vmatpush.bf16.xpose.msra.mxu1 %v5359_v56 }
  0x57   : > { %5253 = vmatmul.msk.f32.gmra.mxu2 %vm1903_vm1, %v7116_v29  ;;  %5267 = vmatmul.msk.f32.gmra.mxu0 %vm1903_vm1, %v7049_v19 }
  0x58   : > { %5263 = vmatmul.msk.f32.gmra.mxu3 %vm1903_vm1, %v7016_v8  ;;  %5275 = vmatmul.msk.f32.vlgmr.msrb.gmra.mxu1 %vm1903_vm1, %v7011_v7 }
  0x59   : > { %3860 = vmatpush.bf16.xpose.msra.mxu3 %v5323_v39 }
  0x5b   : > { %3889 = vmatpush.bf16.xpose.msra.mxu0 %v5327_v41  ;;  %3918 = vmatpush.bf16.xpose.msra.mxu1 %v5331_v3  ;;  %v6547_v41 = vld [vmem:[%s10302_s3 + $0x108] sm:$0xf0]  ;;  %v5395_v3 = vor.u32 %v6540_v1, %v5394_v0 }
  0x5c   : > { %v5423_v43 = vor.u32 %v6547_v41, %v5422_v40  ;;  %v6523_v1 = vld [vmem:[%s10302_s3 + $0x4c] sm:$0xf] }
  0x5f   : > { %5254 = vmatmul.msk.f32.gmra.mxu2 %vm1903_vm1, %v7016_v8  ;;  %5268 = vmatmul.msk.f32.gmra.mxu0 %vm1903_vm1, %v7072_v23 }
  0x60   : > { %5264 = vmatmul.msk.f32.gmra.mxu3 %vm1903_vm1, %v7021_v9  ;;  %5276 = vmatmul.msk.f32.gmra.mxu1 %vm1903_vm1, %v7049_v19 }
  0x61   : > { %3861 = vmatpush.bf16.xpose.msra.mxu3 %v5295_v50 }
  0x63   : > { %3890 = vmatpush.bf16.xpose.msra.mxu0 %v5299_v52 }
  0x67   : > { %5255 = vmatmul.msk.f32.gmra.mxu2 %vm1903_vm1, %v7021_v9  ;;  %5269 = vmatmul.msk.f32.gmra.mxu0 %vm1903_vm1, %v7087_v26 }
  0x68   : > { %5277 = vmatmul.msk.f32.gmra.mxu1 %vm1903_vm1, %v7072_v23 }
  0x69   : > { %3970 = vmatpush.bf16.xpose.msrb.mxu3 %v5507_v61 }
  0x6b   : > { %3999 = vmatpush.bf16.xpose.msrb.mxu0 %v5511_v63 }
  0x6f   : > { %5270 = vmatmul.msk.f32.gmra.mxu0 %vm1903_vm1, %v7100_v27  ;;  %5284 = vmatmul.msk.f32.vlgmr.msra.gmra.mxu2 %vm1903_vm1, %v7011_v7  ;;  %v5416_v7 = vld [vmem:[%s10302_s3 + $0x104] sm:$0xf0] }
  0x70   : > { %5278 = vmatmul.msk.f32.gmra.mxu1 %vm1903_vm1, %v7087_v26  ;;  %v5419_v22 = vor.u32 %v6543_v17, %v5416_v7  ;;  %v5303_v17 = vor.u32 %v6518_v15, %v5302_v14  ;;  %v5630_v14 = vld [vmem:[%s10302_s3 + $0x2a0] sm:$0xf]  ;;  %v6601_v15 = vld [vmem:[%s10302_s3 + $0x2b8] sm:$0xf0] }
  0x71   : > { %3971 = vmatpush.bf16.xpose.msrb.mxu3 %v5479_v11  ;;  %v5458_v11 = vld [vmem:[%s10302_s3 + $0x130] sm:$0xf] }
  0x72   : > { %3944 = vmatpush.bf16.xpose.msrb.mxu2 %v5419_v22  ;;  %v6551_v22 = vld [vmem:[%s10302_s3 + $0x12c] sm:$0xf]  ;;  %3919 = vmatpush.bf16.xpose.msra.mxu1 %v5303_v17  ;;  %v5631_v17 = vor.u32 %v6601_v15, %v5630_v14  ;;  %v5574_v14 = vld [vmem:[%s10302_s3 + $0x230] sm:$0xf] }
  0x73   : > { %4000 = vmatpush.bf16.xpose.msrb.mxu0 %v5483_v13  ;;  %v5455_v30 = vor.u32 %v6551_v22, %v5452_v25  ;;  %v5459_v13 = vor.u32 %v6555_v12, %v5458_v11  ;;  %v5366_v22 = vld [vmem:[%s10302_s3 + $0x80] sm:$0xf]  ;;  %v6541_v12 = vld [vmem:[%s10302_s3 + $0xd8] sm:$0xf0]  ;;  %v6587_v15 = vld [vmem:[%s10302_s3 + $0x248] sm:$0xf0] }
  0x74   : > { %v5402_v11 = vld [vmem:[%s10302_s3 + $0xc0] sm:$0xf] }
  0x75   : > { %v3750_v21 = vsel %vm3721_vm2, %v5459_v13, 0  ;;  %v5403_v13 = vor.u32 %v6541_v12, %v5402_v11 }
  0x77   : > { %5271 = vmatmul.msk.f32.gmra.mxu0 %vm1903_vm1, %v7116_v29  ;;  %5285 = vmatmul.msk.f32.gmra.mxu2 %vm1903_vm1, %v7049_v19  ;;  %v5388_v19 = vld [vmem:[%s10302_s3 + $0xcc] sm:$0xf0] }
  0x78   : > { %5279 = vmatmul.msk.f32.gmra.mxu1 %vm1903_vm1, %v7100_v27  ;;  %v5391_v35 = vor.u32 %v6536_v33, %v5388_v19  ;;  %v6569_v33 = vld [vmem:[%s10302_s3 + $0x1b8] sm:$0xf0]  ;;  %v5686_v19 = vld [vmem:[%s10302_s3 + $0x310] sm:$0xf] }
  0x79   : > { %3972 = vmatpush.bf16.xpose.msrb.mxu3 %v5451_v24  ;;  %v5515_v34 = vor.u32 %v6569_v33, %v5514_v32  ;;  %v6533_v24 = vld [vmem:[%s10302_s3 + $0x98] sm:$0xf0] }
  0x7a   : > { %3945 = vmatpush.bf16.xpose.msrb.mxu2 %v5391_v35  ;;  %v6615_v35 = vld [vmem:[%s10302_s3 + $0x328] sm:$0xf0] }
  0x7b   : > { %4001 = vmatpush.bf16.xpose.msrb.mxu0 %v5455_v30  ;;  %v3756_v39 = vsel %vm3721_vm2, %v5515_v34, 0  ;;  %v6530_v30 = vld [vmem:[%s10302_s3 + $0x84] sm:$0xf] }
  0x7c   : > { %4028 = vmatpush.bf16.xpose.msrb.mxu1 %v3756_v39 }
  0x7f   : > { %5272 = vmatmul.msk.f32.gmra.mxu0 %vm1903_vm1, %v7016_v8  ;;  %5286 = vmatmul.msk.f32.gmra.mxu2 %vm1903_vm1, %v7072_v23  ;;  %v5360_v23 = vld [vmem:[%s10302_s3 + $0x94] sm:$0xf0] }
  0x80   : > { %5280 = vmatmul.msk.f32.gmra.mxu1 %vm1903_vm1, %v7116_v29  ;;  %v5363_v46 = vor.u32 %v6529_v44, %v5360_v23  ;;  %v6544_v44 = vld [vmem:[%s10302_s3 + $0xf4] sm:$0xf] }
  0x81   : > { %v5427_v47 = vor.u32 %v6544_v44, %v5424_v45  ;;  %3973 = vmatpush.bf16.xpose.msrb.mxu3 %v5423_v43  ;;  %v5430_v44 = vld [vmem:[%s10302_s3 + $0xf8] sm:$0xf]  ;;  %v6548_v45 = vld [vmem:[%s10302_s3 + $0x110] sm:$0xf0] }
  0x82   : > { %3946 = vmatpush.bf16.xpose.msrb.mxu2 %v5363_v46 }
  0x83   : > { %4002 = vmatpush.bf16.xpose.msrb.mxu0 %v5427_v47 }
  0x87   : > { %5273 = vmatmul.msk.f32.gmra.mxu0 %vm1903_vm1, %v7021_v9  ;;  %5287 = vmatmul.msk.f32.gmra.mxu2 %vm1903_vm1, %v7087_v26  ;;  %v5332_v26 = vld [vmem:[%s10302_s3 + $0x5c] sm:$0xf0]  ;;  %v7411_v7 = vpop.permute.xlu0 %240 }
  0x88   : > { %5281 = vmatmul.msk.f32.gmra.mxu1 %vm1903_vm1, %v7016_v8  ;;  %v5335_v57 = vor.u32 %v6522_v55, %v5332_v26  ;;  %v6562_v55 = vld [vmem:[%s10302_s3 + $0x180] sm:$0xf0]  ;;  %v7478_v60 = vpop.permute.xlu1 %250 }
  0x89   : > { %v5487_v26 = vor.u32 %v6562_v55, %v5486_v54  ;;  %3974 = vmatpush.bf16.xpose.msrb.mxu3 %v5395_v3 }
  0x8a   : > { %3947 = vmatpush.bf16.xpose.msrb.mxu2 %v5335_v57  ;;  %v5658_v57 = vld [vmem:[%s10302_s3 + $0x2d8] sm:$0xf] }
  0x8b   : > { %v3753_v63 = vsel %vm3721_vm2, %v5487_v26, 0 }
  0x8c   : > { %4029 = vmatpush.bf16.xpose.msrb.mxu1 %v3753_v63 }
  0x8f   : > { %5288 = vmatmul.msk.f32.gmra.mxu2 %vm1903_vm1, %v7100_v27  ;;  %v5304_v27 = vld [vmem:[%s10302_s3 + $0x24] sm:$0xf0] }
  0x90   : > { %5282 = vmatmul.msk.f32.gmra.mxu1 %vm1903_vm1, %v7021_v9  ;;  %v5307_v4 = vor.u32 %v6515_v2, %v5304_v27  ;;  %v6537_v27 = vld [vmem:[%s10302_s3 + $0xbc] sm:$0xf] }
  0x92   : > { %3948 = vmatpush.bf16.xpose.msrb.mxu2 %v5307_v4  ;;  %v5396_v4 = vld [vmem:[%s10302_s3 + $0xd4] sm:$0xf0] }
  0x93   : > { %v5399_v6 = vor.u32 %v6537_v27, %v5396_v4 }
  0x94   : > { %v7458_v23 = vpop.permute.xlu0 %245  ;;  %4030 = vmatpush.bf16.xpose.msrb.mxu1 %v3750_v21  ;;  %v7527_v32 = vpop.permute.xlu1 %255 }
  0x95   : > { %4003 = vmatpush.bf16.xpose.msrb.mxu0 %v5399_v6 }
  0x97   : > { %5289 = vmatmul.msk.f32.gmra.mxu2 %vm1903_vm1, %v7116_v29  ;;  %v5715_v29 = vor.u32 %v6622_v18, %v5714_v16 }
  0x9a   : > { %4057 = vmatpush.bf16.xpose.msra.mxu2 %v5715_v29 }
  0x9c   : > { %v1967_v28 = vpop.f32.mrf.mxu0 }
  0x9d   : > { %v2008_v31 = vpop.f32.mrf.mxu1  ;;  %v1968_v36 = vadd.f32 %v1967_v28, %v7411_v7  ;;  %v5367_v28 = vor.u32 %v6533_v24, %v5366_v22  ;;  %v3744_v22 = vsel %vm3721_vm2, %v5403_v13, 0  ;;  %v5310_v24 = vld [vmem:[%s10302_s3 + $0x10] sm:$0xf] }
  0x9e   : > { %v2009_v37 = vadd.f32 %v2008_v31, %v7411_v7  ;;  %v5368_v31 = vld [vmem:[%s10302_s3 + $0x9c] sm:$0xf0] }
  0x9f   : > { %5290 = vmatmul.msk.f32.gmra.mxu2 %vm1903_vm1, %v7016_v8  ;;  %v5687_v8 = vor.u32 %v6615_v35, %v5686_v19  ;;  %v2237_v48 = vmax.f32 %v1968_v36, 0.0  ;;  %v5371_v19 = vor.u32 %v6530_v30, %v5368_v31  ;;  %3975 = vmatpush.bf16.xpose.msrb.mxu3 %v5367_v28  ;;  %v6516_v31 = vld [vmem:[%s10302_s3 + $0x14] sm:$0xf] }
  0xa0   : > { %v2238_v51 = vmax.f32 %v2009_v37, 0.0 }
  0xa1   : > { %4004 = vmatpush.bf16.xpose.msrb.mxu0 %v5371_v19 }
  0xa2   : > { %v7441_v38 = vpop.f32.mrf.mxu2  ;;  %4058 = vmatpush.bf16.xpose.msra.mxu2 %v5687_v8 }
  0xa3   : > { %v7450_v42 = vpop.f32.mrf.mxu3 }
  0xa4   : > { %v1970_v46 = vpop.f32.mrf.mxu0 }
  0xa5   : > { %v1971_v49 = vadd.f32 %v1970_v46, %v7458_v23  ;;  %v2011_v50 = vpop.f32.mrf.mxu1 }
  0xa6   : > { %v2012_v52 = vadd.f32 %v2011_v50, %v7458_v23  ;;  %v5602_v50 = vld [vmem:[%s10302_s3 + $0x268] sm:$0xf] }
  0xa7   : > { %v2244_v53 = vmax.f32 %v1971_v49, 0.0  ;;  %5291 = vmatmul.msk.f32.gmra.mxu2 %vm1903_vm1, %v7021_v9  ;;  %v5659_v9 = vor.u32 %v6608_v58, %v5658_v57  ;;  %v5431_v49 = vor.u32 %v6548_v45, %v5430_v44  ;;  %v5338_v57 = vld [vmem:[%s10302_s3 + $0x48] sm:$0xf]  ;;  %v6526_v58 = vld [vmem:[%s10302_s3 + $0x60] sm:$0xf0] }
  0xa8   : > { %v2245_v56 = vmax.f32 %v2012_v52, 0.0  ;;  %v5339_v0 = vor.u32 %v6526_v58, %v5338_v57  ;;  %v5374_v45 = vld [vmem:[%s10302_s3 + $0x88] sm:$0xf] }
  0xa9   : > { %v7476_v59 = vpack.c.bf16 %v2244_v53, %v2237_v48  ;;  %v7540_v48 = vpop.permute.xlu2 %260  ;;  %v3747_v26 = vsel %vm3721_vm2, %v5431_v49, 0 }
  0xaa   : > { %v7480_v61 = vpack.c.bf16 %v2245_v56, %v2238_v51  ;;  %v7482_v62 = vpop.f32.mrf.mxu2  ;;  %4059 = vmatpush.bf16.xpose.msra.mxu2 %v5659_v9  ;;  %v6594_v51 = vld [vmem:[%s10302_s3 + $0x280] sm:$0xf0]  ;;  %4031 = vmatpush.bf16.xpose.msrb.mxu1 %v3747_v26 }
  0xab   : > { %v2090_v2 = vpop.f32.mrf.mxu3  ;;  %3862 = vmatmul.bf16.vlgmr.msra.gmra.mxu3 %v7476_v59  ;;  %v5603_v54 = vor.u32 %v6594_v51, %v5602_v50 }
  0xac   : > { %3891 = vmatmul.bf16.vlgmr.msra.gmra.mxu0 %v7480_v61  ;;  %v1973_v5 = vpop.f32.mrf.mxu0  ;;  %v2091_v18 = vadd.f32 %v2090_v2, %v7411_v7  ;;  %v5340_v2 = vld [vmem:[%s10302_s3 + $0x64] sm:$0xf0]  ;;  %3976 = vmatpush.bf16.xpose.msrb.mxu3 %v5339_v0  ;;  %v6619_v0 = vld [vmem:[%s10302_s3 + $0x34c] sm:$0xf] }
  0xad   : > { %v2014_v10 = vpop.f32.mrf.mxu1  ;;  %v1974_v16 = vadd.f32 %v1973_v5, %v7478_v60  ;;  %v5343_v27 = vor.u32 %v6523_v1, %v5340_v2  ;;  %v5716_v1 = vld [vmem:[%s10302_s3 + $0x364] sm:$0xf0] }
  0xae   : > { %v2015_v29 = vadd.f32 %v2014_v10, %v7478_v60  ;;  %v2240_v37 = vmax.f32 %v2091_v18, 0.0 }
  0xaf   : > { %v2251_v35 = vmax.f32 %v1974_v16, 0.0  ;;  %4005 = vmatpush.bf16.xpose.msrb.mxu0 %v5343_v27  ;;  %v5719_v27 = vor.u32 %v6619_v0, %v5716_v1  ;;  %v6624_v0 = vld [vmem:[%s10302_s3 + $0x370] sm:$0xf0] }
  0xb0   : > { %v2252_v39 = vmax.f32 %v2015_v29, 0.0 }
  0xb1   : > { %v7588_v21 = vpop.permute.xlu2 %265 }
  0xb2   : > { %v2049_v20 = vpop.f32.mrf.mxu2  ;;  %4060 = vmatpush.bf16.xpose.msra.mxu2 %v5631_v17  ;;  %v5575_v17 = vor.u32 %v6587_v15, %v5574_v14  ;;  %4032 = vmatpush.bf16.xpose.msrb.mxu1 %v3744_v22  ;;  %v7644_v15 = vpop.permute.xlu1 %275  ;;  %v5518_v22 = vld [vmem:[%s10302_s3 + $0x1c0] sm:$0xf] }
  0xb3   : > { %v2093_v25 = vpop.f32.mrf.mxu3  ;;  %v2050_v52 = vadd.f32 %v2049_v20, %v7411_v7 }
  0xb4   : > { %v2094_v33 = vadd.f32 %v2093_v25, %v7458_v23  ;;  %v1976_v34 = vpop.f32.mrf.mxu0  ;;  %v6519_v25 = vld [vmem:[%s10302_s3 + $0x28] sm:$0xf0] }
  0xb5   : > { %v1977_v36 = vadd.f32 %v1976_v34, %v7527_v32  ;;  %v2017_v8 = vpop.f32.mrf.mxu1  ;;  %v2239_v4 = vmax.f32 %v2050_v52, 0.0  ;;  %v5311_v30 = vor.u32 %v6519_v25, %v5310_v24  ;;  %v5546_v52 = vld [vmem:[%s10302_s3 + $0x1f8] sm:$0xf]  ;;  %v6573_v24 = vld [vmem:[%s10302_s3 + $0x1d8] sm:$0xf0]  ;;  %v1989_v25 = vadd.f32 %v7482_v62, %v7644_v15 }
  0xb6   : > { %v2247_v40 = vmax.f32 %v2094_v33, 0.0  ;;  %v2018_v41 = vadd.f32 %v2017_v8, %v7527_v32  ;;  %v5312_v33 = vld [vmem:[%s10302_s3 + $0x2c] sm:$0xf0] }
  0xb7   : > { %v2258_v43 = vmax.f32 %v1977_v36, 0.0  ;;  %3977 = vmatpush.bf16.xpose.msrb.mxu3 %v5311_v30 }
  0xb8   : > { %v7538_v46 = vpack.c.bf16 %v2247_v40, %v2240_v37  ;;  %v2259_v47 = vmax.f32 %v2018_v41, 0.0 }
  0xb9   : > { %v7549_v53 = vpack.c.bf16 %v2258_v43, %v2251_v35  ;;  %v5315_v35 = vor.u32 %v6516_v31, %v5312_v33 }
  0xba   : > { %v7551_v55 = vpack.c.bf16 %v2259_v47, %v2252_v39  ;;  %3949 = vmatmul.bf16.vlgmr.msrb.gmra.mxu2 %v7538_v46  ;;  %v2052_v56 = vpop.f32.mrf.mxu2  ;;  %v6534_v47 = vld [vmem:[%s10302_s3 + $0xa0] sm:$0xf0] }
  0xbb   : > { %v2053_v9 = vadd.f32 %v2052_v56, %v7458_v23  ;;  %v2096_v63 = vpop.f32.mrf.mxu3  ;;  %3867 = vmatmul.bf16.gmra.mxu3 %v7549_v53  ;;  %4061 = vmatpush.bf16.xpose.msra.mxu2 %v5603_v54  ;;  %v5375_v51 = vor.u32 %v6534_v47, %v5374_v45  ;;  %v6580_v54 = vld [vmem:[%s10302_s3 + $0x210] sm:$0xf0] }
  0xbc   : > { %3896 = vmatmul.bf16.gmra.mxu0 %v7551_v55  ;;  %v1979_v3 = vpop.f32.mrf.mxu0  ;;  %v2097_v18 = vadd.f32 %v2096_v63, %v7478_v60  ;;  %v5547_v57 = vor.u32 %v6580_v54, %v5546_v52  ;;  %v5318_v54 = vld [vmem:[%s10302_s3 + $0x18] sm:$0xf] }
  0xbd   : > { %v2246_v5 = vmax.f32 %v2053_v9, 0.0  ;;  %v2020_v6 = vpop.f32.mrf.mxu1  ;;  %v1980_v16 = vadd.f32 %v1979_v3, %v7540_v48  ;;  %4006 = vmatpush.bf16.xpose.msrb.mxu0 %v5315_v35  ;;  %v3741_v63 = vsel %vm3721_vm2, %v5375_v51, 0  ;;  %v5688_v35 = vld [vmem:[%s10302_s3 + $0x32c] sm:$0xf0] }
  0xbe   : > { %v2021_v29 = vadd.f32 %v2020_v6, %v7540_v48  ;;  %v2254_v39 = vmax.f32 %v2097_v18, 0.0  ;;  %4033 = vmatpush.bf16.xpose.msrb.mxu1 %v3741_v63  ;;  %v6527_v18 = vld [vmem:[%s10302_s3 + $0x68] sm:$0xf0]  ;;  %v5730_v63 = vld [vmem:[%s10302_s3 + $0x358] sm:$0xf] }
  0xbf   : > { %v7570_v10 = vpack.c.bf16 %v2246_v5, %v2239_v4  ;;  %v2265_v36 = vmax.f32 %v1980_v16, 0.0  ;;  %v5722_v4 = vld [vmem:[%s10302_s3 + $0x350] sm:$0xf]  ;;  %v6623_v5 = vld [vmem:[%s10302_s3 + $0x368] sm:$0xf0]  ;;  %4086 = vmatpush.bf16.xpose.msra.mxu3 %v5719_v27 }
  0xc0   : > { %v2266_v40 = vmax.f32 %v2021_v29, 0.0  ;;  %v5723_v11 = vor.u32 %v6623_v5, %v5722_v4  ;;  %v7654_v29 = vpop.permute.xlu0 %270 }
  0xc1   : > { %3920 = vmatmul.bf16.vlgmr.msra.gmra.mxu1 %v7570_v10  ;;  %v1986_v62 = vadd.f32 %v7441_v38, %v7654_v29  ;;  %v2286_v38 = vmax.f32 %v1989_v25, 0.0 }
  0xc2   : > { %v2055_v20 = vpop.f32.mrf.mxu2 }
  0xc3   : > { %v2099_v28 = vpop.f32.mrf.mxu3  ;;  %4062 = vmatpush.bf16.xpose.msra.mxu2 %v5575_v17  ;;  %v2056_v56 = vadd.f32 %v2055_v20, %v7478_v60  ;;  %v5346_v17 = vld [vmem:[%s10302_s3 + $0x50] sm:$0xf]  ;;  %v2279_v52 = vmax.f32 %v1986_v62, 0.0  ;;  %v5702_v62 = vld [vmem:[%s10302_s3 + $0x320] sm:$0xf] }
  0xc4   : > { %v2100_v34 = vadd.f32 %v2099_v28, %v7527_v32  ;;  %v1982_v19 = vpop.f32.mrf.mxu0  ;;  %v5347_v20 = vor.u32 %v6527_v18, %v5346_v17  ;;  %v5519_v28 = vor.u32 %v6573_v24, %v5518_v22  ;;  %v5666_v18 = vld [vmem:[%s10302_s3 + $0x2e0] sm:$0xf] }
  0xc5   : > { %v1983_v8 = vadd.f32 %v1982_v19, %v7588_v21  ;;  %v2023_v37 = vpop.f32.mrf.mxu1  ;;  %v2253_v12 = vmax.f32 %v2056_v56, 0.0  ;;  %4115 = vmatpush.bf16.xpose.msra.mxu0 %v5723_v11  ;;  %v6612_v19 = vld [vmem:[%s10302_s3 + $0x314] sm:$0xf]  ;;  %v7699_v1 = vpack.c.bf16 %v2286_v38, %v2279_v52  ;;  %v6605_v11 = vld [vmem:[%s10302_s3 + $0x2dc] sm:$0xf] }
  0xc6   : > { %v2261_v41 = vmax.f32 %v2100_v34, 0.0  ;;  %v2024_v43 = vadd.f32 %v2023_v37, %v7588_v21  ;;  %v3738_v34 = vsel %vm3721_vm2, %v5347_v20, 0  ;;  %v5694_v37 = vld [vmem:[%s10302_s3 + $0x318] sm:$0xf]  ;;  %v6609_v20 = vld [vmem:[%s10302_s3 + $0x2f8] sm:$0xf0] }
  0xc7   : > { %v2272_v44 = vmax.f32 %v1983_v8, 0.0  ;;  %4034 = vmatpush.bf16.xpose.msrb.mxu1 %v3738_v34  ;;  %v5691_v8 = vor.u32 %v6612_v19, %v5688_v35  ;;  %v5667_v24 = vor.u32 %v6609_v20, %v5666_v18  ;;  %v5724_v34 = vld [vmem:[%s10302_s3 + $0x36c] sm:$0xf0]  ;;  %v6610_v18 = vld [vmem:[%s10302_s3 + $0x300] sm:$0xf0] }
  0xc8   : > { %v7612_v49 = vpack.c.bf16 %v2261_v41, %v2254_v39  ;;  %v2273_v50 = vmax.f32 %v2024_v43, 0.0  ;;  %v6616_v39 = vld [vmem:[%s10302_s3 + $0x330] sm:$0xf0] }
  0xc9   : > { %v7621_v26 = vpack.c.bf16 %v2272_v44, %v2265_v36  ;;  %v5695_v44 = vor.u32 %v6616_v39, %v5694_v37  ;;  %4087 = vmatpush.bf16.xpose.msra.mxu3 %v5691_v8 }
  0xca   : > { %v7623_v58 = vpack.c.bf16 %v2273_v50, %v2266_v40  ;;  %3954 = vmatmul.bf16.gmra.mxu2 %v7612_v49  ;;  %v2058_v9 = vpop.f32.mrf.mxu2  ;;  %v2030_v40 = vadd.f32 %v7450_v42, %v7644_v15  ;;  %v6520_v42 = vld [vmem:[%s10302_s3 + $0x30] sm:$0xf0] }
  0xcb   : > { %v2059_v2 = vadd.f32 %v2058_v9, %v7527_v32  ;;  %v2102_v3 = vpop.f32.mrf.mxu3  ;;  %3872 = vmatmul.bf16.gmra.mxu3 %v7621_v26  ;;  %4063 = vmatpush.bf16.xpose.msra.mxu2 %v5547_v57  ;;  %v5319_v9 = vor.u32 %v6520_v42, %v5318_v54 }
  0xcc   : > { %3901 = vmatmul.bf16.gmra.mxu0 %v7623_v58  ;;  %v7642_v6 = vpop.f32.mrf.mxu0  ;;  %v2103_v30 = vadd.f32 %v2102_v3, %v7540_v48  ;;  %v2287_v56 = vmax.f32 %v2030_v40, 0.0  ;;  %v5731_v3 = vor.u32 %v6624_v0, %v5730_v63 }
  0xcd   : > { %v2260_v13 = vmax.f32 %v2059_v2, 0.0  ;;  %v2026_v14 = vpop.f32.mrf.mxu1  ;;  %4116 = vmatpush.bf16.xpose.msra.mxu0 %v5695_v44  ;;  %v3735_v5 = vsel %vm3721_vm2, %v5319_v9, 0  ;;  %v5638_v44 = vld [vmem:[%s10302_s3 + $0x2a8] sm:$0xf]  ;;  %v2132_v38 = vadd.f32 %v7642_v6, %v7411_v7 }
  0xce   : > { %v2027_v31 = vadd.f32 %v2026_v14, %v7654_v29  ;;  %v2268_v47 = vmax.f32 %v2103_v30, 0.0 }
  0xcf   : > { %v7646_v16 = vpack.c.bf16 %v2260_v13, %v2253_v12  ;;  %v5660_v12 = vld [vmem:[%s10302_s3 + $0x2f4] sm:$0xf0]  ;;  %4035 = vmatpush.bf16.xpose.msrb.mxu1 %v3735_v5 }
  0xd0   : > { %v2280_v50 = vmax.f32 %v2027_v31, 0.0  ;;  %v5663_v17 = vor.u32 %v6605_v11, %v5660_v12  ;;  %v5696_v11 = vld [vmem:[%s10302_s3 + $0x334] sm:$0xf0] }
  0xd1   : > { %3925 = vmatmul.bf16.gmra.mxu1 %v7646_v16 }
  0xd2   : > { %v2061_v33 = vpop.f32.mrf.mxu2  ;;  %v7702_v27 = vpack.c.bf16 %v2287_v56, %v2280_v50  ;;  %4088 = vmatpush.bf16.xpose.msra.mxu3 %v5663_v17  ;;  %v5674_v17 = vld [vmem:[%s10302_s3 + $0x2e8] sm:$0xf] }
  0xd3   : > { %v2105_v36 = vpop.f32.mrf.mxu3  ;;  %4064 = vmatpush.bf16.xpose.msra.mxu2 %v5519_v28  ;;  %v2062_v2 = vadd.f32 %v2061_v33, %v7540_v48  ;;  %v6620_v33 = vld [vmem:[%s10302_s3 + $0x354] sm:$0xf] }
  0xd4   : > { %v2106_v41 = vadd.f32 %v2105_v36, %v7588_v21  ;;  %v2134_v43 = vpop.f32.mrf.mxu0  ;;  %v5727_v35 = vor.u32 %v6620_v33, %v5724_v34  ;;  %v6617_v36 = vld [vmem:[%s10302_s3 + $0x338] sm:$0xf0]  ;;  %v5610_v33 = vld [vmem:[%s10302_s3 + $0x270] sm:$0xf] }
  0xd5   : > { %v2172_v45 = vpop.f32.mrf.mxu1  ;;  %v2267_v25 = vmax.f32 %v2062_v2, 0.0  ;;  %4117 = vmatpush.bf16.xpose.msra.mxu0 %v5667_v24  ;;  %v2135_v19 = vadd.f32 %v2134_v43, %v7458_v23  ;;  %v5703_v40 = vor.u32 %v6617_v36, %v5702_v62  ;;  %v5632_v43 = vld [vmem:[%s10302_s3 + $0x2bc] sm:$0xf0] }
  0xd6   : > { %v2275_v51 = vmax.f32 %v2106_v41, 0.0  ;;  %v6598_v41 = vld [vmem:[%s10302_s3 + $0x2a4] sm:$0xf]  ;;  %v2173_v52 = vadd.f32 %v2172_v45, %v7411_v7  ;;  %v6613_v45 = vld [vmem:[%s10302_s3 + $0x31c] sm:$0xf] }
  0xd7   : > { %4144 = vmatpush.bf16.xpose.msra.mxu1 %v5727_v35  ;;  %v5635_v50 = vor.u32 %v6598_v41, %v5632_v43  ;;  %v2248_v56 = vmax.f32 %v2135_v19, 0.0  ;;  %v6595_v35 = vld [vmem:[%s10302_s3 + $0x288] sm:$0xf0]  ;;  %v6606_v41 = vld [vmem:[%s10302_s3 + $0x2e4] sm:$0xf] }
  0xd8   : > { %v7691_v57 = vpack.c.bf16 %v2275_v51, %v2268_v47  ;;  %v6602_v51 = vld [vmem:[%s10302_s3 + $0x2c0] sm:$0xf0]  ;;  %v5611_v62 = vor.u32 %v6595_v35, %v5610_v33  ;;  %v5668_v43 = vld [vmem:[%s10302_s3 + $0x2fc] sm:$0xf0] }
  0xd9   : > { %v5639_v42 = vor.u32 %v6602_v51, %v5638_v44 }
  0xda   : > { %3959 = vmatmul.bf16.gmra.mxu2 %v7691_v57  ;;  %v2064_v4 = vpop.f32.mrf.mxu2  ;;  %4089 = vmatpush.bf16.xpose.msra.mxu3 %v5635_v50  ;;  %v6603_v50 = vld [vmem:[%s10302_s3 + $0x2c8] sm:$0xf0] }
  0xdb   : > { %v2065_v13 = vadd.f32 %v2064_v4, %v7588_v21  ;;  %v2108_v14 = vpop.f32.mrf.mxu3  ;;  %3877 = vmatmul.bf16.gmra.mxu3 %v7699_v1  ;;  %4173 = vmatpush.bf16.xpose.msrb.mxu2 %v5731_v3  ;;  %v2241_v3 = vmax.f32 %v2132_v38, 0.0  ;;  %v2242_v4 = vmax.f32 %v2173_v52, 0.0  ;;  %v5671_v38 = vor.u32 %v6606_v41, %v5668_v43  ;;  %v6581_v41 = vld [vmem:[%s10302_s3 + $0x218] sm:$0xf0] }
  0xdc   : > { %3906 = vmatmul.bf16.gmra.mxu0 %v7702_v27  ;;  %v7721_v22 = vpop.f32.mrf.mxu0  ;;  %v2109_v8 = vadd.f32 %v2108_v14, %v7654_v29  ;;  %v5699_v14 = vor.u32 %v6613_v45, %v5696_v11 }
  0xdd   : > { %v2274_v28 = vmax.f32 %v2065_v13, 0.0  ;;  %v2175_v30 = vpop.f32.mrf.mxu1  ;;  %4118 = vmatpush.bf16.xpose.msra.mxu0 %v5639_v42  ;;  %v7765_v12 = vpack.c.bf16 %v2248_v56, %v2241_v3  ;;  %v6584_v42 = vld [vmem:[%s10302_s3 + $0x234] sm:$0xf]  ;;  %v5576_v56 = vld [vmem:[%s10302_s3 + $0x24c] sm:$0xf0] }
  0xde   : > { %v2176_v37 = vadd.f32 %v2175_v30, %v7458_v23  ;;  %v2282_v63 = vmax.f32 %v2109_v8, 0.0  ;;  %v5604_v30 = vld [vmem:[%s10302_s3 + $0x284] sm:$0xf0] }
  0xdf   : > { %v7723_v31 = vpack.c.bf16 %v2274_v28, %v2267_v25  ;;  %v5675_v25 = vor.u32 %v6610_v18, %v5674_v17  ;;  %v6591_v28 = vld [vmem:[%s10302_s3 + $0x26c] sm:$0xf]  ;;  %4145 = vmatpush.bf16.xpose.msra.mxu1 %v5699_v14  ;;  %v5640_v18 = vld [vmem:[%s10302_s3 + $0x2c4] sm:$0xf0] }
  0xe0   : > { %v2249_v0 = vmax.f32 %v2176_v37, 0.0  ;;  %v5607_v19 = vor.u32 %v6591_v28, %v5604_v30  ;;  %v5618_v28 = vld [vmem:[%s10302_s3 + $0x278] sm:$0xf]  ;;  %v6596_v30 = vld [vmem:[%s10302_s3 + $0x290] sm:$0xf0] }
  0xe1   : > { %3930 = vmatmul.bf16.gmra.mxu1 %v7723_v31  ;;  %v5619_v35 = vor.u32 %v6596_v30, %v5618_v28 }
  0xe2   : > { %v2067_v39 = vpop.f32.mrf.mxu2  ;;  %v7774_v20 = vpack.c.bf16 %v2249_v0, %v2242_v4  ;;  %4090 = vmatpush.bf16.xpose.msra.mxu3 %v5607_v19  ;;  %v2138_v0 = vadd.f32 %v7721_v22, %v7478_v60  ;;  %v6599_v22 = vld [vmem:[%s10302_s3 + $0x2ac] sm:$0xf] }
  0xe3   : > { %v2111_v47 = vpop.f32.mrf.mxu3  ;;  %4174 = vmatpush.bf16.xpose.msrb.mxu2 %v5703_v40  ;;  %v2068_v13 = vadd.f32 %v2067_v39, %v7654_v29 }
  0xe4   : > { %v2112_v54 = vadd.f32 %v2111_v47, %v7644_v15  ;;  %v2140_v6 = vpop.f32.mrf.mxu0  ;;  %v5646_v47 = vld [vmem:[%s10302_s3 + $0x2b0] sm:$0xf]  ;;  %v2255_v14 = vmax.f32 %v2138_v0, 0.0 }
  0xe5   : > { %v2178_v9 = vpop.f32.mrf.mxu1  ;;  %v2281_v36 = vmax.f32 %v2068_v13, 0.0  ;;  %4119 = vmatpush.bf16.xpose.msra.mxu0 %v5611_v62  ;;  %v2141_v44 = vadd.f32 %v2140_v6, %v7527_v32  ;;  %v6588_v6 = vld [vmem:[%s10302_s3 + $0x250] sm:$0xf0]  ;;  %v5548_v62 = vld [vmem:[%s10302_s3 + $0x214] sm:$0xf0] }
  0xe6   : > { %v2289_v2 = vmax.f32 %v2112_v54, 0.0  ;;  %v5647_v54 = vor.u32 %v6603_v50, %v5646_v47  ;;  %v2179_v3 = vadd.f32 %v2178_v9, %v7478_v60 }
  0xe7   : > { %4146 = vmatpush.bf16.xpose.msra.mxu1 %v5671_v38  ;;  %v2262_v45 = vmax.f32 %v2141_v44, 0.0 }
  0xe8   : > { %v7757_v5 = vpack.c.bf16 %v2289_v2, %v2282_v63  ;;  %v5582_v63 = vld [vmem:[%s10302_s3 + $0x238] sm:$0xf]  ;;  %v5579_v2 = vor.u32 %v6584_v42, %v5576_v56  ;;  %v2256_v17 = vmax.f32 %v2179_v3, 0.0  ;;  %v5590_v42 = vld [vmem:[%s10302_s3 + $0x240] sm:$0xf] }
  0xe9   : > { %v5583_v4 = vor.u32 %v6588_v6, %v5582_v63  ;;  %v6589_v56 = vld [vmem:[%s10302_s3 + $0x258] sm:$0xf0]  ;;  %v6570_v6 = vld [vmem:[%s10302_s3 + $0x1c4] sm:$0xf]  ;;  %v5520_v3 = vld [vmem:[%s10302_s3 + $0x1dc] sm:$0xf0] }
  0xea   : > { %3964 = vmatmul.bf16.gmra.mxu2 %v7757_v5  ;;  %v2070_v24 = vpop.f32.mrf.mxu2  ;;  %4091 = vmatpush.bf16.xpose.msra.mxu3 %v5579_v2  ;;  %v5591_v2 = vor.u32 %v6589_v56, %v5590_v42 }
  0xeb   : > { %v2071_v34 = vadd.f32 %v2070_v24, %v7644_v15  ;;  %3978 = vmatmul.bf16.vlgmr.msrb.gmra.mxu3 %v7765_v12  ;;  %4175 = vmatpush.bf16.xpose.msrb.mxu2 %v5675_v25  ;;  %v7832_v24 = vpack.c.bf16 %v2262_v45, %v2255_v14  ;;  %v5643_v25 = vor.u32 %v6599_v22, %v5640_v18  ;;  %v6574_v14 = vld [vmem:[%s10302_s3 + $0x1e0] sm:$0xf0] }
  0xec   : > { %4007 = vmatmul.bf16.vlgmr.msrb.gmra.mxu0 %v7774_v20  ;;  %v7794_v40 = vpop.f32.mrf.mxu0 }
  0xed   : > { %v2288_v8 = vmax.f32 %v2071_v34, 0.0  ;;  %v2181_v37 = vpop.f32.mrf.mxu1  ;;  %4120 = vmatpush.bf16.xpose.msra.mxu0 %v5583_v4  ;;  %v5526_v4 = vld [vmem:[%s10302_s3 + $0x1c8] sm:$0xf]  ;;  %v2144_v45 = vadd.f32 %v7794_v40, %v7540_v48  ;;  %v6585_v40 = vld [vmem:[%s10302_s3 + $0x23c] sm:$0xf] }
  0xee   : > { %v2182_v51 = vadd.f32 %v2181_v37, %v7527_v32  ;;  %v5527_v18 = vor.u32 %v6574_v14, %v5526_v4  ;;  %v5534_v4 = vld [vmem:[%s10302_s3 + $0x1d0] sm:$0xf] }
  0xef   : > { %v7792_v39 = vpack.c.bf16 %v2288_v8, %v2281_v36  ;;  %v5554_v36 = vld [vmem:[%s10302_s3 + $0x200] sm:$0xf]  ;;  %4147 = vmatpush.bf16.xpose.msra.mxu1 %v5643_v25  ;;  %v2269_v30 = vmax.f32 %v2144_v45, 0.0  ;;  %v6575_v45 = vld [vmem:[%s10302_s3 + $0x1e8] sm:$0xf0] }
  0xf0   : > { %v2263_v13 = vmax.f32 %v2182_v51, 0.0  ;;  %v5555_v43 = vor.u32 %v6581_v41, %v5554_v36  ;;  %v5612_v51 = vld [vmem:[%s10302_s3 + $0x28c] sm:$0xf0]  ;;  %v6582_v36 = vld [vmem:[%s10302_s3 + $0x220] sm:$0xf0] }
  0xf1   : > { %3935 = vmatmul.bf16.gmra.mxu1 %v7792_v39 }
  0xf2   : > { %v2213_v52 = vpop.f32.mrf.mxu2  ;;  %v7841_v33 = vpack.c.bf16 %v2263_v13, %v2256_v17  ;;  %v5523_v13 = vor.u32 %v6570_v6, %v5520_v3 }
  0xf3   : > { %4176 = vmatpush.bf16.xpose.msrb.mxu2 %v5647_v54  ;;  %v2214_v9 = vadd.f32 %v2213_v52, %v7411_v7  ;;  %v6577_v7 = vld [vmem:[%s10302_s3 + $0x1fc] sm:$0xf] }
  0xf4   : > { %v2146_v34 = vpop.f32.mrf.mxu0  ;;  %v5551_v37 = vor.u32 %v6577_v7, %v5548_v62  ;;  %v5562_v62 = vld [vmem:[%s10302_s3 + $0x208] sm:$0xf] }
  0xf5   : > { %v2184_v11 = vpop.f32.mrf.mxu1  ;;  %v2243_v44 = vmax.f32 %v2214_v9, 0.0  ;;  %4121 = vmatpush.bf16.xpose.msra.mxu0 %v5555_v43  ;;  %v2147_v52 = vadd.f32 %v2146_v34, %v7588_v21  ;;  %v5563_v43 = vor.u32 %v6582_v36, %v5562_v62 }
  0xf6   : > { %4092 = vmatpush.bf16.xpose.msra.mxu3 %v5551_v37  ;;  %v2185_v17 = vadd.f32 %v2184_v11, %v7540_v48 }
  0xf7   : > { %v2276_v9 = vmax.f32 %v2147_v52, 0.0 }
  0xf8   : > { %v2270_v34 = vmax.f32 %v2185_v17, 0.0 }
  0xfa   : > { %4065 = vmatmul.bf16.vlgmr.msra.gmra.mxu2 %v7476_v59  ;;  %v2216_v19 = vpop.f32.mrf.mxu2 }
  0xfb   : > { %v2217_v8 = vadd.f32 %v2216_v19, %v7458_v23  ;;  %3983 = vmatmul.bf16.gmra.mxu3 %v7832_v24  ;;  %4177 = vmatpush.bf16.xpose.msrb.mxu2 %v5619_v35  ;;  %v6592_v23 = vld [vmem:[%s10302_s3 + $0x274] sm:$0xf]  ;;  %v5584_v19 = vld [vmem:[%s10302_s3 + $0x254] sm:$0xf0]  ;;  %v7898_v35 = vpack.c.bf16 %v2276_v9, %v2269_v30  ;;  %v5704_v9 = vld [vmem:[%s10302_s3 + $0x33c] sm:$0xf0] }
  0xfc   : > { %4012 = vmatmul.bf16.gmra.mxu0 %v7841_v33  ;;  %v5615_v54 = vor.u32 %v6592_v23, %v5612_v51  ;;  %v2149_v22 = vpop.f32.mrf.mxu0  ;;  %v5587_v7 = vor.u32 %v6585_v40, %v5584_v19  ;;  %v6618_v30 = vld [vmem:[%s10302_s3 + $0x340] sm:$0xf0] }
  0xfd   : > { %v2250_v38 = vmax.f32 %v2217_v8, 0.0  ;;  %v2187_v47 = vpop.f32.mrf.mxu1  ;;  %4122 = vmatpush.bf16.xpose.msra.mxu0 %v5527_v18  ;;  %v5738_v8 = vld [vmem:[%s10302_s3 + $0x360] sm:$0xf]  ;;  %v5535_v18 = vor.u32 %v6575_v45, %v5534_v4 }
  0xfe   : > { %v2188_v63 = vadd.f32 %v2187_v47, %v7588_v21  ;;  %4148 = vmatpush.bf16.xpose.msra.mxu1 %v5615_v54  ;;  %4093 = vmatpush.bf16.xpose.msra.mxu3 %v5523_v13  ;;  %v6614_v13 = vld [vmem:[%s10302_s3 + $0x324] sm:$0xf] }
  0xff   : > { %v7859_v50 = vpack.c.bf16 %v2250_v38, %v2243_v44  ;;  %v5732_v44 = vld [vmem:[%s10302_s3 + $0x374] sm:$0xf0]  ;;  %v6625_v38 = vld [vmem:[%s10302_s3 + $0x378] sm:$0xf0]  ;;  %v5707_v19 = vor.u32 %v6614_v13, %v5704_v9  ;;  %v5938_v13 = vld [vmem:[%s10302_s3 + $0x508] sm:$0xf] }
 0x100   : > { %v2277_v28 = vmax.f32 %v2188_v63, 0.0  ;;  %v5739_v51 = vor.u32 %v6625_v38, %v5738_v8  ;;  %v5654_v9 = vld [vmem:[%s10302_s3 + $0x2b8] sm:$0xf] }
 0x101   : > { %6412 = vmatmul.msk.bf16.vlgmr.msrb.gmra.mxu1 %vm3721_vm2, %v7859_v50 }
 0x102   : > { %v2219_v0 = vpop.f32.mrf.mxu2  ;;  %v7910_v37 = vpack.c.bf16 %v2277_v28, %v2270_v34  ;;  %v3780_v42 = vsel %vm3721_vm2, %v5739_v51, 0  ;;  %v5710_v28 = vld [vmem:[%s10302_s3 + $0x328] sm:$0xf]  ;;  %v2150_v34 = vadd.f32 %v2149_v22, %v7654_v29  ;;  %v6611_v51 = vld [vmem:[%s10302_s3 + $0x308] sm:$0xf0] }
 0x103   : > { %4178 = vmatpush.bf16.xpose.msrb.mxu2 %v5591_v2  ;;  %v2220_v11 = vadd.f32 %v2219_v0, %v7478_v60  ;;  %v6621_v60 = vld [vmem:[%s10302_s3 + $0x35c] sm:$0xf]  ;;  %v5556_v2 = vld [vmem:[%s10302_s3 + $0x21c] sm:$0xf0]  ;;  %v5528_v22 = vld [vmem:[%s10302_s3 + $0x1e4] sm:$0xf0] }
 0x104   : > { %v5735_v23 = vor.u32 %v6621_v60, %v5732_v44  ;;  %v2152_v56 = vpop.f32.mrf.mxu0  ;;  %v2283_v8 = vmax.f32 %v2150_v34, 0.0 }
 0x105   : > { %v2190_v25 = vpop.f32.mrf.mxu1  ;;  %v2257_v52 = vmax.f32 %v2220_v11, 0.0  ;;  %4231 = vmatpush.bf16.xpose.msrb.mxu0 %v3780_v42  ;;  %v2153_v6 = vadd.f32 %v2152_v56, %v7644_v15  ;;  %v5711_v11 = vor.u32 %v6618_v30, %v5710_v28  ;;  %v5676_v56 = vld [vmem:[%s10302_s3 + $0x304] sm:$0xf0]  ;;  %v6604_v28 = vld [vmem:[%s10302_s3 + $0x2d0] sm:$0xf0] }
 0x106   : > { %4149 = vmatpush.bf16.xpose.msra.mxu1 %v5587_v7  ;;  %4202 = vmatpush.bf16.xpose.msrb.mxu3 %v5735_v23  ;;  %v2191_v40 = vadd.f32 %v2190_v25, %v7654_v29  ;;  %v6675_v25 = vld [vmem:[%s10302_s3 + $0x50c] sm:$0xf]  ;;  %v5682_v23 = vld [vmem:[%s10302_s3 + $0x2f0] sm:$0xf] }
 0x107   : > { %v2290_v7 = vmax.f32 %v2153_v6, 0.0  ;;  %v3777_v62 = vsel %vm3721_vm2, %v5711_v11, 0  ;;  %v5655_v11 = vor.u32 %v6604_v28, %v5654_v9  ;;  %v5598_v9 = vld [vmem:[%s10302_s3 + $0x248] sm:$0xf]  ;;  %v6590_v28 = vld [vmem:[%s10302_s3 + $0x260] sm:$0xf0] }
 0x109   : > { %v7968_v60 = vpack.c.bf16 %v2290_v7, %v2283_v8  ;;  %v6671_v8 = vld [vmem:[%s10302_s3 + $0x4e8] sm:$0xf0] }
 0x10a   : > { %4070 = vmatmul.bf16.gmra.mxu2 %v7549_v53  ;;  %v2222_v41 = vpop.f32.mrf.mxu2 }
 0x10b   : > { %v2223_v47 = vadd.f32 %v2222_v41, %v7527_v32  ;;  %3988 = vmatmul.bf16.gmra.mxu3 %v7898_v35  ;;  %4179 = vmatpush.bf16.xpose.msrb.mxu2 %v5563_v43  ;;  %v6578_v32 = vld [vmem:[%s10302_s3 + $0x204] sm:$0xf]  ;;  %v2284_v41 = vmax.f32 %v2191_v40, 0.0  ;;  %v6571_v43 = vld [vmem:[%s10302_s3 + $0x1cc] sm:$0xf]  ;;  %10316 = vst [vmem:[#allocation6_spill] sm:$0xff] %v7968_v60 }
 0x10c   : > { %4017 = vmatmul.bf16.gmra.mxu0 %v7910_v37  ;;  %v5559_v3 = vor.u32 %v6578_v32, %v5556_v2  ;;  %v5531_v38 = vor.u32 %v6571_v43, %v5528_v22  ;;  %v6600_v40 = vld [vmem:[%s10302_s3 + $0x2b4] sm:$0xf] }
 0x10d   : > { %v2264_v54 = vmax.f32 %v2223_v47, 0.0  ;;  %v2193_v0 = vpop.f32.mrf.mxu1  ;;  %4232 = vmatpush.bf16.xpose.msrb.mxu0 %v3777_v62  ;;  %v5940_v47 = vld [vmem:[%s10302_s3 + $0x524] sm:$0xf0]  ;;  %v3771_v62 = vsel %vm3721_vm2, %v5655_v11, 0 }
 0x10e   : > { %v2194_v14 = vadd.f32 %v2193_v0, %v7644_v15  ;;  %4150 = vmatpush.bf16.xpose.msra.mxu1 %v5559_v3  ;;  %4203 = vmatpush.bf16.xpose.msrb.mxu3 %v5707_v19  ;;  %v5943_v42 = vor.u32 %v6675_v25, %v5940_v47  ;;  %v5683_v0 = vor.u32 %v6611_v51, %v5682_v23  ;;  %v5648_v19 = vld [vmem:[%s10302_s3 + $0x2cc] sm:$0xf0]  ;;  %v6597_v47 = vld [vmem:[%s10302_s3 + $0x298] sm:$0xf0] }
 0x10f   : > { %v7926_v63 = vpack.c.bf16 %v2264_v54, %v2257_v52  ;;  %v5651_v7 = vor.u32 %v6600_v40, %v5648_v19  ;;  %v5592_v40 = vld [vmem:[%s10302_s3 + $0x25c] sm:$0xf0]  ;;  %v5599_v19 = vor.u32 %v6590_v28, %v5598_v9  ;;  %v6576_v9 = vld [vmem:[%s10302_s3 + $0x1f0] sm:$0xf0] }
 0x110   : > { %v2291_v36 = vmax.f32 %v2194_v14, 0.0  ;;  %v3774_v6 = vsel %vm3721_vm2, %v5683_v0, 0  ;;  %v6668_v14 = vld [vmem:[%s10302_s3 + $0x4d4] sm:$0xf] }
 0x111   : > { %10315 = vst [vmem:[#allocation5_spill] sm:$0xff] %v7926_v63  ;;  %6413 = vmatmul.msk.bf16.gmra.mxu1 %vm3721_vm2, %v7926_v63 }
 0x112   : > { %v2225_v17 = vpop.f32.mrf.mxu2  ;;  %v7980_v52 = vpack.c.bf16 %v2291_v36, %v2284_v41  ;;  %v5910_v36 = vld [vmem:[%s10302_s3 + $0x4d0] sm:$0xf]  ;;  %v6661_v41 = vld [vmem:[%s10302_s3 + $0x49c] sm:$0xf] }
 0x113   : > { %4180 = vmatpush.bf16.xpose.msrb.mxu2 %v5535_v18  ;;  %v2226_v44 = vadd.f32 %v2225_v17, %v7540_v48  ;;  %v6607_v48 = vld [vmem:[%s10302_s3 + $0x2ec] sm:$0xf]  ;;  %v5912_v18 = vld [vmem:[%s10302_s3 + $0x4ec] sm:$0xf0]  ;;  %v5911_v25 = vor.u32 %v6671_v8, %v5910_v36  ;;  %v5854_v8 = vld [vmem:[%s10302_s3 + $0x460] sm:$0xf] }
 0x114   : > { %10317 = vst [vmem:[#allocation7_spill] sm:$0xff] %v7980_v52  ;;  %v5679_v2 = vor.u32 %v6607_v48, %v5676_v56  ;;  %v5915_v34 = vor.u32 %v6668_v14, %v5912_v18  ;;  %v5856_v18 = vld [vmem:[%s10302_s3 + $0x47c] sm:$0xf0] }
 0x115   : > { %v2271_v3 = vmax.f32 %v2226_v44, 0.0  ;;  %4233 = vmatpush.bf16.xpose.msrb.mxu0 %v3774_v6  ;;  %v5884_v44 = vld [vmem:[%s10302_s3 + $0x4b4] sm:$0xf0] }
 0x116   : > { %4151 = vmatpush.bf16.xpose.msra.mxu1 %v5531_v38  ;;  %4204 = vmatpush.bf16.xpose.msrb.mxu3 %v5679_v2  ;;  %v5626_v38 = vld [vmem:[%s10302_s3 + $0x280] sm:$0xf]  ;;  %v5887_v51 = vor.u32 %v6661_v41, %v5884_v44  ;;  %v6657_v41 = vld [vmem:[%s10302_s3 + $0x478] sm:$0xf0]  ;;  %v5828_v44 = vld [vmem:[%s10302_s3 + $0x444] sm:$0xf0] }
 0x11a   : > { %4075 = vmatmul.bf16.gmra.mxu2 %v7621_v26  ;;  %v2228_v54 = vpop.f32.mrf.mxu2 }
 0x11b   : > { %v2229_v32 = vadd.f32 %v2228_v54, %v7588_v21  ;;  %3993 = vmatmul.bf16.gmra.mxu3 %v7968_v60  ;;  %4289 = vmatpush.bf16.xpose.msra.mxu2 %v5943_v42  ;;  %v6678_v21 = vld [vmem:[%s10302_s3 + $0x520] sm:$0xf0]  ;;  %v5620_v54 = vld [vmem:[%s10302_s3 + $0x294] sm:$0xf0]  ;;  %v5627_v42 = vor.u32 %v6597_v47, %v5626_v38  ;;  %v5570_v38 = vld [vmem:[%s10302_s3 + $0x210] sm:$0xf] }
 0x11c   : > { %4022 = vmatmul.bf16.gmra.mxu0 %v7980_v52  ;;  %v5939_v17 = vor.u32 %v6678_v21, %v5938_v13  ;;  %v6664_v13 = vld [vmem:[%s10302_s3 + $0x4b0] sm:$0xf0]  ;;  %v6654_v21 = vld [vmem:[%s10302_s3 + $0x464] sm:$0xf]  ;;  %v6583_v47 = vld [vmem:[%s10302_s3 + $0x228] sm:$0xf0] }
 0x11d   : > { %v2278_v4 = vmax.f32 %v2229_v32, 0.0  ;;  %4234 = vmatpush.bf16.xpose.msrb.mxu0 %v3771_v62  ;;  %v3768_v0 = vsel %vm3721_vm2, %v5627_v42, 0 }
 0x11e   : > { %4260 = vmatpush.bf16.xpose.msrb.mxu1 %v5939_v17  ;;  %4205 = vmatpush.bf16.xpose.msrb.mxu3 %v5651_v7  ;;  %v3765_v7 = vsel %vm3721_vm2, %v5599_v19, 0 }
 0x11f   : > { %v7993_v45 = vpack.c.bf16 %v2278_v4, %v2271_v3 }
 0x121   : > { %10318 = vst [vmem:[#allocation8_spill] sm:$0xff] %v7993_v45  ;;  %6414 = vmatmul.msk.bf16.gmra.mxu1 %vm3721_vm2, %v7993_v45 }
 0x122   : > { %v2231_v30 = vpop.f32.mrf.mxu2 }
 0x123   : > { %4290 = vmatpush.bf16.xpose.msra.mxu2 %v5915_v34  ;;  %v2232_v43 = vadd.f32 %v2231_v30, %v7654_v29  ;;  %v6593_v29 = vld [vmem:[%s10302_s3 + $0x27c] sm:$0xf]  ;;  %v5859_v30 = vor.u32 %v6654_v21, %v5856_v18  ;;  %v6586_v34 = vld [vmem:[%s10302_s3 + $0x244] sm:$0xf]  ;;  %v6640_v21 = vld [vmem:[%s10302_s3 + $0x3f4] sm:$0xf] }
 0x124   : > { %v5623_v56 = vor.u32 %v6593_v29, %v5620_v54  ;;  %v5595_v11 = vor.u32 %v6586_v34, %v5592_v40  ;;  %v5564_v29 = vld [vmem:[%s10302_s3 + $0x224] sm:$0xf0]  ;;  %v5571_v54 = vor.u32 %v6583_v47, %v5570_v38  ;;  %v5542_v18 = vld [vmem:[%s10302_s3 + $0x1d8] sm:$0xf]  ;;  %v6572_v34 = vld [vmem:[%s10302_s3 + $0x1d4] sm:$0xf] }
 0x125   : > { %v2285_v32 = vmax.f32 %v2232_v43, 0.0  ;;  %4235 = vmatpush.bf16.xpose.msrb.mxu0 %v3768_v0  ;;  %v6647_v43 = vld [vmem:[%s10302_s3 + $0x42c] sm:$0xf]  ;;  %v5536_v40 = vld [vmem:[%s10302_s3 + $0x1ec] sm:$0xf0]  ;;  %v5543_v19 = vor.u32 %v6576_v9, %v5542_v18 }
 0x126   : > { %4261 = vmatpush.bf16.xpose.msrb.mxu1 %v5911_v25  ;;  %4206 = vmatpush.bf16.xpose.msrb.mxu3 %v5623_v56  ;;  %v5855_v25 = vor.u32 %v6657_v41, %v5854_v8  ;;  %v6633_v38 = vld [vmem:[%s10302_s3 + $0x3bc] sm:$0xf]  ;;  %v6626_v18 = vld [vmem:[%s10302_s3 + $0x384] sm:$0xf] }
 0x129   : > { %v3892_v22 = vpop.f32.mrf.mxu0 }
 0x12a   : > { %4080 = vmatmul.bf16.gmra.mxu2 %v7699_v1  ;;  %v2234_v23 = vpop.f32.mrf.mxu2 }
 0x12b   : > { %v2235_v48 = vadd.f32 %v2234_v23, %v7644_v15  ;;  %4094 = vmatmul.bf16.vlgmr.msra.gmra.mxu3 %v7480_v61  ;;  %4291 = vmatpush.bf16.xpose.msra.mxu2 %v5887_v51  ;;  %v5882_v15 = vld [vmem:[%s10302_s3 + $0x498] sm:$0xf]  ;;  %v5831_v23 = vor.u32 %v6647_v43, %v5828_v44  ;;  %v6579_v51 = vld [vmem:[%s10302_s3 + $0x20c] sm:$0xf] }
 0x12c   : > { %4123 = vmatmul.bf16.vlgmr.msra.gmra.mxu0 %v7570_v10  ;;  %v5883_v17 = vor.u32 %v6664_v13, %v5882_v15  ;;  %v5567_v42 = vor.u32 %v6579_v51, %v5564_v29  ;;  %v5826_v15 = vld [vmem:[%s10302_s3 + $0x428] sm:$0xf]  ;;  %v6650_v13 = vld [vmem:[%s10302_s3 + $0x440] sm:$0xf0]  ;;  %v6643_v44 = vld [vmem:[%s10302_s3 + $0x408] sm:$0xf0] }
 0x12d   : > { %v2292_v2 = vmax.f32 %v2235_v48, 0.0  ;;  %4236 = vmatpush.bf16.xpose.msrb.mxu0 %v3765_v7  ;;  %v3762_v48 = vsel %vm3721_vm2, %v5571_v54, 0  ;;  %v3759_v7 = vsel %vm3721_vm2, %v5543_v19, 0  ;;  %v5772_v51 = vld [vmem:[%s10302_s3 + $0x3d4] sm:$0xf0] }
 0x12e   : > { %v3863_v6 = vpop.f32.mrf.mxu3  ;;  %4262 = vmatpush.bf16.xpose.msrb.mxu1 %v5883_v17  ;;  %4207 = vmatpush.bf16.xpose.msrb.mxu3 %v5595_v11  ;;  %v5827_v17 = vor.u32 %v6650_v13, %v5826_v15  ;;  %v5539_v11 = vor.u32 %v6572_v34, %v5536_v40  ;;  %v5946_v54 = vld [vmem:[%s10302_s3 + $0x510] sm:$0xf]  ;;  %v5918_v19 = vld [vmem:[%s10302_s3 + $0x4d8] sm:$0xf] }
 0x12f   : > { %v8052_v3 = vpack.c.bf16 %v2292_v2, %v2285_v32  ;;  %v3893_v4 = vadd.f32 %v3892_v22, %v3863_v6 }
 0x131   : > { %10319 = vst [vmem:[#allocation9_spill] sm:$0xff] %v8052_v3  ;;  %v3894_v14 = vpop.f32.mrf.mxu0  ;;  %6415 = vmatmul.msk.bf16.gmra.mxu1 %vm3721_vm2, %v8052_v3 }
 0x133   : > { %4292 = vmatpush.bf16.xpose.msra.mxu2 %v5859_v30 }
 0x135   : > { %4237 = vmatpush.bf16.xpose.msrb.mxu0 %v3762_v48  ;;  %v6676_v48 = vld [vmem:[%s10302_s3 + $0x514] sm:$0xf] }
 0x136   : > { %v3865_v62 = vpop.f32.mrf.mxu3  ;;  %4263 = vmatpush.bf16.xpose.msrb.mxu1 %v5855_v25  ;;  %4208 = vmatpush.bf16.xpose.msrb.mxu3 %v5567_v42  ;;  %v5798_v25 = vld [vmem:[%s10302_s3 + $0x3f0] sm:$0xf]  ;;  %v6679_v42 = vld [vmem:[%s10302_s3 + $0x528] sm:$0xf0] }
 0x137   : > { %v3895_v36 = vadd.f32 %v3894_v14, %v3865_v62 }
 0x139   : > { %v3897_v22 = vpop.f32.mrf.mxu0 }
 0x13a   : > { %4181 = vmatmul.bf16.vlgmr.msrb.gmra.mxu2 %v7765_v12 }
 0x13b   : > { %4099 = vmatmul.bf16.gmra.mxu3 %v7551_v55  ;;  %4293 = vmatpush.bf16.xpose.msra.mxu2 %v5831_v23  ;;  %v5799_v23 = vor.u32 %v6643_v44, %v5798_v25 }
 0x13c   : > { %4128 = vmatmul.bf16.gmra.mxu0 %v7646_v16 }
 0x13d   : > { %v3950_v56 = vpop.f32.mrf.mxu2  ;;  %4238 = vmatpush.bf16.xpose.msrb.mxu0 %v3759_v7  ;;  %v6669_v7 = vld [vmem:[%s10302_s3 + $0x4dc] sm:$0xf] }
 0x13e   : > { %v3868_v0 = vpop.f32.mrf.mxu3  ;;  %v3921_v32 = vpop.f32.mrf.mxu1  ;;  %4264 = vmatpush.bf16.xpose.msrb.mxu1 %v5827_v17  ;;  %4209 = vmatpush.bf16.xpose.msrb.mxu3 %v5539_v11  ;;  %v5770_v17 = vld [vmem:[%s10302_s3 + $0x3b8] sm:$0xf]  ;;  %v6672_v11 = vld [vmem:[%s10302_s3 + $0x4f0] sm:$0xf0] }
 0x13f   : > { %v3898_v2 = vadd.f32 %v3897_v22, %v3868_v0  ;;  %v3922_v6 = vadd.f32 %v3921_v32, %v3893_v4  ;;  %v5800_v4 = vld [vmem:[%s10302_s3 + $0x40c] sm:$0xf0] }
 0x140   : > { %v5803_v30 = vor.u32 %v6640_v21, %v5800_v4  ;;  %v5948_v0 = vld [vmem:[%s10302_s3 + $0x52c] sm:$0xf0]  ;;  %v6636_v4 = vld [vmem:[%s10302_s3 + $0x3d0] sm:$0xf0] }
 0x141   : > { %v3899_v14 = vpop.f32.mrf.mxu0  ;;  %4152 = vmatmul.bf16.vlgmr.msra.gmra.mxu1 %v7538_v46  ;;  %v8128_v28 = vadd.f32 %v3950_v56, %v3922_v6  ;;  %v5947_v56 = vor.u32 %v6679_v42, %v5946_v54  ;;  %v5951_v32 = vor.u32 %v6676_v48, %v5948_v0  ;;  %v5956_v48 = vld [vmem:[%s10302_s3 + $0x534] sm:$0xf0]  ;;  %v5890_v0 = vld [vmem:[%s10302_s3 + $0x4a0] sm:$0xf] }
 0x143   : > { %4294 = vmatpush.bf16.xpose.msra.mxu2 %v5803_v30  ;;  %v5771_v30 = vor.u32 %v6636_v4, %v5770_v17 }
 0x145   : > { %v3952_v62 = vpop.f32.mrf.mxu2  ;;  %4347 = vmatpush.bf16.xpose.msra.mxu0 %v5951_v32  ;;  %v6665_v32 = vld [vmem:[%s10302_s3 + $0x4b8] sm:$0xf0] }
 0x146   : > { %v3870_v8 = vpop.f32.mrf.mxu3  ;;  %v3923_v41 = vpop.f32.mrf.mxu1  ;;  %4265 = vmatpush.bf16.xpose.msrb.mxu1 %v5799_v23  ;;  %4318 = vmatpush.bf16.xpose.msra.mxu3 %v5947_v56  ;;  %v5742_v23 = vld [vmem:[%s10302_s3 + $0x380] sm:$0xf] }
 0x147   : > { %v3900_v43 = vadd.f32 %v3899_v14, %v3870_v8  ;;  %v3924_v22 = vadd.f32 %v3923_v41, %v3895_v36  ;;  %v5775_v36 = vor.u32 %v6633_v38, %v5772_v51  ;;  %v5920_v8 = vld [vmem:[%s10302_s3 + $0x4f4] sm:$0xf0]  ;;  %v6629_v51 = vld [vmem:[%s10302_s3 + $0x398] sm:$0xf0] }
 0x148   : > { %v5923_v41 = vor.u32 %v6669_v7, %v5920_v8  ;;  %v5743_v42 = vor.u32 %v6629_v51, %v5742_v23  ;;  %v6670_v7 = vld [vmem:[%s10302_s3 + $0x4e4] sm:$0xf] }
 0x149   : > { %v3902_v47 = vpop.f32.mrf.mxu0  ;;  %v8149_v29 = vadd.f32 %v3952_v62, %v3924_v22  ;;  %v5919_v62 = vor.u32 %v6672_v11, %v5918_v19 }
 0x14a   : > { %4186 = vmatmul.bf16.gmra.mxu2 %v7832_v24 }
 0x14b   : > { %4104 = vmatmul.bf16.gmra.mxu3 %v7623_v58  ;;  %4295 = vmatpush.bf16.xpose.msra.mxu2 %v5775_v36  ;;  %v6677_v36 = vld [vmem:[%s10302_s3 + $0x51c] sm:$0xf] }
 0x14c   : > { %4133 = vmatmul.bf16.gmra.mxu0 %v7723_v31 }
 0x14d   : > { %v3955_v6 = vpop.f32.mrf.mxu2  ;;  %4348 = vmatpush.bf16.xpose.msra.mxu0 %v5923_v41  ;;  %v5862_v41 = vld [vmem:[%s10302_s3 + $0x468] sm:$0xf] }
 0x14e   : > { %v3873_v15 = vpop.f32.mrf.mxu3  ;;  %v3926_v13 = vpop.f32.mrf.mxu1  ;;  %4266 = vmatpush.bf16.xpose.msrb.mxu1 %v5771_v30  ;;  %4319 = vmatpush.bf16.xpose.msra.mxu3 %v5919_v62 }
 0x14f   : > { %v3903_v21 = vadd.f32 %v3902_v47, %v3873_v15  ;;  %v3927_v14 = vadd.f32 %v3926_v13, %v3898_v2  ;;  %v5744_v2 = vld [vmem:[%s10302_s3 + $0x39c] sm:$0xf0]  ;;  %v5891_v15 = vor.u32 %v6665_v32, %v5890_v0  ;;  %v6673_v0 = vld [vmem:[%s10302_s3 + $0x4f8] sm:$0xf0] }
 0x150   : > { %v5747_v40 = vor.u32 %v6626_v18, %v5744_v2  ;;  %v5892_v13 = vld [vmem:[%s10302_s3 + $0x4bc] sm:$0xf0]  ;;  %v5954_v2 = vld [vmem:[%s10302_s3 + $0x518] sm:$0xf] }
 0x151   : > { %v3904_v9 = vpop.f32.mrf.mxu0  ;;  %4157 = vmatmul.bf16.gmra.mxu1 %v7612_v49  ;;  %v8179_v34 = vadd.f32 %v3955_v6, %v3927_v14  ;;  %v6662_v6 = vld [vmem:[%s10302_s3 + $0x4a4] sm:$0xf] }
 0x152   : > { %v5895_v14 = vor.u32 %v6662_v6, %v5892_v13  ;;  %v5900_v13 = vld [vmem:[%s10302_s3 + $0x4c4] sm:$0xf0] }
 0x153   : > { %4296 = vmatpush.bf16.xpose.msra.mxu2 %v5747_v40  ;;  %v6680_v40 = vld [vmem:[%s10302_s3 + $0x530] sm:$0xf0] }
 0x154   : > { %v5955_v11 = vor.u32 %v6680_v40, %v5954_v2  ;;  %v5836_v2 = vld [vmem:[%s10302_s3 + $0x44c] sm:$0xf0] }
 0x155   : > { %v3957_v22 = vpop.f32.mrf.mxu2  ;;  %4349 = vmatpush.bf16.xpose.msra.mxu0 %v5895_v14 }
 0x156   : > { %v3875_v25 = vpop.f32.mrf.mxu3  ;;  %v3928_v44 = vpop.f32.mrf.mxu1  ;;  %4267 = vmatpush.bf16.xpose.msrb.mxu1 %v5743_v42  ;;  %4320 = vmatpush.bf16.xpose.msra.mxu3 %v5891_v15  ;;  %v6663_v15 = vld [vmem:[%s10302_s3 + $0x4ac] sm:$0xf] }
 0x157   : > { %v3905_v38 = vadd.f32 %v3904_v9, %v3875_v25  ;;  %v3929_v47 = vadd.f32 %v3928_v44, %v3900_v43  ;;  %v5959_v43 = vor.u32 %v6677_v36, %v5956_v48  ;;  %v6655_v25 = vld [vmem:[%s10302_s3 + $0x46c] sm:$0xf] }
 0x159   : > { %v3907_v54 = vpop.f32.mrf.mxu0  ;;  %v8205_v56 = vadd.f32 %v3957_v22, %v3929_v47  ;;  %v6658_v22 = vld [vmem:[%s10302_s3 + $0x480] sm:$0xf0]  ;;  %v5864_v47 = vld [vmem:[%s10302_s3 + $0x484] sm:$0xf0] }
 0x15a   : > { %4191 = vmatmul.bf16.gmra.mxu2 %v7898_v35  ;;  %v5863_v44 = vor.u32 %v6658_v22, %v5862_v41  ;;  %v5867_v23 = vor.u32 %v6655_v25, %v5864_v47  ;;  %v5898_v41 = vld [vmem:[%s10302_s3 + $0x4a8] sm:$0xf]  ;;  %v6666_v22 = vld [vmem:[%s10302_s3 + $0x4c0] sm:$0xf0] }
 0x15b   : > { %4109 = vmatmul.bf16.gmra.mxu3 %v7702_v27  ;;  %4405 = vmatpush.bf16.xpose.msrb.mxu2 %v5959_v43  ;;  %v5926_v43 = vld [vmem:[%s10302_s3 + $0x4e0] sm:$0xf]  ;;  %v5899_v47 = vor.u32 %v6666_v22, %v5898_v41  ;;  %v6637_v22 = vld [vmem:[%s10302_s3 + $0x3d8] sm:$0xf0] }
 0x15c   : > { %4138 = vmatmul.bf16.gmra.mxu0 %v7792_v39  ;;  %v5927_v6 = vor.u32 %v6673_v0, %v5926_v43  ;;  %v5808_v0 = vld [vmem:[%s10302_s3 + $0x414] sm:$0xf0]  ;;  %v5778_v41 = vld [vmem:[%s10302_s3 + $0x3c0] sm:$0xf] }
 0x15d   : > { %v3960_v17 = vpop.f32.mrf.mxu2  ;;  %4350 = vmatpush.bf16.xpose.msra.mxu0 %v5867_v23  ;;  %v6656_v23 = vld [vmem:[%s10302_s3 + $0x474] sm:$0xf] }
 0x15e   : > { %v3878_v4 = vpop.f32.mrf.mxu3  ;;  %v3931_v18 = vpop.f32.mrf.mxu1  ;;  %4376 = vmatpush.bf16.xpose.msra.mxu1 %v5955_v11  ;;  %4321 = vmatpush.bf16.xpose.msra.mxu3 %v5863_v44 }
 0x15f   : > { %v3908_v9 = vadd.f32 %v3907_v54, %v3878_v4  ;;  %v3932_v30 = vadd.f32 %v3931_v18, %v3903_v21  ;;  %v5928_v21 = vld [vmem:[%s10302_s3 + $0x4fc] sm:$0xf0]  ;;  %v6651_v4 = vld [vmem:[%s10302_s3 + $0x448] sm:$0xf0]  ;;  %v6648_v18 = vld [vmem:[%s10302_s3 + $0x434] sm:$0xf] }
 0x160   : > { %v5931_v8 = vor.u32 %v6670_v7, %v5928_v21  ;;  %v5839_v40 = vor.u32 %v6648_v18, %v5836_v2  ;;  %v6659_v2 = vld [vmem:[%s10302_s3 + $0x488] sm:$0xf0] }
 0x161   : > { %v3909_v19 = vpop.f32.mrf.mxu0  ;;  %4162 = vmatmul.bf16.gmra.mxu1 %v7691_v57  ;;  %v8235_v62 = vadd.f32 %v3960_v17, %v3932_v30  ;;  %v5834_v17 = vld [vmem:[%s10302_s3 + $0x430] sm:$0xf] }
 0x162   : > { %v5835_v30 = vor.u32 %v6651_v4, %v5834_v17 }
 0x163   : > { %4406 = vmatpush.bf16.xpose.msrb.mxu2 %v5931_v8 }
 0x165   : > { %v3962_v51 = vpop.f32.mrf.mxu2  ;;  %4351 = vmatpush.bf16.xpose.msra.mxu0 %v5839_v40 }
 0x166   : > { %v3880_v36 = vpop.f32.mrf.mxu3  ;;  %v3933_v54 = vpop.f32.mrf.mxu1  ;;  %4377 = vmatpush.bf16.xpose.msra.mxu1 %v5927_v6  ;;  %4322 = vmatpush.bf16.xpose.msra.mxu3 %v5835_v30  ;;  %v5870_v30 = vld [vmem:[%s10302_s3 + $0x470] sm:$0xf] }
 0x167   : > { %v3910_v42 = vadd.f32 %v3909_v19, %v3880_v36  ;;  %v3934_v48 = vadd.f32 %v3933_v54, %v3905_v38  ;;  %v5903_v38 = vor.u32 %v6663_v15, %v5900_v13  ;;  %v5806_v36 = vld [vmem:[%s10302_s3 + $0x3f8] sm:$0xf]  ;;  %v6644_v54 = vld [vmem:[%s10302_s3 + $0x410] sm:$0xf0] }
 0x168   : > { %v5807_v43 = vor.u32 %v6644_v54, %v5806_v36 }
 0x169   : > { %v4008_v32 = vpop.f32.mrf.mxu0  ;;  %v8261_v14 = vadd.f32 %v3962_v51, %v3934_v48  ;;  %v6641_v48 = vld [vmem:[%s10302_s3 + $0x3fc] sm:$0xf] }
 0x16a   : > { %4196 = vmatmul.bf16.gmra.mxu2 %v7968_v60  ;;  %v5811_v6 = vor.u32 %v6641_v48, %v5808_v0 }
 0x16b   : > { %4210 = vmatmul.bf16.vlgmr.msrb.gmra.mxu3 %v7774_v20  ;;  %4407 = vmatpush.bf16.xpose.msrb.mxu2 %v5903_v38 }
 0x16c   : > { %6416 = vmatmul.msk.bf16.vlgmr.msrb.gmra.mxu0 %vm3721_vm2, %v7859_v50 }
 0x16d   : > { %v3965_v19 = vpop.f32.mrf.mxu2  ;;  %4352 = vmatpush.bf16.xpose.msra.mxu0 %v5811_v6 }
 0x16e   : > { %v3936_v11 = vpop.f32.mrf.mxu1  ;;  %v3979_v7 = vpop.f32.mrf.mxu3  ;;  %4378 = vmatpush.bf16.xpose.msra.mxu1 %v5899_v47  ;;  %4323 = vmatpush.bf16.xpose.msra.mxu3 %v5807_v43 }
 0x16f   : > { %v3937_v21 = vadd.f32 %v3936_v11, %v3908_v9  ;;  %v3980_v8 = vadd.f32 %v3979_v7, %v8128_v28  ;;  %v5872_v28 = vld [vmem:[%s10302_s3 + $0x48c] sm:$0xf0]  ;;  %v5871_v7 = vor.u32 %v6659_v2, %v5870_v30  ;;  %v5750_v2 = vld [vmem:[%s10302_s3 + $0x388] sm:$0xf] }
 0x170   : > { %v5875_v51 = vor.u32 %v6656_v23, %v5872_v28  ;;  %v5779_v23 = vor.u32 %v6637_v22, %v5778_v41  ;;  %v5780_v28 = vld [vmem:[%s10302_s3 + $0x3dc] sm:$0xf0] }
 0x171   : > { %v4010_v25 = vpop.f32.mrf.mxu0  ;;  %4167 = vmatmul.bf16.gmra.mxu1 %v7757_v5  ;;  %v4009_v44 = vadd.f32 %v4008_v32, %v3980_v8  ;;  %v8293_v9 = vadd.f32 %v3965_v19, %v3937_v21  ;;  %v599_v32 = vlaneseq }
 0x173   : > { %4408 = vmatpush.bf16.xpose.msrb.mxu2 %v5875_v51  ;;  %v8308_v18 = vshrl.u32 %v599_v32, 7  ;;  %v8316_v19 = vand.u32 127, %v599_v32 }
 0x175   : > { %v3967_v15 = vpop.f32.mrf.mxu2  ;;  %v8338_v47 = vadd.s32 8, %v8308_v18  ;;  %v614_v54 = vsub.s32 %v8316_v19, %v8308_v18 }
 0x176   : > { %v3938_v13 = vpop.f32.mrf.mxu1  ;;  %v3981_v38 = vpop.f32.mrf.mxu3  ;;  %4379 = vmatpush.bf16.xpose.msra.mxu1 %v5871_v7  ;;  %4324 = vmatpush.bf16.xpose.msra.mxu3 %v5779_v23  ;;  %v6630_v7 = vld [vmem:[%s10302_s3 + $0x3a0] sm:$0xf0] }
 0x177   : > { %v3939_v17 = vadd.f32 %v3938_v13, %v3910_v42  ;;  %v3982_v4 = vadd.f32 %v3981_v38, %v8149_v29  ;;  %v6649_v42 = vld [vmem:[%s10302_s3 + $0x43c] sm:$0xf]  ;;  %v5844_v29 = vld [vmem:[%s10302_s3 + $0x454] sm:$0xf0]  ;;  %v619_v6 = vsub.s32 %v8316_v19, %v8338_v47  ;;  %v6652_v13 = vld [vmem:[%s10302_s3 + $0x450] sm:$0xf0] }
 0x178   : > { %v5847_v8 = vor.u32 %v6649_v42, %v5844_v29  ;;  %vm654_vm3 = vcmp.eq.s32.totalorder %v614_v54, 0  ;;  %vm694_vm4 = vcmp.eq.s32.totalorder %v614_v54, 64  ;;  %v8375_v42 = vadd.s32 16, %v8308_v18  ;;  %v5814_v54 = vld [vmem:[%s10302_s3 + $0x400] sm:$0xf] }
 0x179   : > { %v4013_v40 = vpop.f32.mrf.mxu0  ;;  %v4011_v11 = vadd.f32 %v4010_v25, %v3982_v4  ;;  %v8324_v21 = vadd.f32 %v3967_v15, %v3939_v17  ;;  %v6634_v25 = vld [vmem:[%s10302_s3 + $0x3c4] sm:$0xf]  ;;  %v5842_v15 = vld [vmem:[%s10302_s3 + $0x438] sm:$0xf]  ;;  %vm659_vm5 = vcmp.eq.s32.totalorder %v619_v6, 0  ;;  %vm699_vm6 = vcmp.eq.s32.totalorder %v619_v6, 64  ;;  %vm8382_vm7 = vmor %vm654_vm3, %vm694_vm4 }
 0x17a   : > { %4297 = vmatmul.bf16.vlgmr.msra.gmra.mxu2 %v7480_v61  ;;  %v5783_v51 = vor.u32 %v6634_v25, %v5780_v28  ;;  %v5843_v4 = vor.u32 %v6652_v13, %v5842_v15  ;;  %v5751_v29 = vor.u32 %v6630_v7, %v5750_v2  ;;  %vm739_vm8 = vmor %vm659_vm5, %vm699_vm6  ;;  %v6162_v2 = vld [vmem:[%s10302_s3 + $0x6c8] sm:$0xf]  ;;  %v8417_v7 = vadd.s32 24, %v8308_v18 }
 0x17b   : > { %4215 = vmatmul.bf16.gmra.mxu3 %v7841_v33  ;;  %4409 = vmatpush.bf16.xpose.msrb.mxu2 %v5847_v8  ;;  %v5752_v8 = vld [vmem:[%s10302_s3 + $0x3a4] sm:$0xf0] }
 0x17c   : > { %6417 = vmatmul.msk.bf16.gmra.mxu0 %vm3721_vm2, %v7926_v63 }
 0x17d   : > { %v8345_v36 = vpop.f32.mrf.mxu2  ;;  %4353 = vmatpush.bf16.xpose.msra.mxu0 %v5783_v51 }
 0x17e   : > { %v3984_v48 = vpop.f32.mrf.mxu3  ;;  %v4037_v43 = vpop.f32.mrf.mxu1  ;;  %4380 = vmatpush.bf16.xpose.msra.mxu1 %v5843_v4  ;;  %4325 = vmatpush.bf16.xpose.msra.mxu3 %v5751_v29  ;;  %v6734_v29 = vld [vmem:[%s10302_s3 + $0x6e0] sm:$0xf0] }
 0x17f   : > { %v3985_v0 = vadd.f32 %v3984_v48, %v8179_v34  ;;  %v4038_v32 = vadd.f32 %v4037_v43, %v4009_v44  ;;  %v6642_v34 = vld [vmem:[%s10302_s3 + $0x404] sm:$0xf]  ;;  %v5816_v44 = vld [vmem:[%s10302_s3 + $0x41c] sm:$0xf0]  ;;  %v624_v43 = vsub.s32 %v8316_v19, %v8375_v42 }
 0x180   : > { %v5819_v30 = vor.u32 %v6642_v34, %v5816_v44 }
 0x181   : > { %v4015_v38 = vpop.f32.mrf.mxu0  ;;  %4268 = vmatmul.bf16.vlgmr.msrb.gmra.mxu1 %v7476_v59  ;;  %v4014_v17 = vadd.f32 %v4013_v40, %v3985_v0  ;;  %v6627_v40 = vld [vmem:[%s10302_s3 + $0x38c] sm:$0xf]  ;;  %v6645_v0 = vld [vmem:[%s10302_s3 + $0x418] sm:$0xf0]  ;;  %v4869_v6 = vsel %vm8382_vm7, %v4038_v32, 0.0  ;;  %vm664_vm9 = vcmp.eq.s32.totalorder %v624_v43, 0 }
 0x182   : > { %v5755_v41 = vor.u32 %v6627_v40, %v5752_v8  ;;  %v5815_v34 = vor.u32 %v6645_v0, %v5814_v54  ;;  %v5962_v32 = vld [vmem:[%s10302_s3 + $0x520] sm:$0xf]  ;;  %vm704_vm10 = vcmp.eq.s32.totalorder %v624_v43, 64  ;;  %v6163_v8 = vor.u32 %v6734_v29, %v6162_v2  ;;  %v5786_v0 = vld [vmem:[%s10302_s3 + $0x3c8] sm:$0xf] }
 0x183   : > { %4410 = vmatpush.bf16.xpose.msrb.mxu2 %v5819_v30  ;;  %vm8427_vm11 = vmor %vm664_vm9, %vm704_vm10  ;;  %v629_v54 = vsub.s32 %v8316_v19, %v8417_v7  ;;  %v6674_v2 = vld [vmem:[%s10302_s3 + $0x500] sm:$0xf0]  ;;  %v6727_v29 = vld [vmem:[%s10302_s3 + $0x6a8] sm:$0xf0] }
 0x185   : > { %v8386_v25 = vpop.f32.mrf.mxu2  ;;  %4354 = vmatpush.bf16.xpose.msra.mxu0 %v5755_v41  ;;  %vm669_vm12 = vcmp.eq.s32.totalorder %v629_v54, 0  ;;  %vm709_vm13 = vcmp.eq.s32.totalorder %v629_v54, 64 }
 0x186   : > { %v3986_v23 = vpop.f32.mrf.mxu3  ;;  %v4039_v28 = vpop.f32.mrf.mxu1  ;;  %4381 = vmatpush.bf16.xpose.msra.mxu1 %v5815_v34  ;;  %vm749_vm14 = vmor %vm669_vm12, %vm709_vm13 }
 0x187   : > { %v3987_v51 = vadd.f32 %v3986_v23, %v8205_v56  ;;  %v4040_v48 = vadd.f32 %v4039_v28, %v4011_v11  ;;  %v6635_v56 = vld [vmem:[%s10302_s3 + $0x3cc] sm:$0xf]  ;;  %v5788_v11 = vld [vmem:[%s10302_s3 + $0x3e4] sm:$0xf0] }
 0x188   : > { %v5791_v30 = vor.u32 %v6635_v56, %v5788_v11  ;;  %v5760_v11 = vld [vmem:[%s10302_s3 + $0x3ac] sm:$0xf0] }
 0x189   : > { %v4874_v15 = vsel %vm739_vm8, %v4040_v48, 0.0  ;;  %v4018_v13 = vpop.f32.mrf.mxu0  ;;  %v4016_v4 = vadd.f32 %v4015_v38, %v3987_v51  ;;  %v6681_v38 = vld [vmem:[%s10302_s3 + $0x538] sm:$0xf0] }
 0x18a   : > { %v4909_v44 = vadd.f32 %v4874_v15, %v4869_v6  ;;  %4302 = vmatmul.bf16.gmra.mxu2 %v7551_v55  ;;  %v5963_v40 = vor.u32 %v6681_v38, %v5962_v32  ;;  %v6638_v6 = vld [vmem:[%s10302_s3 + $0x3e0] sm:$0xf0]  ;;  %v5934_v38 = vld [vmem:[%s10302_s3 + $0x4e8] sm:$0xf] }
 0x18b   : > { %4220 = vmatmul.bf16.gmra.mxu3 %v7910_v37  ;;  %4411 = vmatpush.bf16.xpose.msrb.mxu2 %v5791_v30 }
 0x18c   : > { %6418 = vmatmul.msk.bf16.gmra.mxu0 %vm3721_vm2, %v7993_v45  ;;  %v3804_v22 = vsel %vm3721_vm2, %v5963_v40, 0  ;;  %v8459_v40 = vadd.s32 32, %v8308_v18 }
 0x18d   : > { %v8424_v41 = vpop.f32.mrf.mxu2  ;;  %4434 = vmatpush.bf16.xpose.msrb.mxu3 %v3804_v22  ;;  %4463 = vmatpush.bf16.xpose.msrb.mxu0 %v6163_v8 }
 0x18e   : > { %v3989_v23 = vpop.f32.mrf.mxu3  ;;  %v4042_v51 = vpop.f32.mrf.mxu1  ;;  %v634_v54 = vsub.s32 %v8316_v19, %v8459_v40 }
 0x18f   : > { %v3990_v48 = vadd.f32 %v3989_v23, %v8235_v62  ;;  %v4043_v43 = vadd.f32 %v4042_v51, %v4014_v17  ;;  %v5787_v62 = vor.u32 %v6638_v6, %v5786_v0  ;;  %v6628_v17 = vld [vmem:[%s10302_s3 + $0x394] sm:$0xf]  ;;  %v5758_v0 = vld [vmem:[%s10302_s3 + $0x390] sm:$0xf]  ;;  %v6631_v6 = vld [vmem:[%s10302_s3 + $0x3a8] sm:$0xf0] }
 0x190   : > { %v5763_v32 = vor.u32 %v6628_v17, %v5760_v11  ;;  %v5759_v11 = vor.u32 %v6631_v6, %v5758_v0  ;;  %vm674_vm15 = vcmp.eq.s32.totalorder %v634_v54, 0  ;;  %vm714_vm0 = vcmp.eq.s32.totalorder %v634_v54, 64 }
 0x191   : > { %v4879_v15 = vsel %vm8427_vm11, %v4043_v43, 0.0  ;;  %v4020_v34 = vpop.f32.mrf.mxu0  ;;  %4273 = vmatmul.bf16.gmra.mxu1 %v7549_v53  ;;  %v4019_v56 = vadd.f32 %v4018_v13, %v3990_v48  ;;  %v6134_v13 = vld [vmem:[%s10302_s3 + $0x690] sm:$0xf]  ;;  %vm8504_vm1 = vmor %vm674_vm15, %vm714_vm0 }
 0x192   : > { %v4910_v30 = vadd.f32 %v4909_v44, %v4879_v15  ;;  %4382 = vmatpush.bf16.xpose.msra.mxu1 %v5787_v62  ;;  %v5935_v44 = vor.u32 %v6674_v2, %v5934_v38  ;;  %v6135_v8 = vor.u32 %v6727_v29, %v6134_v13  ;;  %v5906_v2 = vld [vmem:[%s10302_s3 + $0x4b0] sm:$0xf]  ;;  %v6106_v13 = vld [vmem:[%s10302_s3 + $0x658] sm:$0xf]  ;;  %v6720_v29 = vld [vmem:[%s10302_s3 + $0x670] sm:$0xf0] }
 0x193   : > { %4412 = vmatpush.bf16.xpose.msrb.mxu2 %v5763_v32 }
 0x194   : > { %v3801_v23 = vsel %vm3721_vm2, %v5935_v44, 0 }
 0x195   : > { %v8464_v22 = vpop.f32.mrf.mxu2  ;;  %4435 = vmatpush.bf16.xpose.msrb.mxu3 %v3801_v23  ;;  %4464 = vmatpush.bf16.xpose.msrb.mxu0 %v6135_v8  ;;  %v6107_v8 = vor.u32 %v6720_v29, %v6106_v13  ;;  %v5878_v13 = vld [vmem:[%s10302_s3 + $0x478] sm:$0xf] }
 0x196   : > { %v3991_v28 = vpop.f32.mrf.mxu3  ;;  %v4044_v51 = vpop.f32.mrf.mxu1 }
 0x197   : > { %v3992_v48 = vadd.f32 %v3991_v28, %v8261_v14  ;;  %v4045_v43 = vadd.f32 %v4044_v51, %v4016_v4  ;;  %v6170_v14 = vld [vmem:[%s10302_s3 + $0x6d0] sm:$0xf]  ;;  %v6735_v4 = vld [vmem:[%s10302_s3 + $0x6e8] sm:$0xf0] }
 0x198   : > { %v6171_v38 = vor.u32 %v6735_v4, %v6170_v14  ;;  %v6142_v14 = vld [vmem:[%s10302_s3 + $0x698] sm:$0xf] }
 0x199   : > { %v4884_v15 = vsel %vm749_vm14, %v4045_v43, 0.0  ;;  %v4023_v62 = vpop.f32.mrf.mxu0  ;;  %v4021_v17 = vadd.f32 %v4020_v34, %v3992_v48  ;;  %v6667_v34 = vld [vmem:[%s10302_s3 + $0x4c8] sm:$0xf0] }
 0x19a   : > { %v4911_v32 = vadd.f32 %v4910_v30, %v4884_v15  ;;  %4307 = vmatmul.bf16.gmra.mxu2 %v7623_v58  ;;  %v8494_v30 = vadd.s32 40, %v8308_v18  ;;  %4383 = vmatpush.bf16.xpose.msra.mxu1 %v5759_v11  ;;  %v5907_v44 = vor.u32 %v6667_v34, %v5906_v2  ;;  %v6731_v15 = vld [vmem:[%s10302_s3 + $0x6cc] sm:$0xf]  ;;  %v6164_v11 = vld [vmem:[%s10302_s3 + $0x6e4] sm:$0xf0] }
 0x19b   : > { %4225 = vmatmul.bf16.gmra.mxu3 %v7980_v52  ;;  %4521 = vmatpush.bf16.xpose.msra.mxu2 %v6171_v38  ;;  %v6167_v2 = vor.u32 %v6731_v15, %v6164_v11  ;;  %v6728_v34 = vld [vmem:[%s10302_s3 + $0x6b0] sm:$0xf0] }
 0x19c   : > { %6419 = vmatmul.msk.bf16.gmra.mxu0 %vm3721_vm2, %v8052_v3  ;;  %v3798_v28 = vsel %vm3721_vm2, %v5907_v44, 0  ;;  %v639_v6 = vsub.s32 %v8316_v19, %v8494_v30  ;;  %v6143_v29 = vor.u32 %v6728_v34, %v6142_v14  ;;  %v6114_v34 = vld [vmem:[%s10302_s3 + $0x660] sm:$0xf] }
 0x19d   : > { %v8501_v23 = vpop.f32.mrf.mxu2  ;;  %4436 = vmatpush.bf16.xpose.msrb.mxu3 %v3798_v28  ;;  %4465 = vmatpush.bf16.xpose.msrb.mxu0 %v6107_v8  ;;  %v6660_v8 = vld [vmem:[%s10302_s3 + $0x490] sm:$0xf0]  ;;  %v6078_v28 = vld [vmem:[%s10302_s3 + $0x620] sm:$0xf] }
 0x19e   : > { %v3994_v51 = vpop.f32.mrf.mxu3  ;;  %v4047_v43 = vpop.f32.mrf.mxu1  ;;  %vm679_vm3 = vcmp.eq.s32.totalorder %v639_v6, 0  ;;  %vm719_vm4 = vcmp.eq.s32.totalorder %v639_v6, 64 }
 0x19f   : > { %v3995_v54 = vadd.f32 %v3994_v51, %v8293_v9  ;;  %v4048_v0 = vadd.f32 %v4047_v43, %v4019_v56  ;;  %v8524_v56 = vadd.s32 48, %v8308_v18  ;;  %v5879_v51 = vor.u32 %v6660_v8, %v5878_v13  ;;  %vm8546_vm5 = vmor %vm679_vm3, %vm719_vm4 }
 0x1a1   : > { %v4889_v4 = vsel %vm8504_vm1, %v4048_v0, 0.0  ;;  %v4025_v9 = vpop.f32.mrf.mxu0  ;;  %4278 = vmatmul.bf16.gmra.mxu1 %v7621_v26  ;;  %v4024_v38 = vadd.f32 %v4023_v62, %v3995_v54  ;;  %v6713_v62 = vld [vmem:[%s10302_s3 + $0x638] sm:$0xf0]  ;;  %v644_v43 = vsub.s32 %v8316_v19, %v8524_v56  ;;  %v3795_v54 = vsel %vm3721_vm2, %v5879_v51, 0 }
 0x1a2   : > { %v4912_v44 = vadd.f32 %v4911_v32, %v4889_v4  ;;  %4492 = vmatpush.bf16.xpose.msrb.mxu1 %v6167_v2  ;;  %v6079_v48 = vor.u32 %v6713_v62, %v6078_v28  ;;  %v6724_v4 = vld [vmem:[%s10302_s3 + $0x694] sm:$0xf]  ;;  %v6136_v2 = vld [vmem:[%s10302_s3 + $0x6ac] sm:$0xf0]  ;;  %v5850_v28 = vld [vmem:[%s10302_s3 + $0x440] sm:$0xf] }
 0x1a3   : > { %4522 = vmatpush.bf16.xpose.msra.mxu2 %v6143_v29  ;;  %vm684_vm6 = vcmp.eq.s32.totalorder %v644_v43, 0  ;;  %vm724_vm7 = vcmp.eq.s32.totalorder %v644_v43, 64  ;;  %v6108_v43 = vld [vmem:[%s10302_s3 + $0x674] sm:$0xf0] }
 0x1a4   : > { %vm8587_vm8 = vmor %vm684_vm6, %vm724_vm7 }
 0x1a5   : > { %v8541_v32 = vpop.f32.mrf.mxu2  ;;  %4437 = vmatpush.bf16.xpose.msrb.mxu3 %v3795_v54  ;;  %4466 = vmatpush.bf16.xpose.msrb.mxu0 %v6079_v48  ;;  %v6653_v48 = vld [vmem:[%s10302_s3 + $0x458] sm:$0xf0]  ;;  %v6706_v54 = vld [vmem:[%s10302_s3 + $0x600] sm:$0xf0] }
 0x1a6   : > { %v3996_v0 = vpop.f32.mrf.mxu3  ;;  %v4049_v11 = vpop.f32.mrf.mxu1 }
 0x1a7   : > { %v3997_v6 = vadd.f32 %v3996_v0, %v8324_v21  ;;  %v4050_v14 = vadd.f32 %v4049_v11, %v4021_v17  ;;  %v6139_v21 = vor.u32 %v6724_v4, %v6136_v2  ;;  %v6721_v17 = vld [vmem:[%s10302_s3 + $0x678] sm:$0xf0]  ;;  %v5851_v0 = vor.u32 %v6653_v48, %v5850_v28  ;;  %v6086_v28 = vld [vmem:[%s10302_s3 + $0x628] sm:$0xf] }
 0x1a8   : > { %v6115_v51 = vor.u32 %v6721_v17, %v6114_v34  ;;  %v6717_v17 = vld [vmem:[%s10302_s3 + $0x65c] sm:$0xf] }
 0x1a9   : > { %v4894_v13 = vsel %vm8546_vm5, %v4050_v14, 0.0  ;;  %v4124_v29 = vpop.f32.mrf.mxu0  ;;  %v4026_v8 = vadd.f32 %v4025_v9, %v3997_v6  ;;  %v6050_v9 = vld [vmem:[%s10302_s3 + $0x5e8] sm:$0xf]  ;;  %v3792_v6 = vsel %vm3721_vm2, %v5851_v0, 0  ;;  %v6111_v48 = vor.u32 %v6717_v17, %v6108_v43  ;;  %v6022_v14 = vld [vmem:[%s10302_s3 + $0x5b0] sm:$0xf] }
 0x1aa   : > { %v4913_v62 = vadd.f32 %v4912_v44, %v4894_v13  ;;  %4312 = vmatmul.bf16.gmra.mxu2 %v7702_v27  ;;  %v8580_v44 = vadd.s32 56, %v8308_v18  ;;  %4493 = vmatpush.bf16.xpose.msrb.mxu1 %v6139_v21  ;;  %v6051_v15 = vor.u32 %v6706_v54, %v6050_v9  ;;  %v6714_v9 = vld [vmem:[%s10302_s3 + $0x640] sm:$0xf0]  ;;  %v5822_v54 = vld [vmem:[%s10302_s3 + $0x408] sm:$0xf] }
 0x1ab   : > { %4326 = vmatmul.bf16.vlgmr.msra.gmra.mxu3 %v7570_v10  ;;  %4523 = vmatpush.bf16.xpose.msra.mxu2 %v6115_v51 }
 0x1ac   : > { %4355 = vmatmul.bf16.vlgmr.msra.gmra.mxu0 %v7538_v46  ;;  %v649_v21 = vsub.s32 %v8316_v19, %v8580_v44 }
 0x1ad   : > { %v8583_v11 = vpop.f32.mrf.mxu2  ;;  %4438 = vmatpush.bf16.xpose.msrb.mxu3 %v3792_v6  ;;  %4467 = vmatpush.bf16.xpose.msrb.mxu0 %v6051_v15  ;;  %v6087_v15 = vor.u32 %v6714_v9, %v6086_v28  ;;  %v6646_v6 = vld [vmem:[%s10302_s3 + $0x420] sm:$0xf0]  ;;  %v6058_v9 = vld [vmem:[%s10302_s3 + $0x5f0] sm:$0xf] }
 0x1ae   : > { %v4052_v4 = vpop.f32.mrf.mxu1  ;;  %v4095_v2 = vpop.f32.mrf.mxu3  ;;  %vm689_vm9 = vcmp.eq.s32.totalorder %v649_v21, 0  ;;  %vm729_vm10 = vcmp.eq.s32.totalorder %v649_v21, 64  ;;  %v6710_v21 = vld [vmem:[%s10302_s3 + $0x624] sm:$0xf] }
 0x1af   : > { %v4053_v34 = vadd.f32 %v4052_v4, %v4024_v38  ;;  %v4096_v13 = vadd.f32 %v4095_v2, %v8345_v36  ;;  %v5823_v4 = vor.u32 %v6646_v6, %v5822_v54  ;;  %vm8624_vm11 = vmor %vm689_vm9, %vm729_vm10 }
 0x1b1   : > { %v4899_v38 = vsel %vm8587_vm8, %v4053_v34, 0.0  ;;  %v4126_v51 = vpop.f32.mrf.mxu0  ;;  %4283 = vmatmul.bf16.gmra.mxu1 %v7699_v1  ;;  %v4125_v36 = vadd.f32 %v4124_v29, %v4096_v13  ;;  %v6699_v29 = vld [vmem:[%s10302_s3 + $0x5c8] sm:$0xf0]  ;;  %v3789_v34 = vsel %vm3721_vm2, %v5823_v4, 0 }
 0x1b2   : > { %v4914_v0 = vadd.f32 %v4913_v62, %v4899_v38  ;;  %4494 = vmatpush.bf16.xpose.msrb.mxu1 %v6111_v48  ;;  %v6023_v2 = vor.u32 %v6699_v29, %v6022_v14  ;;  %v6080_v48 = vld [vmem:[%s10302_s3 + $0x63c] sm:$0xf0]  ;;  %v5794_v14 = vld [vmem:[%s10302_s3 + $0x3d0] sm:$0xf] }
 0x1b3   : > { %4524 = vmatpush.bf16.xpose.msra.mxu2 %v6087_v15 }
 0x1b5   : > { %v8621_v62 = vpop.f32.mrf.mxu2  ;;  %4439 = vmatpush.bf16.xpose.msrb.mxu3 %v3789_v34  ;;  %4468 = vmatpush.bf16.xpose.msrb.mxu0 %v6023_v2  ;;  %v6639_v2 = vld [vmem:[%s10302_s3 + $0x3e8] sm:$0xf0]  ;;  %v6692_v34 = vld [vmem:[%s10302_s3 + $0x590] sm:$0xf0] }
 0x1b6   : > { %v4054_v17 = vpop.f32.mrf.mxu1  ;;  %v4097_v43 = vpop.f32.mrf.mxu3 }
 0x1b7   : > { %v4055_v28 = vadd.f32 %v4054_v17, %v4026_v8  ;;  %v4098_v38 = vadd.f32 %v4097_v43, %v8386_v25  ;;  %v6083_v8 = vor.u32 %v6710_v21, %v6080_v48  ;;  %v6707_v25 = vld [vmem:[%s10302_s3 + $0x608] sm:$0xf0] }
 0x1b8   : > { %v6059_v4 = vor.u32 %v6707_v25, %v6058_v9  ;;  %v6703_v9 = vld [vmem:[%s10302_s3 + $0x5ec] sm:$0xf] }
 0x1b9   : > { %v4904_v54 = vsel %vm8624_vm11, %v4055_v28, 0.0  ;;  %v4129_v15 = vpop.f32.mrf.mxu0  ;;  %v4127_v6 = vadd.f32 %v4126_v51, %v4098_v38  ;;  %v5994_v51 = vld [vmem:[%s10302_s3 + $0x578] sm:$0xf] }
 0x1ba   : > { %v8646_v29 = vadd.f32 %v4914_v0, %v4904_v54  ;;  %4413 = vmatmul.bf16.vlgmr.msrb.gmra.mxu2 %v7774_v20  ;;  %4495 = vmatpush.bf16.xpose.msrb.mxu1 %v6083_v8  ;;  %v5795_v0 = vor.u32 %v6639_v2, %v5794_v14  ;;  %v5995_v13 = vor.u32 %v6692_v34, %v5994_v51  ;;  %v6052_v54 = vld [vmem:[%s10302_s3 + $0x604] sm:$0xf0]  ;;  %v5966_v34 = vld [vmem:[%s10302_s3 + $0x540] sm:$0xf] }
 0x1bb   : > { %4331 = vmatmul.bf16.gmra.mxu3 %v7646_v16  ;;  %4525 = vmatpush.bf16.xpose.msra.mxu2 %v6059_v4  ;;  %v6055_v14 = vor.u32 %v6703_v9, %v6052_v54  ;;  %v6030_v4 = vld [vmem:[%s10302_s3 + $0x5b8] sm:$0xf]  ;;  %v6696_v54 = vld [vmem:[%s10302_s3 + $0x5b4] sm:$0xf] }
 0x1bc   : > { %4360 = vmatmul.bf16.gmra.mxu0 %v7612_v49  ;;  %v3786_v43 = vsel %vm3721_vm2, %v5795_v0, 0  ;;  %v6685_v0 = vld [vmem:[%s10302_s3 + $0x558] sm:$0xf0] }
 0x1bd   : > { %v4182_v17 = vpop.f32.mrf.mxu2  ;;  %4440 = vmatpush.bf16.xpose.msrb.mxu3 %v3786_v43  ;;  %4469 = vmatpush.bf16.xpose.msrb.mxu0 %v5995_v13  ;;  %v5967_v43 = vor.u32 %v6685_v0, %v5966_v34  ;;  %v6732_v34 = vld [vmem:[%s10302_s3 + $0x6d4] sm:$0xf]  ;;  %v6172_v0 = vld [vmem:[%s10302_s3 + $0x6ec] sm:$0xf0] }
 0x1be   : > { %v4100_v28 = vpop.f32.mrf.mxu3  ;;  %v4153_v38 = vpop.f32.mrf.mxu1 }
 0x1bf   : > { %v4101_v21 = vadd.f32 %v4100_v28, %v8424_v41  ;;  %v4154_v48 = vadd.f32 %v4153_v38, %v4125_v36  ;;  %v6700_v41 = vld [vmem:[%s10302_s3 + $0x5d0] sm:$0xf0]  ;;  %v5766_v36 = vld [vmem:[%s10302_s3 + $0x398] sm:$0xf] }
 0x1c0   : > { %v6031_v51 = vor.u32 %v6700_v41, %v6030_v4  ;;  %v6002_v4 = vld [vmem:[%s10302_s3 + $0x580] sm:$0xf] }
 0x1c1   : > { %v4131_v8 = vpop.f32.mrf.mxu0  ;;  %4384 = vmatmul.bf16.vlgmr.msra.gmra.mxu1 %v7765_v12  ;;  %v4130_v25 = vadd.f32 %v4129_v15, %v4101_v21  ;;  %v8678_v2 = vadd.f32 %v4182_v17, %v4154_v48  ;;  %v6632_v15 = vld [vmem:[%s10302_s3 + $0x3b0] sm:$0xf0] }
 0x1c2   : > { %4496 = vmatpush.bf16.xpose.msrb.mxu1 %v6055_v14  ;;  %v5767_v13 = vor.u32 %v6632_v15, %v5766_v36  ;;  %v6024_v14 = vld [vmem:[%s10302_s3 + $0x5cc] sm:$0xf0] }
 0x1c3   : > { %4526 = vmatpush.bf16.xpose.msra.mxu2 %v6031_v51  ;;  %v6027_v51 = vor.u32 %v6696_v54, %v6024_v14  ;;  %v6689_v54 = vld [vmem:[%s10302_s3 + $0x57c] sm:$0xf]  ;;  %v5996_v14 = vld [vmem:[%s10302_s3 + $0x594] sm:$0xf0] }
 0x1c4   : > { %v3783_v17 = vsel %vm3721_vm2, %v5767_v13, 0  ;;  %v6175_v13 = vor.u32 %v6732_v34, %v6172_v0  ;;  %v6725_v0 = vld [vmem:[%s10302_s3 + $0x69c] sm:$0xf] }
 0x1c5   : > { %v4184_v28 = vpop.f32.mrf.mxu2  ;;  %4441 = vmatpush.bf16.xpose.msrb.mxu3 %v3783_v17  ;;  %4470 = vmatpush.bf16.xpose.msrb.mxu0 %v5967_v43  ;;  %v6736_v43 = vld [vmem:[%s10302_s3 + $0x6f0] sm:$0xf0] }
 0x1c6   : > { %v4102_v38 = vpop.f32.mrf.mxu3  ;;  %v4155_v21 = vpop.f32.mrf.mxu1 }
 0x1c7   : > { %v4103_v48 = vadd.f32 %v4102_v38, %v8464_v22  ;;  %v4156_v9 = vadd.f32 %v4155_v21, %v4127_v6  ;;  %v6693_v22 = vld [vmem:[%s10302_s3 + $0x598] sm:$0xf0] }
 0x1c8   : > { %v6003_v15 = vor.u32 %v6693_v22, %v6002_v4  ;;  %v5974_v4 = vld [vmem:[%s10302_s3 + $0x548] sm:$0xf] }
 0x1c9   : > { %v4134_v41 = vpop.f32.mrf.mxu0  ;;  %v4132_v36 = vadd.f32 %v4131_v8, %v4103_v48  ;;  %v8703_v6 = vadd.f32 %v4184_v28, %v4156_v9  ;;  %v6178_v8 = vld [vmem:[%s10302_s3 + $0x6d8] sm:$0xf] }
 0x1ca   : > { %4418 = vmatmul.bf16.gmra.mxu2 %v7841_v33  ;;  %4497 = vmatpush.bf16.xpose.msrb.mxu1 %v6027_v51  ;;  %v6179_v28 = vor.u32 %v6736_v43, %v6178_v8  ;;  %v6144_v8 = vld [vmem:[%s10302_s3 + $0x6b4] sm:$0xf0]  ;;  %v6729_v43 = vld [vmem:[%s10302_s3 + $0x6b8] sm:$0xf0] }
 0x1cb   : > { %4336 = vmatmul.bf16.gmra.mxu3 %v7723_v31  ;;  %4527 = vmatpush.bf16.xpose.msra.mxu2 %v6003_v15  ;;  %v5999_v15 = vor.u32 %v6689_v54, %v5996_v14  ;;  %v6186_v54 = vld [vmem:[%s10302_s3 + $0x6e0] sm:$0xf]  ;;  %v6737_v14 = vld [vmem:[%s10302_s3 + $0x6f8] sm:$0xf0] }
 0x1cc   : > { %4365 = vmatmul.bf16.gmra.mxu0 %v7691_v57 }
 0x1cd   : > { %v4187_v17 = vpop.f32.mrf.mxu2  ;;  %4550 = vmatpush.bf16.xpose.msra.mxu3 %v6175_v13  ;;  %4579 = vmatpush.bf16.xpose.msra.mxu0 %v6179_v28  ;;  %v6147_v13 = vor.u32 %v6725_v0, %v6144_v8  ;;  %v6718_v8 = vld [vmem:[%s10302_s3 + $0x664] sm:$0xf] }
 0x1ce   : > { %v4105_v38 = vpop.f32.mrf.mxu3  ;;  %v4158_v21 = vpop.f32.mrf.mxu1 }
 0x1cf   : > { %v4106_v48 = vadd.f32 %v4105_v38, %v8501_v23  ;;  %v4159_v9 = vadd.f32 %v4158_v21, %v4130_v25  ;;  %v6686_v23 = vld [vmem:[%s10302_s3 + $0x560] sm:$0xf0] }
 0x1d0   : > { %v5975_v34 = vor.u32 %v6686_v23, %v5974_v4  ;;  %v6682_v4 = vld [vmem:[%s10302_s3 + $0x544] sm:$0xf]  ;;  %v6187_v23 = vor.u32 %v6737_v14, %v6186_v54  ;;  %v6158_v14 = vld [vmem:[%s10302_s3 + $0x6a8] sm:$0xf] }
 0x1d1   : > { %v4136_v51 = vpop.f32.mrf.mxu0  ;;  %4389 = vmatmul.bf16.gmra.mxu1 %v7832_v24  ;;  %v4135_v22 = vadd.f32 %v4134_v41, %v4106_v48  ;;  %v8734_v25 = vadd.f32 %v4187_v17, %v4159_v9  ;;  %v6150_v41 = vld [vmem:[%s10302_s3 + $0x6a0] sm:$0xf] }
 0x1d2   : > { %4498 = vmatpush.bf16.xpose.msrb.mxu1 %v5999_v15  ;;  %v6151_v28 = vor.u32 %v6729_v43, %v6150_v41  ;;  %v5968_v15 = vld [vmem:[%s10302_s3 + $0x55c] sm:$0xf0]  ;;  %v3828_v0 = vsel %vm3721_vm2, %v6187_v23, 0  ;;  %v6180_v23 = vld [vmem:[%s10302_s3 + $0x6f4] sm:$0xf0] }
 0x1d3   : > { %4528 = vmatpush.bf16.xpose.msra.mxu2 %v5975_v34 }
 0x1d5   : > { %v4189_v17 = vpop.f32.mrf.mxu2  ;;  %4551 = vmatpush.bf16.xpose.msra.mxu3 %v6147_v13  ;;  %4580 = vmatpush.bf16.xpose.msra.mxu0 %v6151_v28  ;;  %v6116_v13 = vld [vmem:[%s10302_s3 + $0x67c] sm:$0xf0]  ;;  %v6722_v28 = vld [vmem:[%s10302_s3 + $0x680] sm:$0xf0] }
 0x1d6   : > { %v4107_v38 = vpop.f32.mrf.mxu3  ;;  %v4160_v21 = vpop.f32.mrf.mxu1  ;;  %v6119_v43 = vor.u32 %v6718_v8, %v6116_v13 }
 0x1d7   : > { %v4108_v48 = vadd.f32 %v4107_v38, %v8541_v32  ;;  %v4161_v9 = vadd.f32 %v4160_v21, %v4132_v36  ;;  %v5971_v36 = vor.u32 %v6682_v4, %v5968_v15  ;;  %v6730_v4 = vld [vmem:[%s10302_s3 + $0x6c0] sm:$0xf0]  ;;  %v6733_v15 = vld [vmem:[%s10302_s3 + $0x6dc] sm:$0xf] }
 0x1d9   : > { %v4139_v34 = vpop.f32.mrf.mxu0  ;;  %v4137_v32 = vadd.f32 %v4136_v51, %v4108_v48  ;;  %v8769_v41 = vadd.f32 %v4189_v17, %v4161_v9  ;;  %v6122_v51 = vld [vmem:[%s10302_s3 + $0x668] sm:$0xf] }
 0x1da   : > { %4423 = vmatmul.bf16.gmra.mxu2 %v7910_v37  ;;  %4499 = vmatpush.bf16.xpose.msrb.mxu1 %v5971_v36  ;;  %v6123_v38 = vor.u32 %v6722_v28, %v6122_v51  ;;  %v6159_v36 = vor.u32 %v6730_v4, %v6158_v14  ;;  %v6088_v51 = vld [vmem:[%s10302_s3 + $0x644] sm:$0xf0]  ;;  %v6130_v4 = vld [vmem:[%s10302_s3 + $0x670] sm:$0xf] }
 0x1db   : > { %4341 = vmatmul.bf16.gmra.mxu3 %v7792_v39  ;;  %4637 = vmatpush.bf16.xpose.msrb.mxu2 %v3828_v0 }
 0x1dc   : > { %4370 = vmatmul.bf16.gmra.mxu0 %v7757_v5  ;;  %v3825_v13 = vsel %vm3721_vm2, %v6159_v36, 0  ;;  %v6152_v36 = vld [vmem:[%s10302_s3 + $0x6bc] sm:$0xf0] }
 0x1dd   : > { %v4192_v21 = vpop.f32.mrf.mxu2  ;;  %4552 = vmatpush.bf16.xpose.msra.mxu3 %v6119_v43  ;;  %4581 = vmatpush.bf16.xpose.msra.mxu0 %v6123_v38  ;;  %v6711_v43 = vld [vmem:[%s10302_s3 + $0x62c] sm:$0xf]  ;;  %v6094_v38 = vld [vmem:[%s10302_s3 + $0x630] sm:$0xf] }
 0x1de   : > { %v4110_v17 = vpop.f32.mrf.mxu3  ;;  %v4163_v48 = vpop.f32.mrf.mxu1  ;;  %v6091_v28 = vor.u32 %v6711_v43, %v6088_v51 }
 0x1df   : > { %v4111_v9 = vadd.f32 %v4110_v17, %v8583_v11  ;;  %v4164_v54 = vadd.f32 %v4163_v48, %v4135_v22  ;;  %v6183_v22 = vor.u32 %v6733_v15, %v6180_v23  ;;  %v6723_v15 = vld [vmem:[%s10302_s3 + $0x688] sm:$0xf0]  ;;  %v6726_v23 = vld [vmem:[%s10302_s3 + $0x6a4] sm:$0xf] }
 0x1e1   : > { %v4141_v0 = vpop.f32.mrf.mxu0  ;;  %4394 = vmatmul.bf16.gmra.mxu1 %v7898_v35  ;;  %v4140_v11 = vadd.f32 %v4139_v34, %v4111_v9  ;;  %v8793_v8 = vadd.f32 %v4192_v21, %v4164_v54  ;;  %v6715_v34 = vld [vmem:[%s10302_s3 + $0x648] sm:$0xf0] }
 0x1e2   : > { %4608 = vmatpush.bf16.xpose.msra.mxu1 %v6183_v22  ;;  %v6095_v21 = vor.u32 %v6715_v34, %v6094_v38  ;;  %v6131_v22 = vor.u32 %v6723_v15, %v6130_v4  ;;  %v6060_v38 = vld [vmem:[%s10302_s3 + $0x60c] sm:$0xf0]  ;;  %v6066_v34 = vld [vmem:[%s10302_s3 + $0x5f8] sm:$0xf] }
 0x1e3   : > { %4638 = vmatpush.bf16.xpose.msrb.mxu2 %v3825_v13 }
 0x1e4   : > { %v3822_v51 = vsel %vm3721_vm2, %v6131_v22, 0 }
 0x1e5   : > { %v4194_v17 = vpop.f32.mrf.mxu2  ;;  %4553 = vmatpush.bf16.xpose.msra.mxu3 %v6091_v28  ;;  %4582 = vmatpush.bf16.xpose.msra.mxu0 %v6095_v21  ;;  %v6704_v28 = vld [vmem:[%s10302_s3 + $0x5f4] sm:$0xf] }
 0x1e6   : > { %v4112_v48 = vpop.f32.mrf.mxu3  ;;  %v4165_v9 = vpop.f32.mrf.mxu1  ;;  %v6708_v21 = vld [vmem:[%s10302_s3 + $0x610] sm:$0xf0] }
 0x1e7   : > { %v4113_v54 = vadd.f32 %v4112_v48, %v8621_v62  ;;  %v4166_v14 = vadd.f32 %v4165_v9, %v4137_v32  ;;  %v6155_v32 = vor.u32 %v6726_v23, %v6152_v36  ;;  %v6067_v48 = vor.u32 %v6708_v21, %v6066_v34  ;;  %v6102_v23 = vld [vmem:[%s10302_s3 + $0x638] sm:$0xf]  ;;  %v6716_v36 = vld [vmem:[%s10302_s3 + $0x650] sm:$0xf0] }
 0x1e9   : > { %v4240_v13 = vpop.f32.mrf.mxu0  ;;  %v4142_v62 = vadd.f32 %v4141_v0, %v4113_v54  ;;  %v8821_v43 = vadd.f32 %v4194_v17, %v4166_v14  ;;  %v6063_v0 = vor.u32 %v6704_v28, %v6060_v38  ;;  %v8841_v17 = vadd.s32 128, %v8316_v19 }
 0x1ea   : > { %4428 = vmatmul.bf16.gmra.mxu2 %v7980_v52  ;;  %4609 = vmatpush.bf16.xpose.msra.mxu1 %v6155_v32  ;;  %v6719_v32 = vld [vmem:[%s10302_s3 + $0x66c] sm:$0xf] }
 0x1eb   : > { %6420 = vmatmul.msk.bf16.vlgmr.msrb.gmra.mxu3 %vm3721_vm2, %v7859_v50  ;;  %4639 = vmatpush.bf16.xpose.msrb.mxu2 %v3822_v51  ;;  %v615_v22 = vsub.s32 %v8841_v17, %v8308_v18  ;;  %v620_v38 = vsub.s32 %v8841_v17, %v8338_v47 }
 0x1ec   : > { %4471 = vmatmul.bf16.vlgmr.msrb.gmra.mxu0 %v7476_v59 }
 0x1ed   : > { %v4197_v9 = vpop.f32.mrf.mxu2  ;;  %4554 = vmatpush.bf16.xpose.msra.mxu3 %v6063_v0  ;;  %4583 = vmatpush.bf16.xpose.msra.mxu0 %v6067_v48  ;;  %v6697_v48 = vld [vmem:[%s10302_s3 + $0x5bc] sm:$0xf]  ;;  %vm775_vm12 = vcmp.eq.s32.totalorder %v615_v22, 128  ;;  %vm855_vm13 = vcmp.eq.s32.totalorder %v615_v22, 192  ;;  %vm780_vm14 = vcmp.eq.s32.totalorder %v620_v38, 128  ;;  %vm860_vm15 = vcmp.eq.s32.totalorder %v620_v38, 192 }
 0x1ee   : > { %v4168_v54 = vpop.f32.mrf.mxu1  ;;  %v4211_v14 = vpop.f32.mrf.mxu3  ;;  %vm8876_vm0 = vmor %vm775_vm12, %vm855_vm13  ;;  %v6074_v22 = vld [vmem:[%s10302_s3 + $0x600] sm:$0xf] }
 0x1ef   : > { %v4169_v4 = vadd.f32 %v4168_v54, %v4140_v11  ;;  %v4212_v15 = vadd.f32 %v4211_v14, %v8678_v2  ;;  %v6124_v11 = vld [vmem:[%s10302_s3 + $0x684] sm:$0xf0]  ;;  %v6103_v2 = vor.u32 %v6716_v36, %v6102_v23  ;;  %v6032_v54 = vld [vmem:[%s10302_s3 + $0x5d4] sm:$0xf0]  ;;  %v6038_v14 = vld [vmem:[%s10302_s3 + $0x5c0] sm:$0xf] }
 0x1f0   : > { %v6127_v0 = vor.u32 %v6719_v32, %v6124_v11  ;;  %vm8887_vm1 = vmor %vm780_vm14, %vm860_vm15 }
 0x1f1   : > { %v4241_v51 = vadd.f32 %v4240_v13, %v4212_v15  ;;  %v4242_v28 = vpop.f32.mrf.mxu0  ;;  %4399 = vmatmul.bf16.gmra.mxu1 %v7968_v60  ;;  %v8861_v34 = vadd.f32 %v4197_v9, %v4169_v4  ;;  %v3819_v21 = vsel %vm3721_vm2, %v6103_v2, 0  ;;  %v6035_v13 = vor.u32 %v6697_v48, %v6032_v54  ;;  %v6701_v9 = vld [vmem:[%s10302_s3 + $0x5d8] sm:$0xf0] }
 0x1f2   : > { %4610 = vmatpush.bf16.xpose.msra.mxu1 %v6127_v0  ;;  %v6039_v4 = vor.u32 %v6701_v9, %v6038_v14  ;;  %v6709_v0 = vld [vmem:[%s10302_s3 + $0x618] sm:$0xf0] }
 0x1f3   : > { %4640 = vmatpush.bf16.xpose.msrb.mxu2 %v3819_v21  ;;  %v6712_v21 = vld [vmem:[%s10302_s3 + $0x634] sm:$0xf] }
 0x1f5   : > { %v4199_v15 = vpop.f32.mrf.mxu2  ;;  %4555 = vmatpush.bf16.xpose.msra.mxu3 %v6035_v13  ;;  %4584 = vmatpush.bf16.xpose.msra.mxu0 %v6039_v4  ;;  %v625_v13 = vsub.s32 %v8841_v17, %v8375_v42 }
 0x1f6   : > { %v4170_v23 = vpop.f32.mrf.mxu1  ;;  %v4213_v36 = vpop.f32.mrf.mxu3 }
 0x1f7   : > { %v4171_v11 = vadd.f32 %v4170_v23, %v4142_v62  ;;  %v4214_v2 = vadd.f32 %v4213_v36, %v8703_v6  ;;  %v6096_v6 = vld [vmem:[%s10302_s3 + $0x64c] sm:$0xf0]  ;;  %v6075_v62 = vor.u32 %v6709_v0, %v6074_v22  ;;  %v6690_v23 = vld [vmem:[%s10302_s3 + $0x584] sm:$0xf]  ;;  %v6004_v36 = vld [vmem:[%s10302_s3 + $0x59c] sm:$0xf0] }
 0x1f8   : > { %v6099_v14 = vor.u32 %v6712_v21, %v6096_v6  ;;  %v6694_v22 = vld [vmem:[%s10302_s3 + $0x5a0] sm:$0xf0]  ;;  %vm785_vm3 = vcmp.eq.s32.totalorder %v625_v13, 128  ;;  %vm865_vm4 = vcmp.eq.s32.totalorder %v625_v13, 192  ;;  %v6705_v13 = vld [vmem:[%s10302_s3 + $0x5fc] sm:$0xf] }
 0x1f9   : > { %v4243_v48 = vadd.f32 %v4242_v28, %v4214_v2  ;;  %v4245_v54 = vpop.f32.mrf.mxu0  ;;  %v8899_v9 = vadd.f32 %v4199_v15, %v4171_v11  ;;  %v3816_v4 = vsel %vm3721_vm2, %v6075_v62, 0  ;;  %v4870_v28 = vsel %vm8876_vm0, %v4241_v51, 0.0  ;;  %v6010_v11 = vld [vmem:[%s10302_s3 + $0x588] sm:$0xf]  ;;  %vm8931_vm5 = vmor %vm785_vm3, %vm865_vm4 }
 0x1fa   : > { %4529 = vmatmul.bf16.vlgmr.msra.gmra.mxu2 %v7570_v10  ;;  %4611 = vmatpush.bf16.xpose.msra.mxu1 %v6099_v14  ;;  %v6007_v15 = vor.u32 %v6690_v23, %v6004_v36  ;;  %v6011_v51 = vor.u32 %v6694_v22, %v6010_v11  ;;  %v6702_v14 = vld [vmem:[%s10302_s3 + $0x5e0] sm:$0xf0]  ;;  %v6683_v22 = vld [vmem:[%s10302_s3 + $0x54c] sm:$0xf] }
 0x1fb   : > { %v4875_v2 = vsel %vm8887_vm1, %v4243_v48, 0.0  ;;  %6421 = vmatmul.msk.bf16.gmra.mxu3 %vm3721_vm2, %v7926_v63  ;;  %4641 = vmatpush.bf16.xpose.msrb.mxu2 %v3816_v4  ;;  %v6046_v48 = vld [vmem:[%s10302_s3 + $0x5c8] sm:$0xf] }
 0x1fc   : > { %v4922_v0 = vadd.f32 %v4875_v2, %v4870_v28  ;;  %4476 = vmatmul.bf16.gmra.mxu0 %v7549_v53  ;;  %v6047_v23 = vor.u32 %v6702_v14, %v6046_v48  ;;  %v630_v2 = vsub.s32 %v8841_v17, %v8417_v7 }
 0x1fd   : > { %v4298_v32 = vpop.f32.mrf.mxu2  ;;  %4556 = vmatpush.bf16.xpose.msra.mxu3 %v6007_v15  ;;  %4585 = vmatpush.bf16.xpose.msra.mxu0 %v6011_v51  ;;  %v5976_v51 = vld [vmem:[%s10302_s3 + $0x564] sm:$0xf0] }
 0x1fe   : > { %v4216_v38 = vpop.f32.mrf.mxu3  ;;  %v4269_v21 = vpop.f32.mrf.mxu1  ;;  %v3813_v11 = vsel %vm3721_vm2, %v6047_v23, 0  ;;  %vm790_vm6 = vcmp.eq.s32.totalorder %v630_v2, 128  ;;  %vm870_vm7 = vcmp.eq.s32.totalorder %v630_v2, 192  ;;  %v6698_v2 = vld [vmem:[%s10302_s3 + $0x5c4] sm:$0xf] }
 0x1ff   : > { %v4217_v6 = vadd.f32 %v4216_v38, %v8734_v25  ;;  %v8923_v62 = vadd.f32 %v4298_v32, %v4269_v21  ;;  %v6068_v25 = vld [vmem:[%s10302_s3 + $0x614] sm:$0xf0]  ;;  %v5979_v32 = vor.u32 %v6683_v22, %v5976_v51  ;;  %v5982_v38 = vld [vmem:[%s10302_s3 + $0x550] sm:$0xf]  ;;  %v6687_v21 = vld [vmem:[%s10302_s3 + $0x568] sm:$0xf0] }
 0x200   : > { %v6071_v15 = vor.u32 %v6705_v13, %v6068_v25  ;;  %v5983_v48 = vor.u32 %v6687_v21, %v5982_v38  ;;  %vm8968_vm8 = vmor %vm790_vm6, %vm870_vm7  ;;  %v6386_v21 = vld [vmem:[%s10302_s3 + $0x888] sm:$0xf] }
 0x201   : > { %v4246_v36 = vadd.f32 %v4245_v54, %v4217_v6  ;;  %v4247_v28 = vpop.f32.mrf.mxu0  ;;  %4500 = vmatmul.bf16.vlgmr.msrb.gmra.mxu1 %v7480_v61 }
 0x202   : > { %4612 = vmatpush.bf16.xpose.msra.mxu1 %v6071_v15 }
 0x203   : > { %v4880_v54 = vsel %vm8931_vm5, %v4246_v36, 0.0  ;;  %4642 = vmatpush.bf16.xpose.msrb.mxu2 %v3813_v11  ;;  %v6018_v36 = vld [vmem:[%s10302_s3 + $0x590] sm:$0xf] }
 0x204   : > { %v4923_v6 = vadd.f32 %v4922_v0, %v4880_v54  ;;  %v6695_v0 = vld [vmem:[%s10302_s3 + $0x5a8] sm:$0xf0]  ;;  %v635_v54 = vsub.s32 %v8841_v17, %v8459_v40 }
 0x205   : > { %v4300_v14 = vpop.f32.mrf.mxu2  ;;  %4557 = vmatpush.bf16.xpose.msra.mxu3 %v5979_v32  ;;  %4586 = vmatpush.bf16.xpose.msra.mxu0 %v5983_v48  ;;  %v6019_v11 = vor.u32 %v6695_v0, %v6018_v36  ;;  %v6790_v48 = vld [vmem:[%s10302_s3 + $0x8a0] sm:$0xf0] }
 0x206   : > { %v4218_v13 = vpop.f32.mrf.mxu3  ;;  %v4271_v4 = vpop.f32.mrf.mxu1  ;;  %vm795_vm9 = vcmp.eq.s32.totalorder %v635_v54, 128  ;;  %vm875_vm10 = vcmp.eq.s32.totalorder %v635_v54, 192  ;;  %v640_v54 = vsub.s32 %v8841_v17, %v8494_v30 }
 0x207   : > { %v4219_v25 = vadd.f32 %v4218_v13, %v8769_v41  ;;  %v8960_v23 = vadd.f32 %v4300_v14, %v4271_v4  ;;  %v6040_v41 = vld [vmem:[%s10302_s3 + $0x5dc] sm:$0xf0]  ;;  %v3810_v38 = vsel %vm3721_vm2, %v6019_v11, 0  ;;  %v6387_v14 = vor.u32 %v6790_v48, %v6386_v21  ;;  %v6787_v13 = vld [vmem:[%s10302_s3 + $0x88c] sm:$0xf]  ;;  %vm9008_vm11 = vmor %vm795_vm9, %vm875_vm10 }
 0x208   : > { %v6043_v32 = vor.u32 %v6698_v2, %v6040_v41  ;;  %v6388_v4 = vld [vmem:[%s10302_s3 + $0x8a4] sm:$0xf0]  ;;  %vm800_vm12 = vcmp.eq.s32.totalorder %v640_v54, 128  ;;  %vm880_vm13 = vcmp.eq.s32.totalorder %v640_v54, 192  ;;  %v6684_v54 = vld [vmem:[%s10302_s3 + $0x554] sm:$0xf] }
 0x209   : > { %v4248_v22 = vadd.f32 %v4247_v28, %v4219_v25  ;;  %v4250_v51 = vpop.f32.mrf.mxu0  ;;  %v6391_v36 = vor.u32 %v6787_v13, %v6388_v4  ;;  %v6358_v4 = vld [vmem:[%s10302_s3 + $0x850] sm:$0xf]  ;;  %vm9036_vm14 = vmor %vm800_vm12, %vm880_vm13 }
 0x20a   : > { %4534 = vmatmul.bf16.gmra.mxu2 %v7646_v16  ;;  %4613 = vmatpush.bf16.xpose.msra.mxu1 %v6043_v32 }
 0x20b   : > { %v4885_v28 = vsel %vm8968_vm8, %v4248_v22, 0.0  ;;  %6422 = vmatmul.msk.bf16.gmra.mxu3 %vm3721_vm2, %v7993_v45  ;;  %4643 = vmatpush.bf16.xpose.msrb.mxu2 %v3810_v38  ;;  %v5990_v22 = vld [vmem:[%s10302_s3 + $0x558] sm:$0xf]  ;;  %v6012_v38 = vld [vmem:[%s10302_s3 + $0x5a4] sm:$0xf0] }
 0x20c   : > { %v4924_v25 = vadd.f32 %v4923_v6, %v4885_v28  ;;  %4481 = vmatmul.bf16.gmra.mxu0 %v7621_v26  ;;  %v6688_v6 = vld [vmem:[%s10302_s3 + $0x570] sm:$0xf0] }
 0x20d   : > { %v4303_v0 = vpop.f32.mrf.mxu2  ;;  %4666 = vmatpush.bf16.xpose.msrb.mxu3 %v6387_v14  ;;  %4695 = vmatpush.bf16.xpose.msrb.mxu0 %v6391_v36  ;;  %v5991_v21 = vor.u32 %v6688_v6, %v5990_v22  ;;  %v6783_v36 = vld [vmem:[%s10302_s3 + $0x868] sm:$0xf0] }
 0x20e   : > { %v4221_v15 = vpop.f32.mrf.mxu3  ;;  %v4274_v2 = vpop.f32.mrf.mxu1 }
 0x20f   : > { %v4222_v41 = vadd.f32 %v4221_v15, %v8793_v8  ;;  %v9000_v11 = vadd.f32 %v4303_v0, %v4274_v2  ;;  %v6691_v8 = vld [vmem:[%s10302_s3 + $0x58c] sm:$0xf]  ;;  %v3807_v13 = vsel %vm3721_vm2, %v5991_v21, 0  ;;  %v6359_v15 = vor.u32 %v6783_v36, %v6358_v4  ;;  %v6360_v2 = vld [vmem:[%s10302_s3 + $0x86c] sm:$0xf0] }
 0x210   : > { %v6015_v14 = vor.u32 %v6691_v8, %v6012_v38 }
 0x211   : > { %v4251_v48 = vadd.f32 %v4250_v51, %v4222_v41  ;;  %v4252_v28 = vpop.f32.mrf.mxu0  ;;  %4505 = vmatmul.bf16.gmra.mxu1 %v7551_v55  ;;  %v6780_v51 = vld [vmem:[%s10302_s3 + $0x854] sm:$0xf] }
 0x212   : > { %4614 = vmatpush.bf16.xpose.msra.mxu1 %v6015_v14  ;;  %v6363_v22 = vor.u32 %v6780_v51, %v6360_v2  ;;  %v5984_v14 = vld [vmem:[%s10302_s3 + $0x56c] sm:$0xf0]  ;;  %v6330_v51 = vld [vmem:[%s10302_s3 + $0x818] sm:$0xf]  ;;  %v6776_v2 = vld [vmem:[%s10302_s3 + $0x830] sm:$0xf0] }
 0x213   : > { %v4890_v0 = vsel %vm9008_vm11, %v4251_v48, 0.0  ;;  %4644 = vmatpush.bf16.xpose.msrb.mxu2 %v3807_v13  ;;  %v6788_v13 = vld [vmem:[%s10302_s3 + $0x894] sm:$0xf] }
 0x214   : > { %v4925_v41 = vadd.f32 %v4924_v25, %v4890_v0  ;;  %v645_v25 = vsub.s32 %v8841_v17, %v8524_v56  ;;  %v6396_v0 = vld [vmem:[%s10302_s3 + $0x8ac] sm:$0xf0] }
 0x215   : > { %v4305_v6 = vpop.f32.mrf.mxu2  ;;  %4667 = vmatpush.bf16.xpose.msrb.mxu3 %v6359_v15  ;;  %4696 = vmatpush.bf16.xpose.msrb.mxu0 %v6363_v22  ;;  %v6399_v15 = vor.u32 %v6788_v13, %v6396_v0  ;;  %v6791_v0 = vld [vmem:[%s10302_s3 + $0x8a8] sm:$0xf0] }
 0x216   : > { %v4223_v8 = vpop.f32.mrf.mxu3  ;;  %v4276_v32 = vpop.f32.mrf.mxu1  ;;  %vm805_vm15 = vcmp.eq.s32.totalorder %v645_v25, 128  ;;  %vm885_vm0 = vcmp.eq.s32.totalorder %v645_v25, 192  ;;  %v6394_v25 = vld [vmem:[%s10302_s3 + $0x890] sm:$0xf] }
 0x217   : > { %v4224_v21 = vadd.f32 %v4223_v8, %v8821_v43  ;;  %v9041_v48 = vadd.f32 %v4305_v6, %v4276_v32  ;;  %v5987_v43 = vor.u32 %v6684_v54, %v5984_v14  ;;  %v6331_v6 = vor.u32 %v6776_v2, %v6330_v51  ;;  %v6332_v8 = vld [vmem:[%s10302_s3 + $0x834] sm:$0xf0]  ;;  %vm9075_vm1 = vmor %vm805_vm15, %vm885_vm0 }
 0x219   : > { %v4253_v4 = vadd.f32 %v4252_v28, %v4224_v21  ;;  %v4255_v36 = vpop.f32.mrf.mxu0  ;;  %v6773_v28 = vld [vmem:[%s10302_s3 + $0x81c] sm:$0xf] }
 0x21a   : > { %4539 = vmatmul.bf16.gmra.mxu2 %v7723_v31  ;;  %4615 = vmatpush.bf16.xpose.msra.mxu1 %v5987_v43  ;;  %v6335_v21 = vor.u32 %v6773_v28, %v6332_v8 }
 0x21b   : > { %v4895_v22 = vsel %vm9036_vm14, %v4253_v4, 0.0  ;;  %6423 = vmatmul.msk.bf16.gmra.mxu3 %vm3721_vm2, %v8052_v3  ;;  %4753 = vmatpush.bf16.xpose.msra.mxu2 %v6399_v15  ;;  %v6781_v15 = vld [vmem:[%s10302_s3 + $0x85c] sm:$0xf] }
 0x21c   : > { %v4926_v32 = vadd.f32 %v4925_v41, %v4895_v22  ;;  %4486 = vmatmul.bf16.gmra.mxu0 %v7699_v1  ;;  %v650_v41 = vsub.s32 %v8841_v17, %v8580_v44  ;;  %v6368_v17 = vld [vmem:[%s10302_s3 + $0x874] sm:$0xf0]  ;;  %v6302_v22 = vld [vmem:[%s10302_s3 + $0x7e0] sm:$0xf] }
 0x21d   : > { %v4308_v54 = vpop.f32.mrf.mxu2  ;;  %4668 = vmatpush.bf16.xpose.msrb.mxu3 %v6331_v6  ;;  %4697 = vmatpush.bf16.xpose.msrb.mxu0 %v6335_v21  ;;  %v6371_v28 = vor.u32 %v6781_v15, %v6368_v17  ;;  %v6769_v6 = vld [vmem:[%s10302_s3 + $0x7f8] sm:$0xf0] }
 0x21e   : > { %v4226_v38 = vpop.f32.mrf.mxu3  ;;  %v4279_v14 = vpop.f32.mrf.mxu1  ;;  %v6303_v21 = vor.u32 %v6769_v6, %v6302_v22  ;;  %vm810_vm3 = vcmp.eq.s32.totalorder %v650_v41, 128  ;;  %vm890_vm4 = vcmp.eq.s32.totalorder %v650_v41, 192  ;;  %v6784_v41 = vld [vmem:[%s10302_s3 + $0x870] sm:$0xf0] }
 0x21f   : > { %v4227_v4 = vadd.f32 %v4226_v38, %v8861_v34  ;;  %v9080_v43 = vadd.f32 %v4308_v54, %v4279_v14  ;;  %v6395_v34 = vor.u32 %v6791_v0, %v6394_v25  ;;  %v6304_v54 = vld [vmem:[%s10302_s3 + $0x7fc] sm:$0xf0]  ;;  %vm9111_vm5 = vmor %vm810_vm3, %vm890_vm4 }
 0x221   : > { %v4256_v51 = vadd.f32 %v4255_v36, %v4227_v4  ;;  %v4257_v2 = vpop.f32.mrf.mxu0  ;;  %4510 = vmatmul.bf16.gmra.mxu1 %v7623_v58  ;;  %v6766_v36 = vld [vmem:[%s10302_s3 + $0x7e4] sm:$0xf] }
 0x222   : > { %4724 = vmatpush.bf16.xpose.msrb.mxu1 %v6395_v34  ;;  %v6307_v14 = vor.u32 %v6766_v36, %v6304_v54  ;;  %v6774_v34 = vld [vmem:[%s10302_s3 + $0x824] sm:$0xf]  ;;  %v6274_v36 = vld [vmem:[%s10302_s3 + $0x7a8] sm:$0xf] }
 0x223   : > { %v4900_v8 = vsel %vm9075_vm1, %v4256_v51, 0.0  ;;  %4754 = vmatpush.bf16.xpose.msra.mxu2 %v6371_v28 }
 0x224   : > { %v4927_v38 = vadd.f32 %v4926_v32, %v4900_v8  ;;  %v6366_v32 = vld [vmem:[%s10302_s3 + $0x858] sm:$0xf]  ;;  %v6762_v8 = vld [vmem:[%s10302_s3 + $0x7c0] sm:$0xf0] }
 0x225   : > { %v4310_v4 = vpop.f32.mrf.mxu2  ;;  %4669 = vmatpush.bf16.xpose.msrb.mxu3 %v6303_v21  ;;  %4698 = vmatpush.bf16.xpose.msrb.mxu0 %v6307_v14  ;;  %v6367_v22 = vor.u32 %v6784_v41, %v6366_v32  ;;  %v6275_v54 = vor.u32 %v6762_v8, %v6274_v36  ;;  %v6276_v14 = vld [vmem:[%s10302_s3 + $0x7c4] sm:$0xf0]  ;;  %v6246_v8 = vld [vmem:[%s10302_s3 + $0x770] sm:$0xf] }
 0x226   : > { %v4228_v25 = vpop.f32.mrf.mxu3  ;;  %v4281_v0 = vpop.f32.mrf.mxu1 }
 0x227   : > { %v4229_v13 = vadd.f32 %v4228_v25, %v8899_v9  ;;  %v9116_v51 = vadd.f32 %v4310_v4, %v4281_v0  ;;  %v6340_v9 = vld [vmem:[%s10302_s3 + $0x83c] sm:$0xf0] }
 0x228   : > { %v6343_v6 = vor.u32 %v6774_v34, %v6340_v9  ;;  %v6338_v34 = vld [vmem:[%s10302_s3 + $0x820] sm:$0xf] }
 0x229   : > { %v4258_v17 = vadd.f32 %v4257_v2, %v4229_v13  ;;  %v4356_v28 = vpop.f32.mrf.mxu0  ;;  %v6759_v2 = vld [vmem:[%s10302_s3 + $0x7ac] sm:$0xf] }
 0x22a   : > { %4544 = vmatmul.bf16.gmra.mxu2 %v7792_v39  ;;  %4725 = vmatpush.bf16.xpose.msrb.mxu1 %v6367_v22  ;;  %v6279_v25 = vor.u32 %v6759_v2, %v6276_v14  ;;  %v6755_v2 = vld [vmem:[%s10302_s3 + $0x788] sm:$0xf0] }
 0x22b   : > { %v4905_v21 = vsel %vm9111_vm5, %v4258_v17, 0.0  ;;  %4558 = vmatmul.bf16.vlgmr.msra.gmra.mxu3 %v7538_v46  ;;  %4755 = vmatpush.bf16.xpose.msra.mxu2 %v6343_v6  ;;  %v6767_v17 = vld [vmem:[%s10302_s3 + $0x7ec] sm:$0xf] }
 0x22c   : > { %v9146_v4 = vadd.f32 %v4927_v38, %v4905_v21  ;;  %4587 = vmatmul.bf16.vlgmr.msra.gmra.mxu0 %v7765_v12  ;;  %v6777_v38 = vld [vmem:[%s10302_s3 + $0x838] sm:$0xf0]  ;;  %v6247_v21 = vor.u32 %v6755_v2, %v6246_v8  ;;  %v6284_v8 = vld [vmem:[%s10302_s3 + $0x7cc] sm:$0xf0]  ;;  %v6218_v2 = vld [vmem:[%s10302_s3 + $0x738] sm:$0xf] }
 0x22d   : > { %v4313_v0 = vpop.f32.mrf.mxu2  ;;  %4670 = vmatpush.bf16.xpose.msrb.mxu3 %v6275_v54  ;;  %4699 = vmatpush.bf16.xpose.msrb.mxu0 %v6279_v25  ;;  %v6339_v6 = vor.u32 %v6777_v38, %v6338_v34  ;;  %v6248_v54 = vld [vmem:[%s10302_s3 + $0x78c] sm:$0xf0]  ;;  %v6310_v34 = vld [vmem:[%s10302_s3 + $0x7e8] sm:$0xf]  ;;  %v6770_v38 = vld [vmem:[%s10302_s3 + $0x800] sm:$0xf0] }
 0x22e   : > { %10348 = vst [vmem:[#allocation10_spill] sm:$0xff] %v9146_v4  ;;  %v4284_v13 = vpop.f32.mrf.mxu1  ;;  %v4327_v32 = vpop.f32.mrf.mxu3  ;;  %v6234_v4 = vld [vmem:[%s10302_s3 + $0x748] sm:$0xf] }
 0x22f   : > { %v9149_v15 = vadd.f32 %v4313_v0, %v4284_v13  ;;  %v4328_v41 = vadd.f32 %v4327_v32, %v8923_v62  ;;  %v6312_v62 = vld [vmem:[%s10302_s3 + $0x804] sm:$0xf0] }
 0x230   : > { %v6315_v36 = vor.u32 %v6767_v17, %v6312_v62  ;;  %v6760_v17 = vld [vmem:[%s10302_s3 + $0x7b4] sm:$0xf] }
 0x231   : > { %v4358_v22 = vpop.f32.mrf.mxu0  ;;  %4515 = vmatmul.bf16.gmra.mxu1 %v7702_v27  ;;  %v4357_v9 = vadd.f32 %v4356_v28, %v4328_v41  ;;  %v6752_v28 = vld [vmem:[%s10302_s3 + $0x774] sm:$0xf] }
 0x232   : > { %4726 = vmatpush.bf16.xpose.msrb.mxu1 %v6339_v6  ;;  %v6251_v14 = vor.u32 %v6752_v28, %v6248_v54  ;;  %v6220_v54 = vld [vmem:[%s10302_s3 + $0x754] sm:$0xf0] }
 0x233   : > { %4756 = vmatpush.bf16.xpose.msra.mxu2 %v6315_v36  ;;  %v6311_v36 = vor.u32 %v6770_v38, %v6310_v34  ;;  %v6282_v38 = vld [vmem:[%s10302_s3 + $0x7b0] sm:$0xf] }
 0x235   : > { %v4315_v25 = vpop.f32.mrf.mxu2  ;;  %4671 = vmatpush.bf16.xpose.msrb.mxu3 %v6247_v21  ;;  %4700 = vmatpush.bf16.xpose.msrb.mxu0 %v6251_v14  ;;  %v6748_v21 = vld [vmem:[%s10302_s3 + $0x750] sm:$0xf0] }
 0x236   : > { %v4286_v0 = vpop.f32.mrf.mxu1  ;;  %v4329_v13 = vpop.f32.mrf.mxu3  ;;  %v6219_v28 = vor.u32 %v6748_v21, %v6218_v2 }
 0x237   : > { %v9177_v32 = vadd.f32 %v4315_v25, %v4286_v0  ;;  %v4330_v41 = vadd.f32 %v4329_v13, %v8960_v23  ;;  %v6287_v23 = vor.u32 %v6760_v17, %v6284_v8  ;;  %v6763_v17 = vld [vmem:[%s10302_s3 + $0x7c8] sm:$0xf0] }
 0x238   : > { %v6283_v2 = vor.u32 %v6763_v17, %v6282_v38  ;;  %v6254_v17 = vld [vmem:[%s10302_s3 + $0x778] sm:$0xf] }
 0x239   : > { %v4361_v6 = vpop.f32.mrf.mxu0  ;;  %v4359_v62 = vadd.f32 %v4358_v22, %v4330_v41  ;;  %v6745_v22 = vld [vmem:[%s10302_s3 + $0x73c] sm:$0xf] }
 0x23a   : > { %6424 = vmatmul.msk.bf16.vlgmr.msrb.gmra.mxu2 %vm3721_vm2, %v7859_v50  ;;  %4727 = vmatpush.bf16.xpose.msrb.mxu1 %v6311_v36  ;;  %v6223_v14 = vor.u32 %v6745_v22, %v6220_v54  ;;  %v6753_v36 = vld [vmem:[%s10302_s3 + $0x77c] sm:$0xf]  ;;  %v6190_v22 = vld [vmem:[%s10302_s3 + $0x700] sm:$0xf] }
 0x23b   : > { %4563 = vmatmul.bf16.gmra.mxu3 %v7612_v49  ;;  %4757 = vmatpush.bf16.xpose.msra.mxu2 %v6287_v23 }
 0x23c   : > { %4592 = vmatmul.bf16.gmra.mxu0 %v7832_v24 }
 0x23d   : > { %v4414_v25 = vpop.f32.mrf.mxu2  ;;  %4672 = vmatpush.bf16.xpose.msrb.mxu3 %v6219_v28  ;;  %4701 = vmatpush.bf16.xpose.msrb.mxu0 %v6223_v14  ;;  %v6741_v28 = vld [vmem:[%s10302_s3 + $0x718] sm:$0xf0]  ;;  %v6192_v14 = vld [vmem:[%s10302_s3 + $0x71c] sm:$0xf0] }
 0x23e   : > { %v4332_v0 = vpop.f32.mrf.mxu3  ;;  %v4385_v13 = vpop.f32.mrf.mxu1  ;;  %v6191_v54 = vor.u32 %v6741_v28, %v6190_v22 }
 0x23f   : > { %v4333_v41 = vadd.f32 %v4332_v0, %v9000_v11  ;;  %v4386_v34 = vadd.f32 %v4385_v13, %v4357_v9  ;;  %v6256_v11 = vld [vmem:[%s10302_s3 + $0x794] sm:$0xf0] }
 0x240   : > { %v6259_v21 = vor.u32 %v6753_v36, %v6256_v11  ;;  %v6756_v36 = vld [vmem:[%s10302_s3 + $0x790] sm:$0xf0] }
 0x241   : > { %v4363_v8 = vpop.f32.mrf.mxu0  ;;  %4616 = vmatmul.bf16.vlgmr.msra.gmra.mxu1 %v7774_v20  ;;  %v4362_v23 = vadd.f32 %v4361_v6, %v4333_v41  ;;  %v9222_v9 = vadd.f32 %v4414_v25, %v4386_v34  ;;  %v6738_v6 = vld [vmem:[%s10302_s3 + $0x704] sm:$0xf]  ;;  %v6255_v22 = vor.u32 %v6756_v36, %v6254_v17  ;;  %v6226_v36 = vld [vmem:[%s10302_s3 + $0x740] sm:$0xf] }
 0x242   : > { %4728 = vmatpush.bf16.xpose.msrb.mxu1 %v6283_v2  ;;  %v6195_v25 = vor.u32 %v6738_v6, %v6192_v14  ;;  %v6746_v2 = vld [vmem:[%s10302_s3 + $0x744] sm:$0xf]  ;;  %v6402_v6 = vld [vmem:[%s10302_s3 + $0x898] sm:$0xf] }
 0x243   : > { %4758 = vmatpush.bf16.xpose.msra.mxu2 %v6259_v21 }
 0x245   : > { %v4416_v0 = vpop.f32.mrf.mxu2  ;;  %4673 = vmatpush.bf16.xpose.msrb.mxu3 %v6191_v54  ;;  %4702 = vmatpush.bf16.xpose.msrb.mxu0 %v6195_v25  ;;  %v6792_v54 = vld [vmem:[%s10302_s3 + $0x8b0] sm:$0xf0]  ;;  %v6404_v25 = vld [vmem:[%s10302_s3 + $0x8b4] sm:$0xf0] }
 0x246   : > { %v4334_v13 = vpop.f32.mrf.mxu3  ;;  %v4387_v41 = vpop.f32.mrf.mxu1  ;;  %v6403_v14 = vor.u32 %v6792_v54, %v6402_v6  ;;  %v6739_v6 = vld [vmem:[%s10302_s3 + $0x70c] sm:$0xf] }
 0x247   : > { %v4335_v34 = vadd.f32 %v4334_v13, %v9041_v48  ;;  %v4388_v38 = vadd.f32 %v4387_v41, %v4359_v62  ;;  %v6228_v48 = vld [vmem:[%s10302_s3 + $0x75c] sm:$0xf0] }
 0x248   : > { %v6231_v28 = vor.u32 %v6746_v2, %v6228_v48  ;;  %v6749_v2 = vld [vmem:[%s10302_s3 + $0x758] sm:$0xf0] }
 0x249   : > { %v4366_v11 = vpop.f32.mrf.mxu0  ;;  %v4364_v21 = vadd.f32 %v4363_v8, %v4335_v34  ;;  %v9249_v62 = vadd.f32 %v4416_v0, %v4388_v38  ;;  %v6789_v8 = vld [vmem:[%s10302_s3 + $0x89c] sm:$0xf] }
 0x24a   : > { %6425 = vmatmul.msk.bf16.gmra.mxu2 %vm3721_vm2, %v7926_v63  ;;  %4729 = vmatpush.bf16.xpose.msrb.mxu1 %v6255_v22  ;;  %v6407_v0 = vor.u32 %v6789_v8, %v6404_v25  ;;  %v6374_v8 = vld [vmem:[%s10302_s3 + $0x860] sm:$0xf] }
 0x24b   : > { %4568 = vmatmul.bf16.gmra.mxu3 %v7691_v57  ;;  %4759 = vmatpush.bf16.xpose.msra.mxu2 %v6231_v28  ;;  %v6227_v28 = vor.u32 %v6749_v2, %v6226_v36  ;;  %v6198_v2 = vld [vmem:[%s10302_s3 + $0x708] sm:$0xf] }
 0x24c   : > { %4597 = vmatmul.bf16.gmra.mxu0 %v7898_v35 }
 0x24d   : > { %v4419_v13 = vpop.f32.mrf.mxu2  ;;  %4782 = vmatpush.bf16.xpose.msra.mxu3 %v6403_v14  ;;  %4811 = vmatpush.bf16.xpose.msra.mxu0 %v6407_v0  ;;  %v6782_v14 = vld [vmem:[%s10302_s3 + $0x864] sm:$0xf]  ;;  %v6376_v0 = vld [vmem:[%s10302_s3 + $0x87c] sm:$0xf0] }
 0x24e   : > { %v4337_v41 = vpop.f32.mrf.mxu3  ;;  %v4390_v34 = vpop.f32.mrf.mxu1 }
 0x24f   : > { %v4338_v38 = vadd.f32 %v4337_v41, %v9080_v43  ;;  %v4391_v17 = vadd.f32 %v4390_v34, %v4362_v23  ;;  %v6200_v43 = vld [vmem:[%s10302_s3 + $0x724] sm:$0xf0] }
 0x250   : > { %v6203_v54 = vor.u32 %v6739_v6, %v6200_v43 }
 0x251   : > { %v4368_v22 = vpop.f32.mrf.mxu0  ;;  %4621 = vmatmul.bf16.gmra.mxu1 %v7841_v33  ;;  %v4367_v48 = vadd.f32 %v4366_v11, %v4338_v38  ;;  %v9281_v23 = vadd.f32 %v4419_v13, %v4391_v17  ;;  %v6785_v11 = vld [vmem:[%s10302_s3 + $0x878] sm:$0xf0]  ;;  %v6379_v13 = vor.u32 %v6782_v14, %v6376_v0  ;;  %v6348_v14 = vld [vmem:[%s10302_s3 + $0x844] sm:$0xf0] }
 0x252   : > { %4730 = vmatpush.bf16.xpose.msrb.mxu1 %v6227_v28  ;;  %v6375_v25 = vor.u32 %v6785_v11, %v6374_v8  ;;  %v6742_v28 = vld [vmem:[%s10302_s3 + $0x720] sm:$0xf0]  ;;  %v6775_v11 = vld [vmem:[%s10302_s3 + $0x82c] sm:$0xf] }
 0x253   : > { %4760 = vmatpush.bf16.xpose.msra.mxu2 %v6203_v54  ;;  %v6199_v54 = vor.u32 %v6742_v28, %v6198_v2  ;;  %v1421_v28 = vadd.s32 120, %v8308_v18 }
 0x255   : > { %v4421_v41 = vpop.f32.mrf.mxu2  ;;  %4783 = vmatpush.bf16.xpose.msra.mxu3 %v6375_v25  ;;  %4812 = vmatpush.bf16.xpose.msra.mxu0 %v6379_v13  ;;  %v6351_v25 = vor.u32 %v6775_v11, %v6348_v14  ;;  %v6771_v14 = vld [vmem:[%s10302_s3 + $0x808] sm:$0xf0] }
 0x256   : > { %v4339_v34 = vpop.f32.mrf.mxu3  ;;  %v4392_v38 = vpop.f32.mrf.mxu1 }
 0x257   : > { %v4340_v17 = vadd.f32 %v4339_v34, %v9116_v51  ;;  %v4393_v36 = vadd.f32 %v4392_v38, %v4364_v21  ;;  %v6346_v51 = vld [vmem:[%s10302_s3 + $0x828] sm:$0xf]  ;;  %v6778_v21 = vld [vmem:[%s10302_s3 + $0x840] sm:$0xf0]  ;;  %v1567_v34 = vadd.s32 1, %v8316_v19 }
 0x259   : > { %v9302_v6 = vpop.f32.mrf.mxu0  ;;  %v4369_v43 = vadd.f32 %v4368_v22, %v4340_v17  ;;  %v9304_v8 = vadd.f32 %v4421_v41, %v4393_v36  ;;  %v6347_v22 = vor.u32 %v6778_v21, %v6346_v51  ;;  %v6410_v17 = vld [vmem:[%s10302_s3 + $0x8a0] sm:$0xf]  ;;  %v6793_v36 = vld [vmem:[%s10302_s3 + $0x8b8] sm:$0xf0]  ;;  %v9335_v51 = vmul.u32 64, %v1567_v34 }
 0x25a   : > { %6426 = vmatmul.msk.bf16.gmra.mxu2 %vm3721_vm2, %v7993_v45  ;;  %4731 = vmatpush.bf16.xpose.msrb.mxu1 %v6199_v54  ;;  %v6411_v2 = vor.u32 %v6793_v36, %v6410_v17  ;;  %v9333_v54 = vmul.u32 64, %v8316_v19  ;;  %v1420_v34 = vadd.s32 112, %v8308_v18  ;;  %v1419_v36 = vadd.s32 104, %v8308_v18 }
 0x25b   : > { %4573 = vmatmul.bf16.gmra.mxu3 %v7757_v5  ;;  %vm1584_vm7 = vcmp.lt.s32.totalorder %v1421_v28, %v9335_v51 }
 0x25c   : > { %4602 = vmatmul.bf16.gmra.mxu0 %v7968_v60  ;;  %v3852_v11 = vsel %vm3721_vm2, %v6411_v2, 0  ;;  %vm1502_vm6 = vcmp.ge.s32.totalorder %v1421_v28, %v9333_v54  ;;  %vm1501_vm9 = vcmp.ge.s32.totalorder %v1420_v34, %v9333_v54  ;;  %vm1583_vm10 = vcmp.lt.s32.totalorder %v1420_v34, %v9335_v51  ;;  %v6264_v60 = vld [vmem:[%s10302_s3 + $0x79c] sm:$0xf0] }
 0x25d   : > { %v4424_v0 = vpop.f32.mrf.mxu2  ;;  %4784 = vmatpush.bf16.xpose.msra.mxu3 %v6347_v22  ;;  %4813 = vmatpush.bf16.xpose.msra.mxu0 %v6351_v25  ;;  %v6318_v22 = vld [vmem:[%s10302_s3 + $0x7f0] sm:$0xf]  ;;  %vm1664_vm8 = vmand %vm1502_vm6, %vm1584_vm7  ;;  %vm1500_vm12 = vcmp.ge.s32.totalorder %v1419_v36, %v9333_v54  ;;  %vm1582_vm13 = vcmp.lt.s32.totalorder %v1419_v36, %v9335_v51  ;;  %v1417_v34 = vadd.s32 88, %v8308_v18 }
 0x25e   : > { %v9322_v13 = vpop.f32.mrf.mxu3  ;;  %v4395_v41 = vpop.f32.mrf.mxu1  ;;  %v6319_v25 = vor.u32 %v6771_v14, %v6318_v22  ;;  %vm1663_vm11 = vmand %vm1501_vm9, %vm1583_vm10  ;;  %v1418_v22 = vadd.s32 96, %v8308_v18 }
 0x25f   : > { %v4396_v38 = vadd.f32 %v4395_v41, %v4367_v48  ;;  %v6320_v41 = vld [vmem:[%s10302_s3 + $0x80c] sm:$0xf0]  ;;  %vm1662_vm14 = vmand %vm1500_vm12, %vm1582_vm13  ;;  %vm1498_vm3 = vcmp.ge.s32.totalorder %v1417_v34, %v9333_v54  ;;  %vm1580_vm4 = vcmp.lt.s32.totalorder %v1417_v34, %v9335_v51  ;;  %v6761_v34 = vld [vmem:[%s10302_s3 + $0x7bc] sm:$0xf] }
 0x260   : > { %vm1499_vm15 = vcmp.ge.s32.totalorder %v1418_v22, %v9333_v54  ;;  %vm1581_vm0 = vcmp.lt.s32.totalorder %v1418_v22, %v9335_v51  ;;  %vm9402_vm5 = vmand %vm1498_vm3, %vm1580_vm4  ;;  %vm1576_vm3 = vcmp.lt.s32.totalorder %v8580_v44, %v9335_v51 }
 0x261   : > { %v9337_v21 = vpop.f32.mrf.mxu0  ;;  %4626 = vmatmul.bf16.gmra.mxu1 %v7910_v37  ;;  %v9340_v48 = vadd.f32 %v4424_v0, %v4396_v38  ;;  %v6768_v0 = vld [vmem:[%s10302_s3 + $0x7f4] sm:$0xf]  ;;  %v10305_v38 = vmov 1.0   ;;  %vm9383_vm1 = vmand %vm1499_vm15, %vm1581_vm0 }
 0x262   : > { %4840 = vmatpush.bf16.xpose.msra.mxu1 %v3852_v11  ;;  %6432 = vmatpush.msk.msrb.mxu2 %vm1664_vm8, %v10305_v38  ;;  %v6323_v17 = vor.u32 %v6768_v0, %v6320_v41  ;;  %v6786_v0 = vld [vmem:[%s10302_s3 + $0x880] sm:$0xf0] }
 0x264   : > { %6433 = vmatpush.msk.msrb.mxu2 %vm1663_vm11, %v10305_v38 }
 0x265   : > { %v4426_v2 = vpop.f32.mrf.mxu2  ;;  %4785 = vmatpush.bf16.xpose.msra.mxu3 %v6319_v25  ;;  %4814 = vmatpush.bf16.xpose.msra.mxu0 %v6323_v17  ;;  %v6382_v25 = vld [vmem:[%s10302_s3 + $0x868] sm:$0xf] }
 0x266   : > { %v9362_v28 = vpop.f32.mrf.mxu3  ;;  %v4397_v11 = vpop.f32.mrf.mxu1  ;;  %v6383_v41 = vor.u32 %v6786_v0, %v6382_v25  ;;  %6434 = vmatpush.msk.msrb.mxu2 %vm1662_vm14, %v10305_v38  ;;  %v6290_v25 = vld [vmem:[%s10302_s3 + $0x7b8] sm:$0xf]  ;;  %v6764_v0 = vld [vmem:[%s10302_s3 + $0x7d0] sm:$0xf0] }
 0x267   : > { %v4398_v14 = vadd.f32 %v4397_v11, %v4369_v43  ;;  %v9380_v43 = vadd.s32 256, %v8316_v19  ;;  %v6292_v38 = vld [vmem:[%s10302_s3 + $0x7d4] sm:$0xf0] }
 0x268   : > { %v3849_v22 = vsel %vm3721_vm2, %v6383_v41, 0  ;;  %v6291_v41 = vor.u32 %v6764_v0, %v6290_v25 }
 0x269   : > { %v9377_v17 = vpop.f32.mrf.mxu0  ;;  %v9387_v11 = vadd.f32 %v4426_v2, %v4398_v14  ;;  %v1416_v2 = vadd.s32 80, %v8308_v18  ;;  %v616_v0 = vsub.s32 %v9380_v43, %v8308_v18  ;;  %v621_v36 = vsub.s32 %v9380_v43, %v8338_v47  ;;  %v6779_v14 = vld [vmem:[%s10302_s3 + $0x848] sm:$0xf0] }
 0x26a   : > { %6427 = vmatmul.msk.bf16.gmra.mxu2 %vm3721_vm2, %v8052_v3  ;;  %4841 = vmatpush.bf16.xpose.msra.mxu1 %v3849_v22  ;;  %v10353_v3 = vmov 1.0   ;;  %v1415_v22 = vadd.s32 72, %v8308_v18 }
 0x26b   : > { %4674 = vmatmul.bf16.vlgmr.msrb.gmra.mxu3 %v7476_v59  ;;  %6435 = vmatpush.msk.msrb.mxu2 %vm9383_vm1, %v10353_v3  ;;  %v6295_v59 = vor.u32 %v6761_v34, %v6292_v38  ;;  %vm1497_vm6 = vcmp.ge.s32.totalorder %v1416_v2, %v9333_v54  ;;  %vm1579_vm7 = vcmp.lt.s32.totalorder %v1416_v2, %v9335_v51  ;;  %v1414_v38 = vadd.s32 64, %v8308_v18  ;;  %v6354_v2 = vld [vmem:[%s10302_s3 + $0x830] sm:$0xf] }
 0x26c   : > { %4703 = vmatmul.bf16.vlgmr.msrb.gmra.mxu0 %v7480_v61  ;;  %vm1659_vm8 = vmand %vm1497_vm6, %vm1579_vm7  ;;  %vm1496_vm9 = vcmp.ge.s32.totalorder %v1415_v22, %v9333_v54  ;;  %vm1578_vm10 = vcmp.lt.s32.totalorder %v1415_v22, %v9335_v51  ;;  %vm936_vm14 = vcmp.eq.s32.totalorder %v616_v0, 256  ;;  %vm1016_vm15 = vcmp.eq.s32.totalorder %v616_v0, 320 }
 0x26d   : > { %v9419_v25 = vpop.f32.mrf.mxu2  ;;  %4786 = vmatpush.bf16.xpose.msra.mxu3 %v6291_v41  ;;  %6436 = vmatpush.msk.msrb.mxu2 %vm9402_vm5, %v10353_v3  ;;  %vm1658_vm11 = vmand %vm1496_vm9, %vm1578_vm10  ;;  %v6355_v41 = vor.u32 %v6779_v14, %v6354_v2  ;;  %vm1495_vm12 = vcmp.ge.s32.totalorder %v1414_v38, %v9333_v54  ;;  %vm1577_vm13 = vcmp.lt.s32.totalorder %v1414_v38, %v9335_v51  ;;  %v6262_v38 = vld [vmem:[%s10302_s3 + $0x780] sm:$0xf]  ;;  %v6757_v2 = vld [vmem:[%s10302_s3 + $0x798] sm:$0xf0]  ;;  %vm941_vm4 = vcmp.eq.s32.totalorder %v621_v36, 256 }
 0x26e   : > { %v9423_v45 = vpop.f32.mrf.mxu1  ;;  %v4443_v61 = vpop.f32.mrf.mxu3  ;;  %4815 = vmatpush.bf16.xpose.msra.mxu0 %v6295_v59  ;;  %vm9445_vm0 = vmand %vm1495_vm12, %vm1577_vm13  ;;  %vm1494_vm1 = vcmp.ge.s32.totalorder %v8580_v44, %v9333_v54  ;;  %vm1021_vm5 = vcmp.eq.s32.totalorder %v621_v36, 320  ;;  %vm1575_vm9 = vcmp.lt.s32.totalorder %v8524_v56, %v9335_v51  ;;  %v626_v0 = vsub.s32 %v9380_v43, %v8375_v42  ;;  %v6772_v36 = vld [vmem:[%s10302_s3 + $0x810] sm:$0xf0] }
 0x26f   : > { %6437 = vmatpush.msk.msrb.mxu2 %vm1659_vm8, %v10353_v3  ;;  %v3846_v22 = vsel %vm3721_vm2, %v6355_v41, 0  ;;  %vm9461_vm6 = vmand %vm1494_vm1, %vm1576_vm3  ;;  %v6263_v41 = vor.u32 %v6757_v2, %v6262_v38  ;;  %vm1493_vm8 = vcmp.ge.s32.totalorder %v8524_v56, %v9333_v54  ;;  %v4444_v38 = vadd.f32 %v4443_v61, %v9222_v9  ;;  %v6326_v61 = vld [vmem:[%s10302_s3 + $0x7f8] sm:$0xf] }
 0x270   : > { %vm9473_vm7 = vmor %vm936_vm14, %vm1016_vm15  ;;  %vm1492_vm12 = vcmp.ge.s32.totalorder %v8494_v30, %v9333_v54  ;;  %vm1574_vm13 = vcmp.lt.s32.totalorder %v8494_v30, %v9335_v51  ;;  %v6327_v14 = vor.u32 %v6772_v36, %v6326_v61  ;;  %vm1491_vm15 = vcmp.ge.s32.totalorder %v8459_v40, %v9333_v54  ;;  %v6298_v36 = vld [vmem:[%s10302_s3 + $0x7c0] sm:$0xf] }
 0x271   : > { %v9442_v34 = vpop.f32.mrf.mxu0  ;;  %4631 = vmatmul.bf16.gmra.mxu1 %v7980_v52  ;;  %6438 = vmatpush.msk.msrb.mxu2 %vm1658_vm11, %v10353_v3  ;;  %v6754_v52 = vld [vmem:[%s10302_s3 + $0x784] sm:$0xf]  ;;  %vm1655_vm10 = vmand %vm1493_vm8, %vm1575_vm9  ;;  %vm946_vm1 = vcmp.eq.s32.totalorder %v626_v0, 256  ;;  %vm1026_vm3 = vcmp.eq.s32.totalorder %v626_v0, 320  ;;  %vm1489_vm8 = vcmp.ge.s32.totalorder %v8375_v42, %v9333_v54  ;;  %vm1571_vm9 = vcmp.lt.s32.totalorder %v8375_v42, %v9335_v51 }
 0x272   : > { %4842 = vmatpush.bf16.xpose.msra.mxu1 %v3846_v22  ;;  %v6267_v22 = vor.u32 %v6754_v52, %v6264_v60  ;;  %vm9493_vm11 = vmor %vm941_vm4, %vm1021_vm5  ;;  %v3843_v61 = vsel %vm3721_vm2, %v6327_v14, 0  ;;  %vm1490_vm5 = vcmp.ge.s32.totalorder %v8417_v7, %v9333_v54  ;;  %v6236_v14 = vld [vmem:[%s10302_s3 + $0x764] sm:$0xf0] }
 0x273   : > { %6439 = vmatpush.msk.msrb.mxu2 %vm9445_vm0, %v10353_v3  ;;  %vm9512_vm14 = vmand %vm1492_vm12, %vm1574_vm13  ;;  %vm1573_vm0 = vcmp.lt.s32.totalorder %v8459_v40, %v9335_v51  ;;  %vm1488_vm12 = vcmp.ge.s32.totalorder %v8338_v47, %v9333_v54  ;;  %vm1570_vm13 = vcmp.lt.s32.totalorder %v8338_v47, %v9335_v51 }
 0x274   : > { %vm9528_vm4 = vmand %vm1491_vm15, %vm1573_vm0 }
 0x275   : > { %v9485_v2 = vpop.f32.mrf.mxu2  ;;  %4787 = vmatpush.bf16.xpose.msra.mxu3 %v6263_v41  ;;  %6440 = vmatpush.msk.msrb.mxu2 %vm9461_vm6, %v10353_v3  ;;  %vm1572_vm6 = vcmp.lt.s32.totalorder %v8417_v7, %v9335_v51  ;;  %vm9595_vm0 = vmand %vm1488_vm12, %vm1570_vm13 }
 0x276   : > { %v9489_v63 = vpop.f32.mrf.mxu1  ;;  %v4445_v52 = vpop.f32.mrf.mxu3  ;;  %4816 = vmatpush.bf16.xpose.msra.mxu0 %v6267_v22 }
 0x277   : > { %v4446_v9 = vadd.f32 %v4445_v52, %v9249_v62  ;;  %6441 = vmatpush.msk.msrb.mxu2 %vm1655_vm10, %v10353_v3  ;;  %v4871_v62 = vsel %vm9473_vm7, %v4444_v38, 0.0  ;;  %v9545_v38 = vsub.s32 %v9380_v43, %v8417_v7  ;;  %vm9557_vm7 = vmand %vm1490_vm5, %vm1572_vm6 }
 0x278   : > { %vm9567_vm10 = vmor %vm946_vm1, %vm1026_vm3  ;;  %vm1487_vm1 = vcmp.ge.s32.totalorder %v8308_v18, %v9333_v54  ;;  %vm1569_vm3 = vcmp.lt.s32.totalorder %v8308_v18, %v9335_v51 }
 0x279   : > { %v4876_v41 = vsel %vm9493_vm11, %v4446_v9, 0.0  ;;  %v9524_v22 = vpop.f32.mrf.mxu0  ;;  %6442 = vmatpush.msk.msrb.mxu2 %vm9512_vm14, %v10353_v3  ;;  %v6747_v9 = vld [vmem:[%s10302_s3 + $0x74c] sm:$0xf]  ;;  %vm9574_vm11 = vmand %vm1489_vm8, %vm1571_vm9  ;;  %vm951_vm14 = vcmp.eq.s32.totalorder %v9545_v38, 256  ;;  %vm1031_vm15 = vcmp.eq.s32.totalorder %v9545_v38, 320 }
 0x27a   : > { %v4935_v52 = vadd.f32 %v4876_v41, %v4871_v62  ;;  %4761 = vmatmul.bf16.vlgmr.msra.gmra.mxu2 %v7538_v46  ;;  %v6750_v46 = vld [vmem:[%s10302_s3 + $0x760] sm:$0xf0]  ;;  %4843 = vmatpush.bf16.xpose.msra.mxu1 %v3843_v61  ;;  %v6239_v62 = vor.u32 %v6747_v9, %v6236_v14  ;;  %v1453_v9 = vadd.s32 376, %v8308_v18  ;;  %vm9658_vm13 = vmor %vm951_vm14, %vm1031_vm15  ;;  %v6270_v38 = vld [vmem:[%s10302_s3 + $0x788] sm:$0xf] }
 0x27b   : > { %4679 = vmatmul.bf16.gmra.mxu3 %v7549_v53  ;;  %v6235_v60 = vor.u32 %v6750_v46, %v6234_v4  ;;  %6443 = vmatpush.msk.msrb.mxu2 %vm9528_vm4, %v10353_v3  ;;  %vm9620_vm4 = vmand %vm1487_vm1, %vm1569_vm3  ;;  %v6743_v4 = vld [vmem:[%s10302_s3 + $0x728] sm:$0xf0] }
 0x27c   : > { %4708 = vmatmul.bf16.gmra.mxu0 %v7551_v55  ;;  %vm1534_vm5 = vcmp.ge.s32.totalorder %v1453_v9, %v9333_v54  ;;  %vm1616_vm6 = vcmp.lt.s32.totalorder %v1453_v9, %v9335_v51 }
 0x27d   : > { %v4530_v59 = vpop.f32.mrf.mxu2  ;;  %4788 = vmatpush.bf16.xpose.msra.mxu3 %v6235_v60  ;;  %6444 = vmatpush.msk.msrb.mxu2 %vm9557_vm7, %v10353_v3  ;;  %v6765_v60 = vld [vmem:[%s10302_s3 + $0x7d8] sm:$0xf0]  ;;  %vm9635_vm7 = vmand %vm1534_vm5, %vm1616_vm6 }
 0x27e   : > { %v4448_v55 = vpop.f32.mrf.mxu3  ;;  %v4501_v61 = vpop.f32.mrf.mxu1  ;;  %4817 = vmatpush.bf16.xpose.msra.mxu0 %v6239_v62 }
 0x27f   : > { %v4449_v0 = vadd.f32 %v4448_v55, %v9281_v23  ;;  %v4502_v46 = vadd.f32 %v4501_v61, %v9377_v17  ;;  %v6299_v17 = vor.u32 %v6765_v60, %v6298_v36  ;;  %v9613_v55 = vsub.s32 %v9380_v43, %v8459_v40  ;;  %6445 = vmatpush.msk.msrb.mxu2 %vm9574_vm11, %v10353_v3  ;;  %v6208_v60 = vld [vmem:[%s10302_s3 + $0x72c] sm:$0xf0] }
 0x280   : > { %v1452_v61 = vadd.s32 368, %v8308_v18  ;;  %v1451_v23 = vadd.s32 360, %v8308_v18 }
 0x281   : > { %v4881_v14 = vsel %vm9567_vm10, %v4449_v0, 0.0  ;;  %v9606_v53 = vadd.f32 %v4530_v59, %v4502_v46  ;;  %v9608_v62 = vpop.f32.mrf.mxu0  ;;  %4732 = vmatmul.bf16.vlgmr.msrb.gmra.mxu1 %v7570_v10  ;;  %v3840_v41 = vsel %vm3721_vm2, %v6299_v17, 0  ;;  %v6206_v10 = vld [vmem:[%s10302_s3 + $0x710] sm:$0xf]  ;;  %6446 = vmatpush.msk.msrb.mxu2 %vm9595_vm0, %v10353_v3  ;;  %v6740_v46 = vld [vmem:[%s10302_s3 + $0x714] sm:$0xf] }
 0x282   : > { %v4936_v36 = vadd.f32 %v4935_v52, %v4881_v14  ;;  %v6207_v0 = vor.u32 %v6743_v4, %v6206_v10  ;;  %vm1533_vm8 = vcmp.ge.s32.totalorder %v1452_v61, %v9333_v54  ;;  %vm1615_vm9 = vcmp.lt.s32.totalorder %v1452_v61, %v9335_v51  ;;  %4844 = vmatpush.bf16.xpose.msra.mxu1 %v3840_v41  ;;  %v6751_v52 = vld [vmem:[%s10302_s3 + $0x768] sm:$0xf0] }
 0x283   : > { %v6211_v17 = vor.u32 %v6740_v46, %v6208_v60  ;;  %6447 = vmatpush.msk.msrb.mxu2 %vm9620_vm4, %v10353_v3  ;;  %vm1695_vm10 = vmand %vm1533_vm8, %vm1615_vm9  ;;  %vm1532_vm11 = vcmp.ge.s32.totalorder %v1451_v23, %v9333_v54  ;;  %vm1614_vm12 = vcmp.lt.s32.totalorder %v1451_v23, %v9335_v51  ;;  %v1450_v14 = vadd.s32 352, %v8308_v18 }
 0x284   : > { %vm956_vm0 = vcmp.eq.s32.totalorder %v9613_v55, 256  ;;  %vm9675_vm14 = vmand %vm1532_vm11, %vm1614_vm12  ;;  %vm1036_vm3 = vcmp.eq.s32.totalorder %v9613_v55, 320  ;;  %v1448_v23 = vadd.s32 336, %v8308_v18 }
 0x285   : > { %v4532_v9 = vpop.f32.mrf.mxu2  ;;  %4789 = vmatpush.bf16.xpose.msra.mxu3 %v6207_v0  ;;  %6464 = vmatpush.msk.msra.mxu2 %vm9635_vm7, %v10353_v3  ;;  %v6758_v0 = vld [vmem:[%s10302_s3 + $0x7a0] sm:$0xf0]  ;;  %vm1531_vm15 = vcmp.ge.s32.totalorder %v1450_v14, %v9333_v54  ;;  %vm1613_vm1 = vcmp.lt.s32.totalorder %v1450_v14, %v9335_v51 }
 0x286   : > { %v4450_v41 = vpop.f32.mrf.mxu3  ;;  %v4503_v10 = vpop.f32.mrf.mxu1  ;;  %4818 = vmatpush.bf16.xpose.msra.mxu0 %v6211_v17  ;;  %vm9691_vm4 = vmand %vm1531_vm15, %vm1613_vm1  ;;  %vm1529_vm7 = vcmp.ge.s32.totalorder %v1448_v23, %v9333_v54  ;;  %vm1611_vm8 = vcmp.lt.s32.totalorder %v1448_v23, %v9335_v51 }
 0x287   : > { %v4451_v59 = vadd.f32 %v4450_v41, %v9304_v8  ;;  %v4504_v4 = vadd.f32 %v4503_v10, %v9442_v34  ;;  %6465 = vmatpush.msk.msra.mxu2 %vm1695_vm10, %v10353_v3  ;;  %v6271_v8 = vor.u32 %v6758_v0, %v6270_v38  ;;  %v1449_v34 = vadd.s32 344, %v8308_v18  ;;  %vm9712_vm10 = vmor %vm956_vm0, %vm1036_vm3  ;;  %v6242_v0 = vld [vmem:[%s10302_s3 + $0x750] sm:$0xf] }
 0x289   : > { %v4886_v46 = vsel %vm9658_vm13, %v4451_v59, 0.0  ;;  %v9684_v60 = vpop.f32.mrf.mxu0  ;;  %v9688_v17 = vadd.f32 %v4532_v9, %v4504_v4  ;;  %v3837_v14 = vsel %vm3721_vm2, %v6271_v8, 0  ;;  %vm1530_vm5 = vcmp.ge.s32.totalorder %v1449_v34, %v9333_v54  ;;  %6466 = vmatpush.msk.msra.mxu2 %vm9675_vm14, %v10353_v3  ;;  %vm9724_vm13 = vmand %vm1529_vm7, %vm1611_vm8 }
 0x28a   : > { %v4937_v41 = vadd.f32 %v4936_v36, %v4886_v46  ;;  %4766 = vmatmul.bf16.gmra.mxu2 %v7612_v49  ;;  %vm1612_vm6 = vcmp.lt.s32.totalorder %v1449_v34, %v9335_v51  ;;  %v1447_v49 = vadd.s32 328, %v8308_v18  ;;  %v641_v36 = vsub.s32 %v9380_v43, %v8494_v30  ;;  %4845 = vmatpush.bf16.xpose.msra.mxu1 %v3837_v14 }
 0x28b   : > { %4684 = vmatmul.bf16.gmra.mxu3 %v7621_v26  ;;  %vm1692_vm9 = vmand %vm1530_vm5, %vm1612_vm6  ;;  %6467 = vmatpush.msk.msra.mxu2 %vm9691_vm4, %v10353_v3  ;;  %v4343_v8 = vadd.f32 %v9322_v13, %v9149_v15  ;;  %v1444_v15 = vadd.s32 304, %v8308_v18  ;;  %v4345_v26 = vadd.f32 %v9362_v28, %v9177_v32  ;;  %v6214_v32 = vld [vmem:[%s10302_s3 + $0x718] sm:$0xf] }
 0x28c   : > { %4713 = vmatmul.bf16.gmra.mxu0 %v7623_v58  ;;  %vm1528_vm11 = vcmp.ge.s32.totalorder %v1447_v49, %v9333_v54  ;;  %vm1610_vm12 = vcmp.lt.s32.totalorder %v1447_v49, %v9335_v51  ;;  %v1446_v58 = vadd.s32 320, %v8308_v18  ;;  %vm961_vm15 = vcmp.eq.s32.totalorder %v641_v36, 256 }
 0x28d   : > { %v4535_v9 = vpop.f32.mrf.mxu2  ;;  %6468 = vmatpush.msk.msra.mxu2 %vm1692_vm9, %v10353_v3  ;;  %vm1690_vm1 = vmand %vm1528_vm11, %vm1610_vm12  ;;  %vm1041_vm3 = vcmp.eq.s32.totalorder %v641_v36, 320  ;;  %vm1525_vm7 = vcmp.ge.s32.totalorder %v1444_v15, %v9333_v54  ;;  %vm1607_vm8 = vcmp.lt.s32.totalorder %v1444_v15, %v9335_v51 }
 0x28e   : > { %v4453_v61 = vpop.f32.mrf.mxu3  ;;  %v4506_v59 = vpop.f32.mrf.mxu1  ;;  %vm1527_vm0 = vcmp.ge.s32.totalorder %v1446_v58, %v9333_v54  ;;  %vm1609_vm14 = vcmp.lt.s32.totalorder %v1446_v58, %v9335_v51  ;;  %v4372_v58 = vadd.f32 %v9302_v6, %v4343_v8  ;;  %v6744_v6 = vld [vmem:[%s10302_s3 + $0x730] sm:$0xf0] }
 0x28f   : > { %v4454_v4 = vadd.f32 %v4453_v61, %v9340_v48  ;;  %v4507_v38 = vadd.f32 %v4506_v59, %v9524_v22  ;;  %v6243_v48 = vor.u32 %v6751_v52, %v6242_v0  ;;  %v1445_v22 = vadd.s32 312, %v8308_v18  ;;  %6469 = vmatpush.msk.msra.mxu2 %vm9724_vm13, %v10353_v3  ;;  %vm1689_vm4 = vmand %vm1527_vm0, %vm1609_vm14 }
 0x290   : > { %vm9785_vm13 = vmand %vm1525_vm7, %vm1607_vm8  ;;  %v4401_v28 = vadd.f32 %v9423_v45, %v4372_v58  ;;  %v1440_v45 = vadd.s32 272, %v8308_v18 }
 0x291   : > { %v4891_v34 = vsel %vm9712_vm10, %v4454_v4, 0.0  ;;  %v9746_v46 = vpop.f32.mrf.mxu0  ;;  %4737 = vmatmul.bf16.gmra.mxu1 %v7646_v16  ;;  %v9753_v13 = vadd.f32 %v4535_v9, %v4507_v38  ;;  %v3834_v10 = vsel %vm3721_vm2, %v6243_v48, 0  ;;  %vm1526_vm5 = vcmp.ge.s32.totalorder %v1445_v22, %v9333_v54  ;;  %6470 = vmatpush.msk.msra.mxu2 %vm1690_vm1, %v10353_v3  ;;  %vm9770_vm10 = vmor %vm961_vm15, %vm1041_vm3 }
 0x292   : > { %v4938_v23 = vadd.f32 %v4937_v41, %v4891_v34  ;;  %vm1608_vm6 = vcmp.lt.s32.totalorder %v1445_v22, %v9335_v51  ;;  %v1443_v16 = vadd.s32 296, %v8308_v18  ;;  %v646_v41 = vsub.s32 %v9380_v43, %v8524_v56  ;;  %4846 = vmatpush.bf16.xpose.msra.mxu1 %v3834_v10 }
 0x293   : > { %vm1688_vm9 = vmand %vm1526_vm5, %vm1608_vm6  ;;  %6471 = vmatpush.msk.msra.mxu2 %vm1689_vm4, %v10353_v3  ;;  %v1442_v9 = vadd.s32 288, %v8308_v18  ;;  %v1441_v38 = vadd.s32 280, %v8308_v18  ;;  %vm1521_vm7 = vcmp.ge.s32.totalorder %v1440_v45, %v9333_v54  ;;  %vm1603_vm8 = vcmp.lt.s32.totalorder %v1440_v45, %v9335_v51 }
 0x294   : > { %vm1524_vm11 = vcmp.ge.s32.totalorder %v1443_v16, %v9333_v54  ;;  %vm1606_vm12 = vcmp.lt.s32.totalorder %v1443_v16, %v9335_v51  ;;  %vm966_vm15 = vcmp.eq.s32.totalorder %v646_v41, 256  ;;  %vm1046_vm3 = vcmp.eq.s32.totalorder %v646_v41, 320 }
 0x295   : > { %v4537_v14 = vpop.f32.mrf.mxu2  ;;  %6472 = vmatpush.msk.msra.mxu2 %vm1688_vm9, %v10353_v3  ;;  %vm1523_vm0 = vcmp.ge.s32.totalorder %v1442_v9, %v9333_v54  ;;  %vm1605_vm14 = vcmp.lt.s32.totalorder %v1442_v9, %v9335_v51  ;;  %vm9805_vm1 = vmand %vm1524_vm11, %vm1606_vm12  ;;  %vm1522_vm5 = vcmp.ge.s32.totalorder %v1441_v38, %v9333_v54  ;;  %vm1604_vm6 = vcmp.lt.s32.totalorder %v1441_v38, %v9335_v51 }
 0x296   : > { %v4455_v61 = vpop.f32.mrf.mxu3  ;;  %v4508_v59 = vpop.f32.mrf.mxu1  ;;  %vm1685_vm4 = vmand %vm1523_vm0, %vm1605_vm14  ;;  %v651_v41 = vsub.s32 %v9380_v43, %v8580_v44  ;;  %v1434_v45 = vadd.s32 224, %v8308_v18 }
 0x297   : > { %v4456_v55 = vadd.f32 %v4455_v61, %v9387_v11  ;;  %v4509_v4 = vadd.f32 %v4508_v59, %v9608_v62  ;;  %v6215_v62 = vor.u32 %v6744_v6, %v6214_v32  ;;  %6473 = vmatpush.msk.msra.mxu2 %vm9785_vm13, %v10353_v3  ;;  %vm1684_vm9 = vmand %vm1522_vm5, %vm1604_vm6  ;;  %v1437_v6 = vadd.s32 248, %v8308_v18 }
 0x298   : > { %vm1683_vm13 = vmand %vm1521_vm7, %vm1603_vm8 }
 0x299   : > { %v4896_v0 = vsel %vm9770_vm10, %v4456_v55, 0.0  ;;  %v9812_v52 = vpop.f32.mrf.mxu0  ;;  %v9818_v8 = vadd.f32 %v4537_v14, %v4509_v4  ;;  %v3831_v22 = vsel %vm3721_vm2, %v6215_v62, 0  ;;  %6474 = vmatpush.msk.msra.mxu2 %vm9805_vm1, %v10353_v3  ;;  %vm9838_vm10 = vmor %vm966_vm15, %vm1046_vm3  ;;  %vm971_vm3 = vcmp.eq.s32.totalorder %v651_v41, 256 }
 0x29a   : > { %v4939_v48 = vadd.f32 %v4938_v23, %v4896_v0  ;;  %4771 = vmatmul.bf16.gmra.mxu2 %v7691_v57  ;;  %v1439_v57 = vadd.s32 264, %v8308_v18  ;;  %4847 = vmatpush.bf16.xpose.msra.mxu1 %v3831_v22  ;;  %v1438_v23 = vadd.s32 256, %v8308_v18  ;;  %vm1518_vm6 = vcmp.ge.s32.totalorder %v1437_v6, %v9333_v54 }
 0x29b   : > { %4689 = vmatmul.bf16.gmra.mxu3 %v7699_v1  ;;  %v4430_v1 = vadd.f32 %v9419_v25, %v4401_v28  ;;  %6475 = vmatpush.msk.msra.mxu2 %vm1685_vm4, %v10353_v3  ;;  %vm1051_vm4 = vcmp.eq.s32.totalorder %v651_v41, 320  ;;  %vm1600_vm7 = vcmp.lt.s32.totalorder %v1437_v6, %v9335_v51  ;;  %v1433_v22 = vadd.s32 216, %v8308_v18 }
 0x29c   : > { %4718 = vmatmul.bf16.gmra.mxu0 %v7702_v27  ;;  %vm1520_vm11 = vcmp.ge.s32.totalorder %v1439_v57, %v9333_v54  ;;  %vm1602_vm12 = vcmp.lt.s32.totalorder %v1439_v57, %v9335_v51  ;;  %v4374_v27 = vadd.f32 %v9337_v21, %v4345_v26  ;;  %vm1519_vm0 = vcmp.ge.s32.totalorder %v1438_v23, %v9333_v54  ;;  %vm1091_vm5 = vmor %vm971_vm3, %vm1051_vm4 }
 0x29d   : > { %v4540_v34 = vpop.f32.mrf.mxu2  ;;  %6476 = vmatpush.msk.msra.mxu2 %vm1684_vm9, %v10353_v3  ;;  %vm1601_vm14 = vcmp.lt.s32.totalorder %v1438_v23, %v9335_v51  ;;  %vm1682_vm15 = vmand %vm1520_vm11, %vm1602_vm12  ;;  %v4916_v26 = vrot.slane %v8646_v29, 4  ;;  %vm1514_vm3 = vcmp.ge.s32.totalorder %v1433_v22, %v9333_v54  ;;  %vm1596_vm4 = vcmp.lt.s32.totalorder %v1433_v22, %v9335_v51 }
 0x29e   : > { %v4458_v10 = vpop.f32.mrf.mxu3  ;;  %v4511_v16 = vpop.f32.mrf.mxu1  ;;  %v4403_v21 = vadd.f32 %v9489_v63, %v4374_v27  ;;  %vm1681_vm1 = vmand %vm1519_vm0, %vm1601_vm14  ;;  %vm1515_vm14 = vcmp.ge.s32.totalorder %v1434_v45, %v9333_v54  ;;  %v1432_v57 = vadd.s32 208, %v8308_v18  ;;  %v1430_v41 = vadd.s32 192, %v8308_v18 }
 0x29f   : > { %v4459_v25 = vadd.f32 %v4458_v10, %v4430_v1  ;;  %v4512_v14 = vadd.f32 %v4511_v16, %v9684_v60  ;;  %6477 = vmatpush.msk.msra.mxu2 %vm1683_vm13, %v10353_v3  ;;  %v4917_v55 = vadd.f32 %v4916_v26, %v8646_v29  ;;  %vm1680_vm8 = vmand %vm1518_vm6, %vm1600_vm7  ;;  %v1431_v1 = vadd.s32 200, %v8308_v18 }
 0x2a0   : > { %v4432_v58 = vadd.f32 %v9485_v2, %v4403_v21  ;;  %v1436_v2 = vadd.s32 240, %v8308_v18  ;;  %6448 = vmatpush.msk.msrb.mxu3 %vm1680_vm8, %v10353_v3  ;;  %vm1513_vm6 = vcmp.ge.s32.totalorder %v1432_v57, %v9333_v54  ;;  %vm1595_vm7 = vcmp.lt.s32.totalorder %v1432_v57, %v9335_v51 }
 0x2a1   : > { %v4901_v43 = vsel %vm9838_vm10, %v4459_v25, 0.0  ;;  %v9861_v49 = vpop.f32.mrf.mxu0  ;;  %4742 = vmatmul.bf16.gmra.mxu1 %v7723_v31  ;;  %v9865_v9 = vadd.f32 %v4540_v34, %v4512_v14  ;;  %6478 = vmatpush.msk.msra.mxu2 %vm1682_vm15, %v10353_v3  ;;  %vm1597_vm15 = vcmp.lt.s32.totalorder %v1434_v45, %v9335_v51  ;;  %vm1675_vm8 = vmand %vm1513_vm6, %vm1595_vm7  ;;  %v1429_v14 = vadd.s32 184, %v8308_v18 }
 0x2a2   : > { %v4940_v60 = vadd.f32 %v4939_v48, %v4901_v43  ;;  %vm1517_vm9 = vcmp.ge.s32.totalorder %v1436_v2, %v9333_v54  ;;  %vm1599_vm10 = vcmp.lt.s32.totalorder %v1436_v2, %v9335_v51  ;;  %v9927_v21 = vadd.s32 384, %v8316_v19 }
 0x2a3   : > { %6479 = vmatpush.msk.msra.mxu2 %vm1681_vm1, %v10353_v3  ;;  %vm1679_vm11 = vmand %vm1517_vm9, %vm1599_vm10  ;;  %vm1512_vm9 = vcmp.ge.s32.totalorder %v1431_v1, %v9333_v54  ;;  %vm1594_vm10 = vcmp.lt.s32.totalorder %v1431_v1, %v9335_v51  ;;  %v1428_v43 = vadd.s32 176, %v8308_v18  ;;  %v1425_v6 = vadd.s32 152, %v8308_v18 }
 0x2a4   : > { %6449 = vmatpush.msk.msrb.mxu3 %vm1679_vm11, %v10353_v3  ;;  %vm1677_vm1 = vmand %vm1515_vm14, %vm1597_vm15  ;;  %vm1510_vm14 = vcmp.ge.s32.totalorder %v1429_v14, %v9333_v54  ;;  %vm1592_vm15 = vcmp.lt.s32.totalorder %v1429_v14, %v9335_v51  ;;  %v1423_v2 = vadd.s32 136, %v8308_v18  ;;  %v627_v45 = vsub.s32 %v9927_v21, %v8375_v42 }
 0x2a5   : > { %v4542_v63 = vpop.f32.mrf.mxu2  ;;  %vm1674_vm11 = vmand %vm1512_vm9, %vm1594_vm10  ;;  %v1469_v22 = vadd.s32 504, %v8308_v18 }
 0x2a6   : > { %v4460_v61 = vpop.f32.mrf.mxu3  ;;  %v4513_v31 = vpop.f32.mrf.mxu1 }
 0x2a7   : > { %v4461_v59 = vadd.f32 %v4460_v61, %v4432_v58  ;;  %v4514_v36 = vadd.f32 %v4513_v31, %v9746_v46  ;;  %v4918_v46 = vrot.slane %v4917_v55, 2 }
 0x2a9   : > { %v4906_v4 = vsel %vm1091_vm5, %v4461_v59, 0.0  ;;  %v9873_v32 = vpop.f32.mrf.mxu0  ;;  %v9877_v11 = vadd.f32 %v4542_v63, %v4514_v36  ;;  %vm1676_vm5 = vmand %vm1514_vm3, %vm1596_vm4  ;;  %vm1509_vm3 = vcmp.ge.s32.totalorder %v1428_v43, %v9333_v54  ;;  %vm1591_vm4 = vcmp.lt.s32.totalorder %v1428_v43, %v9335_v51 }
 0x2aa   : > { %v4941_v28 = vadd.f32 %v4940_v60, %v4906_v4  ;;  %4776 = vmatmul.bf16.gmra.mxu2 %v7757_v5  ;;  %v1435_v5 = vadd.s32 232, %v8308_v18  ;;  %v1426_v59 = vadd.s32 160, %v8308_v18 }
 0x2ab   : > { %4790 = vmatmul.bf16.vlgmr.msra.gmra.mxu3 %v7765_v12 }
 0x2ac   : > { %v4942_v29 = vrot.slane %v4941_v28, 4  ;;  %4819 = vmatmul.bf16.vlgmr.msra.gmra.mxu0 %v7774_v20  ;;  %vm1516_vm12 = vcmp.ge.s32.totalorder %v1435_v5, %v9333_v54  ;;  %v4919_v20 = vadd.f32 %v4918_v46, %v4917_v55  ;;  %vm1598_vm13 = vcmp.lt.s32.totalorder %v1435_v5, %v9335_v51 }
 0x2ad   : > { %v9884_v62 = vpop.f32.mrf.mxu2  ;;  %vm1678_vm0 = vmand %vm1516_vm12, %vm1598_vm13  ;;  %vm1511_vm12 = vcmp.ge.s32.totalorder %v1430_v41, %v9333_v54  ;;  %vm1593_vm13 = vcmp.lt.s32.totalorder %v1430_v41, %v9335_v51  ;;  %vm1507_vm9 = vcmp.ge.s32.totalorder %v1426_v59, %v9333_v54  ;;  %vm1589_vm10 = vcmp.lt.s32.totalorder %v1426_v59, %v9335_v51 }
 0x2ae   : > { %v9890_v12 = vpop.f32.mrf.mxu1  ;;  %v4559_v38 = vpop.f32.mrf.mxu3  ;;  %v4943_v0 = vadd.f32 %v4942_v29, %v4941_v28  ;;  %6450 = vmatpush.msk.msrb.mxu3 %vm1678_vm0, %v10353_v3  ;;  %v4920_v34 = vrot.slane %v4919_v20, 1  ;;  %vm1673_vm0 = vmand %vm1511_vm12, %vm1593_vm13  ;;  %v1463_v59 = vadd.s32 456, %v8308_v18 }
 0x2af   : > { %v4560_v26 = vadd.f32 %v4559_v38, %v9606_v53  ;;  %v622_v53 = vsub.s32 %v9927_v21, %v8338_v47  ;;  %vm1669_vm13 = vmand %vm1507_vm9, %vm1589_vm10  ;;  %vm1586_vm10 = vcmp.lt.s32.totalorder %v1423_v2, %v9335_v51 }
 0x2b0   : > { %v4944_v15 = vrot.slane %v4943_v0, 2  ;;  %6451 = vmatpush.msk.msrb.mxu3 %vm1677_vm1, %v10353_v3  ;;  %v4921_v10 = vadd.f32 %v4920_v34, %v4919_v20  ;;  %vm1672_vm1 = vmand %vm1510_vm14, %vm1592_vm15  ;;  %vm1506_vm15 = vcmp.ge.s32.totalorder %v1425_v6, %v9333_v54 }
 0x2b1   : > { %v9896_v48 = vpop.f32.mrf.mxu0  ;;  %4747 = vmatmul.bf16.gmra.mxu1 %v7792_v39  ;;  %v4589_v55 = vadd.f32 %v9873_v32, %v4560_v26  ;;  %v1424_v32 = vadd.s32 144, %v8308_v18  ;;  %vm1182_vm14 = vcmp.eq.s32.totalorder %v622_v53, 448  ;;  %v1465_v26 = vadd.s32 472, %v8308_v18 }
 0x2b2   : > { %6452 = vmatpush.msk.msrb.mxu3 %vm1676_vm5, %v10353_v3  ;;  %v4945_v16 = vadd.f32 %v4944_v15, %v4943_v0  ;;  %vm1671_vm5 = vmand %vm1509_vm3, %vm1591_vm4  ;;  %v637_v0 = vsub.s32 %v9927_v21, %v8459_v40 }
 0x2b3   : > { %vm1505_vm4 = vcmp.ge.s32.totalorder %v1424_v32, %v9333_v54 }
 0x2b4   : > { %6453 = vmatpush.msk.msrb.mxu3 %vm1675_vm8, %v10353_v3  ;;  %v4946_v60 = vrot.slane %v4945_v16, 1 }
 0x2b5   : > { %v9907_v39 = vpop.f32.mrf.mxu2 }
 0x2b6   : > { %v9912_v23 = vpop.f32.mrf.mxu1  ;;  %v4561_v27 = vpop.f32.mrf.mxu3  ;;  %6454 = vmatpush.msk.msrb.mxu3 %vm1674_vm11, %v10353_v3  ;;  %v4947_v31 = vadd.f32 %v4946_v60, %v4945_v16  ;;  %v1467_v16 = vadd.s32 488, %v8308_v18 }
 0x2b7   : > { %v4562_v36 = vadd.f32 %v4561_v27, %v9688_v17  ;;  %v1468_v27 = vadd.s32 496, %v8308_v18 }
 0x2b8   : > { %6455 = vmatpush.msk.msrb.mxu3 %vm1673_vm0, %v10353_v3  ;;  %vm1102_vm0 = vcmp.eq.s32.totalorder %v622_v53, 384 }
 0x2b9   : > { %v9919_v25 = vpop.f32.mrf.mxu0  ;;  %v4591_v28 = vadd.f32 %v9896_v48, %v4562_v36  ;;  %vm9975_vm9 = vmor %vm1102_vm0, %vm1182_vm14  ;;  %v1422_v48 = vadd.s32 128, %v8308_v18  ;;  %vm1550_vm0 = vcmp.ge.s32.totalorder %v1469_v22, %v9333_v54  ;;  %vm1632_vm14 = vcmp.lt.s32.totalorder %v1469_v22, %v9335_v51  ;;  %v10403_v36 = vld [vmem:[#allocation10_spill] sm:$0xff] }
 0x2ba   : > { %4990 = vmatmul.f32.vlgmr.msrb.gmra.mxu2 %v4921_v10  ;;  %6456 = vmatpush.msk.msrb.mxu3 %vm1672_vm1, %v10353_v3  ;;  %vm1588_vm1 = vcmp.lt.s32.totalorder %v1425_v6, %v9335_v51  ;;  %v10406_v22 = vld [vmem:[#allocation6_spill] sm:$0xff] }
 0x2bb   : > { %4795 = vmatmul.bf16.gmra.mxu3 %v7832_v24  ;;  %v1427_v24 = vadd.s32 168, %v8308_v18  ;;  %vm1668_vm3 = vmand %vm1506_vm15, %vm1588_vm1  ;;  %vm1107_vm1 = vcmp.eq.s32.totalorder %v627_v45, 384 }
 0x2bc   : > { %4824 = vmatmul.bf16.gmra.mxu0 %v7841_v33  ;;  %v617_v33 = vsub.s32 %v9927_v21, %v8308_v18  ;;  %6457 = vmatpush.msk.msrb.mxu3 %vm1671_vm5, %v10353_v3  ;;  %vm1587_vm5 = vcmp.lt.s32.totalorder %v1424_v32, %v9335_v51 }
 0x2bd   : > { %v4646_v63 = vpop.f32.mrf.mxu2  ;;  %vm1508_vm6 = vcmp.ge.s32.totalorder %v1427_v24, %v9333_v54  ;;  %vm1590_vm7 = vcmp.lt.s32.totalorder %v1427_v24, %v9335_v51 }
 0x2be   : > { %v4564_v58 = vpop.f32.mrf.mxu3  ;;  %v4617_v61 = vpop.f32.mrf.mxu1  ;;  %vm1670_vm8 = vmand %vm1508_vm6, %vm1590_vm7  ;;  %vm1097_vm11 = vcmp.eq.s32.totalorder %v617_v33, 384  ;;  %vm1177_vm12 = vcmp.eq.s32.totalorder %v617_v33, 448  ;;  %v632_v33 = vsub.s32 %v9927_v21, %v8417_v7 }
 0x2bf   : > { %6458 = vmatpush.msk.msrb.mxu3 %vm1670_vm8, %v10353_v3  ;;  %v4618_v17 = vadd.f32 %v4617_v61, %v4589_v55  ;;  %vm1667_vm6 = vmand %vm1505_vm4, %vm1587_vm5  ;;  %vm1504_vm8 = vcmp.ge.s32.totalorder %v1423_v2, %v9333_v54  ;;  %v4565_v57 = vadd.f32 %v4564_v58, %v9753_v13  ;;  %vm1187_vm4 = vcmp.eq.s32.totalorder %v627_v45, 448  ;;  %v10402_v61 = vld [vmem:[#allocation5_spill] sm:$0xff] }
 0x2c0   : > { %vm9968_vm7 = vmor %vm1097_vm11, %vm1177_vm12  ;;  %vm1503_vm12 = vcmp.ge.s32.totalorder %v1422_v48, %v9333_v54  ;;  %vm1549_vm5 = vcmp.ge.s32.totalorder %v1468_v27, %v9333_v54  ;;  %v4929_v55 = vrot.slane %v10403_v36, 4  ;;  %v1460_v45 = vadd.s32 432, %v8308_v18 }
 0x2c1   : > { %v9949_v4 = vpop.f32.mrf.mxu0  ;;  %6428 = vmatmul.msk.bf16.vlgmr.msra.gmra.mxu1 %vm3721_vm2, %v7859_v50  ;;  %6459 = vmatpush.msk.msrb.mxu3 %vm1669_vm13, %v10353_v3  ;;  %v4647_v38 = vadd.f32 %v4646_v63, %v4618_v17  ;;  %vm1666_vm11 = vmand %vm1504_vm8, %vm1586_vm10  ;;  %vm1585_vm13 = vcmp.lt.s32.totalorder %v1422_v48, %v9335_v51  ;;  %v4594_v14 = vadd.f32 %v9919_v25, %v4565_v57  ;;  %v10407_v57 = vld [vmem:[#allocation7_spill] sm:$0xff] }
 0x2c2   : > { %5030 = vmatmul.f32.vlgmr.msra.gmra.mxu2 %v4947_v31  ;;  %vm1665_vm15 = vmand %vm1503_vm12, %vm1585_vm13  ;;  %vm1548_vm8 = vcmp.ge.s32.totalorder %v1467_v16, %v9333_v54  ;;  %v1464_v31 = vadd.s32 464, %v8308_v18 }
 0x2c3   : > { %6460 = vmatpush.msk.msrb.mxu3 %vm1668_vm3, %v10353_v3  ;;  %v4872_v1 = vsel %vm9968_vm7, %v4647_v38, 0.0  ;;  %vm1712_vm3 = vmand %vm1550_vm0, %vm1632_vm14  ;;  %vm1546_vm14 = vcmp.ge.s32.totalorder %v1465_v26, %v9333_v54 }
 0x2c5   : > { %v4648_v50 = vpop.f32.mrf.mxu2  ;;  %6461 = vmatpush.msk.msrb.mxu3 %vm1667_vm6, %v10353_v3  ;;  %vm1631_vm6 = vcmp.lt.s32.totalorder %v1468_v27, %v9335_v51 }
 0x2c6   : > { %v4566_v46 = vpop.f32.mrf.mxu3  ;;  %v4619_v29 = vpop.f32.mrf.mxu1  ;;  %vm1711_vm7 = vmand %vm1549_vm5, %vm1631_vm6  ;;  %vm1112_vm5 = vcmp.eq.s32.totalorder %v632_v33, 384  ;;  %vm1192_vm6 = vcmp.eq.s32.totalorder %v632_v33, 448 }
 0x2c7   : > { %v4620_v20 = vadd.f32 %v4619_v29, %v4591_v28  ;;  %6462 = vmatpush.msk.msrb.mxu3 %vm1666_vm11, %v10353_v3  ;;  %vm10011_vm11 = vmor %vm1107_vm1, %vm1187_vm4  ;;  %v4567_v63 = vadd.f32 %v4566_v46, %v9818_v8  ;;  %vm1627_vm4 = vcmp.lt.s32.totalorder %v1464_v31, %v9335_v51  ;;  %v1462_v28 = vadd.s32 448, %v8308_v18 }
 0x2c8   : > { %v4930_v29 = vadd.f32 %v4929_v55, %v10403_v36  ;;  %v1454_v36 = vadd.s32 384, %v8308_v18 }
 0x2c9   : > { %v4649_v34 = vadd.f32 %v4648_v50, %v4620_v20  ;;  %v9986_v15 = vpop.f32.mrf.mxu0  ;;  %6463 = vmatpush.msk.msrb.mxu3 %vm1665_vm15, %v10353_v3  ;;  %vm1628_vm15 = vcmp.lt.s32.totalorder %v1465_v26, %v9335_v51  ;;  %v4596_v17 = vadd.f32 %v9949_v4, %v4567_v63  ;;  %v1461_v4 = vadd.s32 440, %v8308_v18  ;;  %v10410_v26 = vld [vmem:[#allocation8_spill] sm:$0xff] }
 0x2ca   : > { %vm1708_vm1 = vmand %vm1546_vm14, %vm1628_vm15  ;;  %v642_v63 = vsub.s32 %v9927_v21, %v8494_v30 }
 0x2cb   : > { %v4877_v13 = vsel %vm9975_vm9, %v4649_v34, 0.0  ;;  %4800 = vmatmul.bf16.gmra.mxu3 %v7898_v35  ;;  %vm1630_vm9 = vcmp.lt.s32.totalorder %v1467_v16, %v9335_v51  ;;  %vm1542_vm14 = vcmp.ge.s32.totalorder %v1461_v4, %v9333_v54  ;;  %vm1624_vm15 = vcmp.lt.s32.totalorder %v1461_v4, %v9335_v51 }
 0x2cc   : > { %v4948_v10 = vadd.f32 %v4877_v13, %v4872_v1  ;;  %4829 = vmatmul.bf16.gmra.mxu0 %v7910_v37  ;;  %6480 = vmatpush.msk.msra.mxu3 %vm1712_vm3, %v10353_v3  ;;  %v1466_v37 = vadd.s32 480, %v8308_v18  ;;  %vm1710_vm10 = vmand %vm1548_vm8, %vm1630_vm9  ;;  %vm1545_vm3 = vcmp.ge.s32.totalorder %v1464_v31, %v9333_v54  ;;  %vm1544_vm8 = vcmp.ge.s32.totalorder %v1463_v59, %v9333_v54 }
 0x2cd   : > { %v4651_v41 = vpop.f32.mrf.mxu2  ;;  %vm1626_vm9 = vcmp.lt.s32.totalorder %v1463_v59, %v9335_v51  ;;  %v1459_v34 = vadd.s32 424, %v8308_v18  ;;  %v4931_v1 = vrot.slane %v4930_v29, 2  ;;  %v1455_v31 = vadd.s32 392, %v8308_v18 }
 0x2ce   : > { %v4569_v35 = vpop.f32.mrf.mxu3  ;;  %v4622_v43 = vpop.f32.mrf.mxu1  ;;  %6481 = vmatpush.msk.msra.mxu3 %vm1711_vm7, %v10353_v3  ;;  %vm1547_vm12 = vcmp.ge.s32.totalorder %v1466_v37, %v9333_v54  ;;  %vm1629_vm13 = vcmp.lt.s32.totalorder %v1466_v37, %v9335_v51  ;;  %vm1707_vm7 = vmand %vm1545_vm3, %vm1627_vm4  ;;  %vm1541_vm3 = vcmp.ge.s32.totalorder %v1460_v45, %v9333_v54  ;;  %vm1623_vm4 = vcmp.lt.s32.totalorder %v1460_v45, %v9335_v51 }
 0x2cf   : > { %v4623_v60 = vadd.f32 %v4622_v43, %v4594_v14  ;;  %vm1709_vm0 = vmand %vm1547_vm12, %vm1629_vm13  ;;  %vm1543_vm12 = vcmp.ge.s32.totalorder %v1462_v28, %v9333_v54  ;;  %vm1625_vm13 = vcmp.lt.s32.totalorder %v1462_v28, %v9335_v51  ;;  %v4570_v5 = vadd.f32 %v4569_v35, %v9865_v9 }
 0x2d0   : > { %6482 = vmatpush.msk.msra.mxu3 %vm1710_vm10, %v10353_v3  ;;  %vm1706_vm10 = vmand %vm1544_vm8, %vm1626_vm9  ;;  %vm1540_vm8 = vcmp.ge.s32.totalorder %v1459_v34, %v9333_v54  ;;  %vm1622_vm9 = vcmp.lt.s32.totalorder %v1459_v34, %v9335_v51  ;;  %v4932_v43 = vadd.f32 %v4931_v1, %v4930_v29  ;;  %v647_v28 = vsub.s32 %v9927_v21, %v8524_v56 }
 0x2d1   : > { %v4652_v24 = vadd.f32 %v4651_v41, %v4623_v60  ;;  %v10019_v58 = vpop.f32.mrf.mxu0  ;;  %6429 = vmatmul.msk.bf16.gmra.mxu1 %vm3721_vm2, %v10402_v61  ;;  %v4599_v27 = vadd.f32 %v9986_v15, %v4570_v5  ;;  %v1458_v41 = vadd.s32 416, %v8308_v18  ;;  %v1457_v15 = vadd.s32 408, %v8308_v18 }
 0x2d2   : > { %6483 = vmatpush.msk.msra.mxu3 %vm1709_vm0, %v10353_v3  ;;  %vm1705_vm0 = vmand %vm1543_vm12, %vm1625_vm13 }
 0x2d3   : > { %v4882_v8 = vsel %vm10011_vm11, %v4652_v24, 0.0  ;;  %vm10042_vm11 = vmor %vm1112_vm5, %vm1192_vm6  ;;  %vm1117_vm5 = vcmp.eq.s32.totalorder %v637_v0, 384  ;;  %vm1197_vm6 = vcmp.eq.s32.totalorder %v637_v0, 448  ;;  %vm1539_vm12 = vcmp.ge.s32.totalorder %v1458_v41, %v9333_v54 }
 0x2d4   : > { %v4949_v53 = vadd.f32 %v4948_v10, %v4882_v8  ;;  %6484 = vmatpush.msk.msra.mxu3 %vm1708_vm1, %v10353_v3  ;;  %vm1704_vm1 = vmand %vm1542_vm14, %vm1624_vm15  ;;  %vm1621_vm13 = vcmp.lt.s32.totalorder %v1458_v41, %v9335_v51  ;;  %vm1538_vm14 = vcmp.ge.s32.totalorder %v1457_v15, %v9333_v54  ;;  %vm1620_vm15 = vcmp.lt.s32.totalorder %v1457_v15, %v9335_v51 }
 0x2d5   : > { %v4653_v6 = vpop.f32.mrf.mxu2  ;;  %v1456_v24 = vadd.s32 400, %v8308_v18  ;;  %v4933_v8 = vrot.slane %v4932_v43, 1 }
 0x2d6   : > { %v4571_v32 = vpop.f32.mrf.mxu3  ;;  %v4624_v50 = vpop.f32.mrf.mxu1  ;;  %6485 = vmatpush.msk.msra.mxu3 %vm1707_vm7, %v10353_v3  ;;  %vm1703_vm7 = vmand %vm1541_vm3, %vm1623_vm4 }
 0x2d7   : > { %v4625_v2 = vadd.f32 %v4624_v50, %v4596_v17  ;;  %v4572_v37 = vadd.f32 %v4571_v32, %v9877_v11  ;;  %v4517_v11 = vadd.f32 %v9890_v12, %v9812_v52  ;;  %vm1537_vm3 = vcmp.ge.s32.totalorder %v1456_v24, %v9333_v54 }
 0x2d8   : > { %6486 = vmatpush.msk.msra.mxu3 %vm1706_vm10, %v10353_v3  ;;  %vm1702_vm10 = vmand %vm1540_vm8, %vm1622_vm9  ;;  %vm1619_vm4 = vcmp.lt.s32.totalorder %v1456_v24, %v9335_v51  ;;  %vm1536_vm8 = vcmp.ge.s32.totalorder %v1455_v31, %v9333_v54  ;;  %vm1618_vm9 = vcmp.lt.s32.totalorder %v1455_v31, %v9335_v51  ;;  %v4934_v50 = vadd.f32 %v4933_v8, %v4932_v43 }
 0x2d9   : > { %v4654_v38 = vadd.f32 %v4653_v6, %v4625_v2  ;;  %v10051_v20 = vpop.f32.mrf.mxu0  ;;  %v4601_v59 = vadd.f32 %v10019_v58, %v4572_v37  ;;  %v4546_v55 = vadd.f32 %v9884_v62, %v4517_v11  ;;  %v4519_v62 = vadd.f32 %v9912_v23, %v9861_v49  ;;  %v10411_v23 = vld [vmem:[#allocation9_spill] sm:$0xff] }
 0x2da   : > { %6487 = vmatpush.msk.msra.mxu3 %vm1705_vm0, %v10353_v3  ;;  %vm1701_vm0 = vmand %vm1539_vm12, %vm1621_vm13  ;;  %vm1535_vm12 = vcmp.ge.s32.totalorder %v1454_v36, %v9333_v54  ;;  %vm1617_vm13 = vcmp.lt.s32.totalorder %v1454_v36, %v9335_v51 }
 0x2db   : > { %v4887_v48 = vsel %vm10042_vm11, %v4654_v38, 0.0  ;;  %4805 = vmatmul.bf16.gmra.mxu3 %v10406_v22  ;;  %vm10072_vm11 = vmor %vm1117_vm5, %vm1197_vm6  ;;  %vm1122_vm5 = vcmp.eq.s32.totalorder %v642_v63, 384  ;;  %vm1202_vm6 = vcmp.eq.s32.totalorder %v642_v63, 448  ;;  %v4548_v0 = vadd.f32 %v9907_v39, %v4519_v62 }
 0x2dc   : > { %v4950_v9 = vadd.f32 %v4949_v53, %v4887_v48  ;;  %4834 = vmatmul.bf16.gmra.mxu0 %v10407_v57  ;;  %6488 = vmatpush.msk.msra.mxu3 %vm1704_vm1, %v10353_v3  ;;  %vm1700_vm1 = vmand %vm1538_vm14, %vm1620_vm15  ;;  %vm1127_vm14 = vcmp.eq.s32.totalorder %v647_v28, 384  ;;  %vm1207_vm15 = vcmp.eq.s32.totalorder %v647_v28, 448  ;;  %v652_v57 = vsub.s32 %v9927_v21, %v8580_v44 }
 0x2dd   : > { %v4656_v13 = vpop.f32.mrf.mxu2 }
 0x2de   : > { %v4574_v10 = vpop.f32.mrf.mxu3  ;;  %v4627_v16 = vpop.f32.mrf.mxu1  ;;  %6489 = vmatpush.msk.msra.mxu3 %vm1703_vm7, %v10353_v3  ;;  %vm1699_vm7 = vmand %vm1537_vm3, %vm1619_vm4  ;;  %vm1132_vm3 = vcmp.eq.s32.totalorder %v652_v57, 384  ;;  %vm1212_vm4 = vcmp.eq.s32.totalorder %v652_v57, 448 }
 0x2df   : > { %v4628_v14 = vadd.f32 %v4627_v16, %v4599_v27  ;;  %v4575_v58 = vadd.f32 %v4574_v10, %v4546_v55 }
 0x2e0   : > { %6490 = vmatpush.msk.msra.mxu3 %vm1702_vm10, %v10353_v3  ;;  %vm1698_vm10 = vmand %vm1536_vm8, %vm1618_vm9 }
 0x2e1   : > { %v4657_v60 = vadd.f32 %v4656_v13, %v4628_v14  ;;  %v10081_v25 = vpop.f32.mrf.mxu0  ;;  %6430 = vmatmul.msk.bf16.gmra.mxu1 %vm3721_vm2, %v10410_v26  ;;  %v4604_v29 = vadd.f32 %v10051_v20, %v4575_v58 }
 0x2e2   : > { %6491 = vmatpush.msk.msra.mxu3 %vm1701_vm0, %v10353_v3  ;;  %vm1697_vm0 = vmand %vm1535_vm12, %vm1617_vm13 }
 0x2e3   : > { %v4892_v61 = vsel %vm10072_vm11, %v4657_v60, 0.0  ;;  %vm1242_vm11 = vmor %vm1122_vm5, %vm1202_vm6 }
 0x2e4   : > { %v4951_v33 = vadd.f32 %v4950_v9, %v4892_v61  ;;  %6492 = vmatpush.msk.msra.mxu3 %vm1700_vm1, %v10353_v3  ;;  %vm1247_vm1 = vmor %vm1127_vm14, %vm1207_vm15 }
 0x2e5   : > { %v4658_v53 = vpop.f32.mrf.mxu2  ;;  %vm1252_vm5 = vmor %vm1132_vm3, %vm1212_vm4 }
 0x2e6   : > { %v4576_v52 = vpop.f32.mrf.mxu3  ;;  %v4629_v12 = vpop.f32.mrf.mxu1  ;;  %6493 = vmatpush.msk.msra.mxu3 %vm1699_vm7, %v10353_v3 }
 0x2e7   : > { %v4630_v6 = vadd.f32 %v4629_v12, %v4601_v59  ;;  %v4577_v22 = vadd.f32 %v4576_v52, %v4548_v0 }
 0x2e8   : > { %6494 = vmatpush.msk.msra.mxu3 %vm1698_vm10, %v10353_v3 }
 0x2e9   : > { %v4659_v17 = vadd.f32 %v4658_v53, %v4630_v6  ;;  %v4704_v32 = vpop.f32.mrf.mxu0  ;;  %v4606_v20 = vadd.f32 %v10081_v25, %v4577_v22  ;;  %v1484_v22 = vadd.s32 624, %v8308_v18 }
 0x2ea   : > { %6495 = vmatpush.msk.msra.mxu3 %vm1697_vm0, %v10353_v3 }
 0x2eb   : > { %v4897_v2 = vsel %vm1242_vm11, %v4659_v17, 0.0  ;;  %5010 = vmatmul.f32.vlgmr.msrb.gmra.mxu3 %v4934_v50  ;;  %vm1565_vm7 = vcmp.ge.s32.totalorder %v1484_v22, %v9333_v54  ;;  %vm1647_vm8 = vcmp.lt.s32.totalorder %v1484_v22, %v9335_v51 }
 0x2ec   : > { %v4952_v46 = vadd.f32 %v4951_v33, %v4897_v2  ;;  %vm1727_vm10 = vmand %vm1565_vm7, %vm1647_vm8 }
 0x2ed   : > { %v4661_v4 = vpop.f32.mrf.mxu2 }
 0x2ee   : > { %v4632_v5 = vpop.f32.mrf.mxu1  ;;  %v4675_v38 = vpop.f32.mrf.mxu3 }
 0x2ef   : > { %v4633_v45 = vadd.f32 %v4632_v5, %v4604_v29  ;;  %v4705_v48 = vadd.f32 %v4704_v32, %v4675_v38 }
 0x2f1   : > { %v4662_v9 = vadd.f32 %v4661_v4, %v4633_v45  ;;  %v4706_v49 = vpop.f32.mrf.mxu0  ;;  %6431 = vmatmul.msk.bf16.gmra.mxu1 %vm3721_vm2, %v10411_v23 }
 0x2f3   : > { %v4902_v34 = vsel %vm1247_vm1, %v4662_v9, 0.0 }
 0x2f4   : > { %v4953_v1 = vadd.f32 %v4952_v46, %v4902_v34  ;;  %v1483_v34 = vadd.s32 616, %v8308_v18 }
 0x2f5   : > { %v4663_v16 = vpop.f32.mrf.mxu2 }
 0x2f6   : > { %v4634_v13 = vpop.f32.mrf.mxu1  ;;  %v4677_v39 = vpop.f32.mrf.mxu3  ;;  %vm1564_vm11 = vcmp.ge.s32.totalorder %v1483_v34, %v9333_v54  ;;  %vm1646_vm12 = vcmp.lt.s32.totalorder %v1483_v34, %v9335_v51 }
 0x2f7   : > { %v4635_v27 = vadd.f32 %v4634_v13, %v4606_v20  ;;  %v4707_v10 = vadd.f32 %v4706_v49, %v4677_v39  ;;  %vm1726_vm14 = vmand %vm1564_vm11, %vm1646_vm12  ;;  %v10161_v39 = vadd.s32 512, %v8316_v19 }
 0x2f9   : > { %v4664_v41 = vadd.f32 %v4663_v16, %v4635_v27  ;;  %v4709_v14 = vpop.f32.mrf.mxu0  ;;  %v1480_v16 = vadd.s32 592, %v8308_v18 }
 0x2fb   : > { %v4907_v35 = vsel %vm1252_vm5, %v4664_v41, 0.0  ;;  %vm1561_vm4 = vcmp.ge.s32.totalorder %v1480_v16, %v9333_v54  ;;  %vm1643_vm5 = vcmp.lt.s32.totalorder %v1480_v16, %v9335_v51 }
 0x2fc   : > { %v4954_v15 = vadd.f32 %v4953_v1, %v4907_v35  ;;  %v1482_v1 = vadd.s32 608, %v8308_v18  ;;  %v623_v35 = vsub.s32 %v10161_v39, %v8338_v47  ;;  %v1478_v47 = vadd.s32 576, %v8308_v18 }
 0x2fd   : > { %v4762_v0 = vpop.f32.mrf.mxu2 }
 0x2fe   : > { %v4955_v43 = vrot.slane %v4954_v15, 4  ;;  %v4680_v37 = vpop.f32.mrf.mxu3  ;;  %v4733_v60 = vpop.f32.mrf.mxu1  ;;  %vm1563_vm13 = vcmp.ge.s32.totalorder %v1482_v1, %v9333_v54  ;;  %vm1645_vm0 = vcmp.lt.s32.totalorder %v1482_v1, %v9335_v51 }
 0x2ff   : > { %v4710_v21 = vadd.f32 %v4709_v14, %v4680_v37  ;;  %v10121_v26 = vadd.f32 %v4733_v60, %v4705_v48  ;;  %v1485_v48 = vadd.s32 632, %v8308_v18  ;;  %vm1725_vm15 = vmand %vm1563_vm13, %vm1645_vm0  ;;  %v618_v14 = vsub.s32 %v10161_v39, %v8308_v18 }
 0x300   : > { %v4956_v63 = vadd.f32 %v4955_v43, %v4954_v15 }
 0x301   : > { %v4711_v24 = vpop.f32.mrf.mxu0  ;;  %vm1566_vm2 = vcmp.ge.s32.totalorder %v1485_v48, %v9333_v54  ;;  %vm1648_vm6 = vcmp.lt.s32.totalorder %v1485_v48, %v9335_v51  ;;  %v4763_v19 = vadd.f32 %v4762_v0, %v10121_v26  ;;  %vm1258_vm7 = vcmp.eq.s32.totalorder %v618_v14, 512 }
 0x302   : > { %v4957_v11 = vrot.slane %v4956_v63, 2  ;;  %vm1728_vm9 = vmand %vm1566_vm2, %vm1648_vm6  ;;  %vm1338_vm8 = vcmp.eq.s32.totalorder %v618_v14, 576 }
 0x303   : > { %6496 = vmatpush.msk.msrb.mxu0 %vm1728_vm9, %v10353_v3  ;;  %vm1723_vm6 = vmand %vm1561_vm4, %vm1643_vm5  ;;  %vm1263_vm9 = vcmp.eq.s32.totalorder %v623_v35, 512 }
 0x304   : > { %v4958_v25 = vadd.f32 %v4957_v11, %v4956_v63  ;;  %v1479_v63 = vadd.s32 584, %v8308_v18  ;;  %vm10180_vm11 = vmor %vm1258_vm7, %vm1338_vm8 }
 0x305   : > { %6497 = vmatpush.msk.msrb.mxu0 %vm1727_vm10, %v10353_v3  ;;  %v4764_v57 = vpop.f32.mrf.mxu2  ;;  %vm1343_vm10 = vcmp.eq.s32.totalorder %v623_v35, 576 }
 0x306   : > { %v4959_v61 = vrot.slane %v4958_v25, 1  ;;  %v4682_v33 = vpop.f32.mrf.mxu3  ;;  %v4735_v31 = vpop.f32.mrf.mxu1  ;;  %vm10186_vm12 = vmor %vm1263_vm9, %vm1343_vm10  ;;  %vm1560_vm13 = vcmp.ge.s32.totalorder %v1479_v63, %v9333_v54  ;;  %vm1642_vm0 = vcmp.lt.s32.totalorder %v1479_v63, %v9335_v51 }
 0x307   : > { %v4712_v8 = vadd.f32 %v4711_v24, %v4682_v33  ;;  %v10123_v53 = vadd.f32 %v4735_v31, %v4707_v10  ;;  %6498 = vmatpush.msk.msrb.mxu0 %vm1726_vm14, %v10353_v3  ;;  %v1481_v10 = vadd.s32 600, %v8308_v18  ;;  %vm1559_vm14 = vcmp.ge.s32.totalorder %v1478_v47, %v9333_v54 }
 0x308   : > { %v4960_v59 = vadd.f32 %v4959_v61, %v4958_v25  ;;  %v628_v25 = vsub.s32 %v10161_v39, %v8375_v42 }
 0x309   : > { %v4714_v52 = vpop.f32.mrf.mxu0  ;;  %6499 = vmatpush.msk.msrb.mxu0 %vm1725_vm15, %v10353_v3  ;;  %vm1562_vm1 = vcmp.ge.s32.totalorder %v1481_v10, %v9333_v54  ;;  %vm1644_vm3 = vcmp.lt.s32.totalorder %v1481_v10, %v9335_v51  ;;  %v4765_v60 = vadd.f32 %v4764_v57, %v10123_v53  ;;  %vm1641_vm15 = vcmp.lt.s32.totalorder %v1478_v47, %v9335_v51 }
 0x30a   : > { %5050 = vmatmul.f32.vlgmr.msra.gmra.mxu3 %v4960_v59  ;;  %vm1724_vm2 = vmand %vm1562_vm1, %vm1644_vm3  ;;  %vm1268_vm4 = vcmp.eq.s32.totalorder %v628_v25, 512  ;;  %vm1348_vm5 = vcmp.eq.s32.totalorder %v628_v25, 576 }
 0x30b   : > { %6500 = vmatpush.msk.msrb.mxu0 %vm1724_vm2, %v10353_v3  ;;  %vm1722_vm1 = vmand %vm1560_vm13, %vm1642_vm0 }
 0x30c   : > { %vm1721_vm3 = vmand %vm1559_vm14, %vm1641_vm15 }
 0x30d   : > { %v4767_v41 = vpop.f32.mrf.mxu2  ;;  %6501 = vmatpush.msk.msrb.mxu0 %vm1723_vm6, %v10353_v3  ;;  %vm10203_vm2 = vmor %vm1268_vm4, %vm1348_vm5 }
 0x30e   : > { %v4685_v12 = vpop.f32.mrf.mxu3  ;;  %v4738_v36 = vpop.f32.mrf.mxu1 }
 0x30f   : > { %v4715_v55 = vadd.f32 %v4714_v52, %v4685_v12  ;;  %v10125_v6 = vadd.f32 %v4738_v36, %v4710_v21  ;;  %6502 = vmatpush.msk.msrb.mxu0 %vm1722_vm1, %v10353_v3 }
 0x311   : > { %v4716_v58 = vpop.f32.mrf.mxu0  ;;  %v4768_v42 = vadd.f32 %v4767_v41, %v10125_v6  ;;  %6503 = vmatpush.msk.msrb.mxu0 %vm1721_vm3, %v10353_v3 }
 0x315   : > { %v4769_v33 = vpop.f32.mrf.mxu2 }
 0x316   : > { %v4687_v17 = vpop.f32.mrf.mxu3  ;;  %v4740_v32 = vpop.f32.mrf.mxu1 }
 0x317   : > { %v4717_v50 = vadd.f32 %v4716_v58, %v4687_v17  ;;  %v10127_v28 = vadd.f32 %v4740_v32, %v4712_v8  ;;  %v1477_v17 = vadd.s32 568, %v8308_v18  ;;  %v1476_v32 = vadd.s32 560, %v8308_v18 }
 0x319   : > { %v10129_v62 = vpop.f32.mrf.mxu0  ;;  %vm1558_vm6 = vcmp.ge.s32.totalorder %v1477_v17, %v9333_v54  ;;  %vm1640_vm7 = vcmp.lt.s32.totalorder %v1477_v17, %v9335_v51  ;;  %vm1557_vm8 = vcmp.ge.s32.totalorder %v1476_v32, %v9333_v54  ;;  %vm1639_vm9 = vcmp.lt.s32.totalorder %v1476_v32, %v9335_v51 }
 0x31a   : > { %vm1720_vm10 = vmand %vm1558_vm6, %vm1640_vm7  ;;  %v4770_v22 = vadd.f32 %v4769_v33, %v10127_v28 }
 0x31b   : > { %6504 = vmatpush.msk.msrb.mxu0 %vm1720_vm10, %v10353_v3 }
 0x31d   : > { %v4772_v48 = vpop.f32.mrf.mxu2 }
 0x31e   : > { %v10131_v2 = vpop.f32.mrf.mxu3  ;;  %v4743_v46 = vpop.f32.mrf.mxu1 }
 0x31f   : > { %v10133_v4 = vadd.f32 %v4743_v46, %v4715_v55  ;;  %v4720_v25 = vadd.f32 %v10129_v62, %v10131_v2  ;;  %v1470_v62 = vadd.s32 512, %v8308_v18 }
 0x321   : > { %v10135_v29 = vpop.f32.mrf.mxu0  ;;  %v4773_v41 = vadd.f32 %v4772_v48, %v10133_v4  ;;  %v1473_v4 = vadd.s32 536, %v8308_v18 }
 0x325   : > { %v4774_v35 = vpop.f32.mrf.mxu2 }
 0x326   : > { %v10137_v5 = vpop.f32.mrf.mxu3  ;;  %v4745_v38 = vpop.f32.mrf.mxu1 }
 0x327   : > { %v10139_v45 = vadd.f32 %v4745_v38, %v4717_v50  ;;  %v633_v38 = vsub.s32 %v10161_v39, %v8417_v7  ;;  %v1475_v7 = vadd.s32 552, %v8308_v18 }
 0x329   : > { %v4820_v9 = vpop.f32.mrf.mxu0  ;;  %vm1353_vm13 = vcmp.eq.s32.totalorder %v633_v38, 576  ;;  %vm1556_vm14 = vcmp.ge.s32.totalorder %v1475_v7, %v9333_v54  ;;  %vm1638_vm15 = vcmp.lt.s32.totalorder %v1475_v7, %v9335_v51  ;;  %v4775_v63 = vadd.f32 %v4774_v35, %v10139_v45 }
 0x32a   : > { %vm1718_vm4 = vmand %vm1556_vm14, %vm1638_vm15 }
 0x32d   : > { %v4777_v45 = vpop.f32.mrf.mxu2 }
 0x32e   : > { %v10147_v49 = vpop.f32.mrf.mxu1  ;;  %v4791_v23 = vpop.f32.mrf.mxu3 }
 0x32f   : > { %v4792_v37 = vadd.f32 %v4791_v23, %v4763_v19  ;;  %v638_v19 = vsub.s32 %v10161_v39, %v8459_v40  ;;  %v643_v40 = vsub.s32 %v10161_v39, %v8494_v30  ;;  %v1471_v30 = vadd.s32 520, %v8308_v18 }
 0x331   : > { %v4822_v27 = vpop.f32.mrf.mxu0  ;;  %v4821_v11 = vadd.f32 %v4820_v9, %v4792_v37  ;;  %vm1358_vm6 = vcmp.eq.s32.totalorder %v638_v19, 576  ;;  %vm1552_vm15 = vcmp.ge.s32.totalorder %v1471_v30, %v9333_v54 }
 0x336   : > { %v10157_v20 = vpop.f32.mrf.mxu1  ;;  %v4793_v13 = vpop.f32.mrf.mxu3 }
 0x337   : > { %v4794_v21 = vadd.f32 %v4793_v13, %v4765_v60  ;;  %v1474_v13 = vadd.s32 544, %v8308_v18 }
 0x339   : > { %v4825_v26 = vpop.f32.mrf.mxu0  ;;  %v4823_v8 = vadd.f32 %v4822_v27, %v4794_v21  ;;  %vm1555_vm1 = vcmp.ge.s32.totalorder %v1474_v13, %v9333_v54  ;;  %vm1637_vm3 = vcmp.lt.s32.totalorder %v1474_v13, %v9335_v51  ;;  %v598_v13 = vld [vmem:[%s10303_s4] sm:$0x1] }
 0x33a   : > { %vm1717_vm5 = vmand %vm1555_vm1, %vm1637_vm3  ;;  %vm1634_vm1 = vcmp.lt.s32.totalorder %v1471_v30, %v9335_v51 }
 0x33b   : > { %vm1714_vm3 = vmand %vm1552_vm15, %vm1634_vm1 }
 0x33e   : > { %v4796_v15 = vpop.f32.mrf.mxu3  ;;  %v4849_v43 = vpop.f32.mrf.mxu1 }
 0x33f   : > { %v4850_v31 = vadd.f32 %v4849_v43, %v4821_v11  ;;  %v4797_v12 = vadd.f32 %v4796_v15, %v4768_v42  ;;  %v1472_v11 = vadd.s32 528, %v8308_v18  ;;  %v4722_v18 = vadd.f32 %v10135_v29, %v10137_v5 }
 0x341   : > { %v4873_v36 = vsel %vm10180_vm11, %v4850_v31, 0.0  ;;  %v4827_v50 = vpop.f32.mrf.mxu0  ;;  %v4826_v46 = vadd.f32 %v4825_v26, %v4797_v12  ;;  %vm1719_vm11 = vmand %vm1557_vm8, %vm1639_vm9  ;;  %vm1554_vm8 = vcmp.ge.s32.totalorder %v1473_v4, %v9333_v54  ;;  %vm1636_vm9 = vcmp.lt.s32.totalorder %v1473_v4, %v9335_v51 }
 0x342   : > { %6505 = vmatpush.msk.msrb.mxu0 %vm1719_vm11, %v10353_v3  ;;  %vm1716_vm10 = vmand %vm1554_vm8, %vm1636_vm9  ;;  %vm1553_vm11 = vcmp.ge.s32.totalorder %v1472_v11, %v9333_v54  ;;  %v4751_v17 = vadd.f32 %v10157_v20, %v4722_v18 }
 0x344   : > { %6506 = vmatpush.msk.msrb.mxu0 %vm1718_vm4, %v10353_v3 }
 0x346   : > { %v4798_v53 = vpop.f32.mrf.mxu3  ;;  %v4851_v59 = vpop.f32.mrf.mxu1  ;;  %6507 = vmatpush.msk.msrb.mxu0 %vm1717_vm5, %v10353_v3  ;;  %vm1551_vm5 = vcmp.ge.s32.totalorder %v1470_v62, %v9333_v54 }
 0x347   : > { %v4852_v52 = vadd.f32 %v4851_v59, %v4823_v8  ;;  %v4799_v57 = vadd.f32 %v4798_v53, %v4770_v22  ;;  %v4749_v8 = vadd.f32 %v10147_v49, %v4720_v25  ;;  %v4779_v54 = vpop.f32.mrf.mxu2 }
 0x348   : > { %6508 = vmatpush.msk.msrb.mxu0 %vm1716_vm10, %v10353_v3 }
 0x349   : > { %v4878_v55 = vsel %vm10186_vm12, %v4852_v52, 0.0  ;;  %vm1273_vm12 = vcmp.eq.s32.totalorder %v633_v38, 512  ;;  %v4828_v28 = vadd.f32 %v4827_v50, %v4799_v57  ;;  %v4830_v10 = vpop.f32.mrf.mxu0  ;;  %v4778_v49 = vadd.f32 %v4777_v45, %v4749_v8 }
 0x34a   : > { %v4961_v58 = vadd.f32 %v4878_v55, %v4873_v36  ;;  %vm10220_vm0 = vmor %vm1273_vm12, %vm1353_vm13  ;;  %vm1635_vm12 = vcmp.lt.s32.totalorder %v1472_v11, %v9335_v51  ;;  %vm1283_vm13 = vcmp.eq.s32.totalorder %v643_v40, 512  ;;  %v648_v52 = vsub.s32 %v10161_v39, %v8524_v56 }
 0x34b   : > { %vm1715_vm14 = vmand %vm1553_vm11, %vm1635_vm12  ;;  %v4780_v56 = vadd.f32 %v4779_v54, %v4751_v17 }
 0x34c   : > { %6509 = vmatpush.msk.msrb.mxu0 %vm1715_vm14, %v10353_v3  ;;  %vm1368_vm8 = vcmp.eq.s32.totalorder %v648_v52, 576 }
 0x34e   : > { %v4854_v0 = vpop.f32.mrf.mxu1  ;;  %v4801_v23 = vpop.f32.mrf.mxu3  ;;  %6510 = vmatpush.msk.msrb.mxu0 %vm1714_vm3, %v10353_v3 }
 0x34f   : > { %v4855_v9 = vadd.f32 %v4854_v0, %v4826_v46  ;;  %v4802_v15 = vadd.f32 %v4801_v23, %v4773_v41 }
 0x351   : > { %v4883_v34 = vsel %vm10203_vm2, %v4855_v9, 0.0  ;;  %vm1278_vm2 = vcmp.eq.s32.totalorder %v638_v19, 512  ;;  %v4831_v21 = vadd.f32 %v4830_v10, %v4802_v15  ;;  %v4832_v24 = vpop.f32.mrf.mxu0 }
 0x352   : > { %v4962_v1 = vadd.f32 %v4961_v58, %v4883_v34  ;;  %vm1398_vm7 = vmor %vm1278_vm2, %vm1358_vm6  ;;  %vm1633_vm2 = vcmp.lt.s32.totalorder %v1470_v62, %v9335_v51 }
 0x353   : > { %vm1713_vm6 = vmand %vm1551_vm5, %vm1633_vm2 }
 0x354   : > { %6511 = vmatpush.msk.msrb.mxu0 %vm1713_vm6, %v10353_v3  ;;  %v653_v3 = vsub.s32 %v10161_v39, %v8580_v44  ;;  %v4991_v39 = vpop.f32.mrf.mxu2 }
 0x356   : > { %v4856_v16 = vpop.f32.mrf.mxu1  ;;  %v4803_v37 = vpop.f32.mrf.mxu3  ;;  %vm1293_vm10 = vcmp.eq.s32.totalorder %v653_v3, 512  ;;  %vm1373_vm11 = vcmp.eq.s32.totalorder %v653_v3, 576 }
 0x357   : > { %v4857_v14 = vadd.f32 %v4856_v16, %v4828_v28  ;;  %v4804_v61 = vadd.f32 %v4803_v37, %v4775_v63  ;;  %vm1413_vm12 = vmor %vm1293_vm10, %vm1373_vm11  ;;  %v4992_v28 = vadd.f32 %v4991_v39, %v598_v13 }
 0x359   : > { %v4888_v43 = vsel %vm10220_vm0, %v4857_v14, 0.0  ;;  %vm1363_vm0 = vcmp.eq.s32.totalorder %v643_v40, 576  ;;  %v4833_v2 = vadd.f32 %v4832_v24, %v4804_v61  ;;  %v4835_v55 = vpop.f32.mrf.mxu0 }
 0x35a   : > { %v4963_v60 = vadd.f32 %v4962_v1, %v4888_v43  ;;  %vm1403_vm4 = vmor %vm1283_vm13, %vm1363_vm0  ;;  %vm5074_vm13 = vcmask 73728  }
 0x35c   : > { %v5031_v16 = vpop.f32.mrf.mxu2 }
 0x35e   : > { %v4859_v26 = vpop.f32.mrf.mxu1  ;;  %v4806_v53 = vpop.f32.mrf.mxu3 }
 0x35f   : > { %v4860_v47 = vadd.f32 %v4859_v26, %v4831_v21  ;;  %v4807_v12 = vadd.f32 %v4806_v53, %v4778_v49 }
 0x361   : > { %v4893_v33 = vsel %vm1398_vm7, %v4860_v47, 0.0  ;;  %vm1288_vm7 = vcmp.eq.s32.totalorder %v648_v52, 512  ;;  %v4836_v51 = vadd.f32 %v4835_v55, %v4807_v12  ;;  %v4837_v38 = vpop.f32.mrf.mxu0 }
 0x362   : > { %v4964_v31 = vadd.f32 %v4963_v60, %v4893_v33  ;;  %vm1408_vm9 = vmor %vm1288_vm7, %vm1368_vm8 }
 0x366   : > { %v4861_v59 = vpop.f32.mrf.mxu1  ;;  %v4808_v32 = vpop.f32.mrf.mxu3 }
 0x367   : > { %v4862_v42 = vadd.f32 %v4861_v59, %v4833_v2  ;;  %v4809_v46 = vadd.f32 %v4808_v32, %v4780_v56 }
 0x369   : > { %v4898_v36 = vsel %vm1403_vm4, %v4862_v42, 0.0  ;;  %v4838_v0 = vadd.f32 %v4837_v38, %v4809_v46 }
 0x36a   : > { %v4965_v58 = vadd.f32 %v4964_v31, %v4898_v36 }
 0x36e   : > { %v4864_v50 = vpop.f32.mrf.mxu1  ;;  %v5011_v27 = vpop.f32.mrf.mxu3 }
 0x36f   : > { %v4865_v6 = vadd.f32 %v4864_v50, %v4836_v51  ;;  %v5012_v10 = vadd.f32 %v5011_v27, %v4992_v28 }
 0x371   : > { %v4903_v29 = vsel %vm1408_vm9, %v4865_v6, 0.0  ;;  %v5032_v14 = vadd.f32 %v5031_v16, %v5012_v10 }
 0x372   : > { %v4966_v5 = vadd.f32 %v4965_v58, %v4903_v29 }
 0x376   : > { %v4866_v20 = vpop.f32.mrf.mxu1 }
 0x377   : > { %v4867_v48 = vadd.f32 %v4866_v20, %v4838_v0 }
 0x379   : > { %v4908_v22 = vsel %vm1413_vm12, %v4867_v48, 0.0 }
 0x37a   : > { %v4967_v9 = vadd.f32 %v4966_v5, %v4908_v22 }
 0x37c   : > { %v4968_v23 = vrot.slane %v4967_v9, 4 }
 0x37e   : > { %v4969_v57 = vadd.f32 %v4968_v23, %v4967_v9 }
 0x380   : > { %v4970_v34 = vrot.slane %v4969_v57, 2 }
 0x382   : > { %v4971_v1 = vadd.f32 %v4970_v34, %v4969_v57 }
 0x384   : > { %v4972_v7 = vrot.slane %v4971_v1, 1 }
 0x386   : > { %v4973_v44 = vadd.f32 %v4972_v7, %v4971_v1 }
 0x388   : > { %5070 = vmatmul.f32.vlgmr.msrb.gmra.mxu0 %v4973_v44 }
 0x38d   : > { %v5051_v41 = vpop.f32.mrf.mxu3 }
 0x38e   : > { %v5052_v19 = vadd.f32 %v5051_v41, %v5032_v14 }
 0x405   : > { %v5071_v35 = vpop.f32.mrf.mxu0 }
 0x406   : > { %v5072_v15 = vadd.f32 %v5071_v35, %v5052_v19 }
 0x408   : > { %5075 = vst.msk [vmem:[%s216_s17] sm:$0x1] %vm5074_vm13, %v5072_v15 }
 0x409   : > { %6870 = shalt.err (!%p6867_p3)
}
 0x40a   : > { %6799 = dma.vmem_to_hbm [thread:$0]  (%p6977_p5), %s5088_s23, 16, %s5090_s13, %s5077_s25  }
 0x40b PF: > { %p6805_p4 = scmp.ge.s32.totalorder %s6905_s21, 2  ;;  %s5101_s10 = sand.u32 1, %s6893_s18  }
 0x40c   : > { %s5102_s11 = scalar_lea.sflag [#allocation3], %s5101_s10 }
 0x40d   : > { %p6802_p7 = pnand %p6805_p4, %p6981_p6 }
 0x40f   : > { %p6803_p8 = pneg %p6802_p7 }
 0x411   : > { %6888 = dma.done.wait (%p6803_p8), %s5102_s11, 16  }
 0x412   : > { %6890 = vsyncadd (%p6803_p8), %s5102_s11, 4294967280  ;;  %p15_p9 = scmp.ge.s32.totalorder %s6964_s24, 4   ;;  %s10420_s18 = smov %s6897_s19 }
 0x413   : > { %s10421_s19 = smov %s6901_s20  ;;  %s10422_s20 = smov %s6975_s27 }
 0x414   : > { %s10423_s21 = smov %s6964_s24  ;;  %17 = sbr.rel (!%p15_p9) target bundleno = 3 (0x3), region = 75 }
 0x419   :  { %5107 = vsyncpa [#allocation3], 1 }
 0x41a   :  { %5109 = vsyncpa [#allocation3 + $0x1], 1 }

</bundles_post_ra>
